<compile_context>
chip_gen: v6e
topology: v6e:2x2x1
jax: 0.10.0
libtpu: 0.0.40
codegen_flags: <defaults>
</compile_context>

<pallas_src>
import math

import jax
import jax.numpy as jnp
from jax.experimental import pallas as pl
from jax.experimental.pallas import tpu as pltpu

T_FIXED = 16  # the module hard-codes T = 16


# --------------------------------------------------------------------- fc1 ---
def _fc1_kernel(x_ref, w_ref, b_ref, y_ref):
    # x_ref: (rt, L, C) raw input rows (CLS included), w_ref: (C, Ca), b_ref: (1, Ca)
    # y_ref: (rt, HW, Ca) -- CLS dropped on the Ca-wide result (cheap relayout).
    rt, l, c = x_ref.shape
    ca = w_ref.shape[1]
    xt = x_ref[...].reshape(rt * l, c)                 # contiguous, no offset slice
    y = jnp.dot(xt.astype(w_ref.dtype), w_ref[...],
                preferred_element_type=jnp.float32) + b_ref[...]
    y = y.reshape(rt, l, ca)[:, 1:, :]                 # drop CLS (Ca-wide, small)
    y_ref[...] = y.astype(y_ref.dtype)


def _pick_fc1_row_tile(bt, l, c):
    cap_rows = max(1, 2048 // max(l, 1))                  # ~2048 matmul rows / step
    cap_vmem = max(1, (8 << 20) // max(1, l * c * 4))     # ~8 MiB x-block / step
    cap_grid = max(1, bt // 2)                            # >= 2 grid steps (2 TCs)
    cap = max(1, min(cap_rows, cap_vmem, cap_grid, bt))
    for rt in range(cap, 0, -1):
        if bt % rt == 0:
            return rt
    return 1


def fc1(x, w1t, b1, out_dtype):
    bt, l, c = x.shape
    hw, ca = l - 1, w1t.shape[1]
    rt = _pick_fc1_row_tile(bt, l, c)
    return pl.pallas_call(
        _fc1_kernel,
        out_shape=jax.ShapeDtypeStruct((bt, hw, ca), out_dtype),
        grid=(bt // rt,),
        in_specs=[
            pl.BlockSpec((rt, l, c), lambda i: (i, 0, 0)),
            pl.BlockSpec((c, ca), lambda i: (0, 0)),
            pl.BlockSpec((1, ca), lambda i: (0, 0)),
        ],
        out_specs=pl.BlockSpec((rt, hw, ca), lambda i: (i, 0, 0)),
        compiler_params=pltpu.CompilerParams(dimension_semantics=("parallel",)),
    )(x, w1t, b1)


# ------------------------------------------------------- depthwise 3-D conv --
def _make_conv_kernel(kt, kh, kw, t, h, w, ca):
    pt, ph, pw = kt // 2, kh // 2, kw // 2
    f = h * w * ca

    def kernel(y_ref, wl_ref, tm_ref, bc_ref, o_ref):
        y = y_ref[0].astype(jnp.float32)                   # (T, F) lane-dense

        # Hoisted temporal (sublane) shifts; padding masks precomputed (kt, T, 1).
        y_t = []
        for dt in range(kt):
            d = dt - pt
            if d == 0:
                y_t.append(y)
            else:
                rolled = pltpu.roll(y, shift=(-d) % t, axis=0)
                y_t.append(rolled * tm_ref[dt])

        # TODO(synk): on v6e/v7x the 27-tap MAC could run in packed bf16 VALU for
        # ~2x; kept f32 so the same kernel is exact on v5e (no bf16 VPU).
        acc = jnp.zeros((t, f), jnp.float32)
        for dh in range(kh):
            for dw in range(kw):
                lane_delta = ((dh - ph) * w + (dw - pw)) * ca
                shift = (-lane_delta) % f
                for dt in range(kt):
                    src = y_t[dt]
                    sp = src if shift == 0 else pltpu.roll(src, shift=shift, axis=1)
                    # wl already carries the H/W zero-padding mask per output lane.
                    acc = acc + sp * wl_ref[dt, dh, dw]
        acc = acc + bc_ref[...]
        o_ref[0] = acc.astype(o_ref.dtype)

    return kernel


def conv3d_dw(y1f, wl, tmask, bc_lane, h, w, ca, out_dtype):
    b, t, f = y1f.shape
    kt, kh, kw = wl.shape[:3]
    kern = _make_conv_kernel(kt, kh, kw, t, h, w, ca)
    return pl.pallas_call(
        kern,
        out_shape=jax.ShapeDtypeStruct((b, t, f), out_dtype),
        grid=(b,),
        in_specs=[
            pl.BlockSpec((1, t, f), lambda i: (i, 0, 0)),
            pl.BlockSpec((kt, kh, kw, 1, f), lambda i: (0, 0, 0, 0, 0)),
            pl.BlockSpec((kt, t, 1), lambda i: (0, 0, 0)),
            pl.BlockSpec((1, f), lambda i: (0, 0)),
        ],
        out_specs=pl.BlockSpec((1, t, f), lambda i: (i, 0, 0)),
        compiler_params=pltpu.CompilerParams(dimension_semantics=("parallel",)),
    )(y1f, wl, tmask, bc_lane)


# ----------------------- fused mean + T_linear + softmax + gate + fc2 + res --
def _make_gate_fc2_kernel(t, hw, ca, c):
    inv_f = 1.0 / float(hw * ca)

    def kernel(y_ref, twt_ref, tb_ref, w2_ref, b2_ref, x_ref, o_ref):
        # y_ref: (1, T*HW, Ca) conv output; twt: (T, T) = T_linear1.weight.T;
        # tb: (1, T); w2: (Ca, C); b2: (1, C); x_ref/o_ref: (T, L, C) rows of x.
        y3 = y_ref[0].reshape(t, hw, ca).astype(jnp.float32)        # (T, HW, Ca)

        # per-frame feature mean -> 16x16 temporal linear -> softmax over T
        m_col = jnp.sum(jnp.sum(y3, axis=2), axis=1, keepdims=True) * inv_f   # (T,1)
        z_row = jnp.sum(twt_ref[...] * m_col, axis=0, keepdims=True) + tb_ref[...]
        z_row = z_row - jnp.max(z_row, axis=1, keepdims=True)
        e_row = jnp.exp(z_row)
        s_row = e_row / jnp.sum(e_row, axis=1, keepdims=True)       # (1, T)
        # (1,T) row -> (T,1) column without a transpose op: identity mask + reduce
        rr = jax.lax.broadcasted_iota(jnp.int32, (t, t), 0)
        cc = jax.lax.broadcasted_iota(jnp.int32, (t, t), 1)
        eye = (rr == cc).astype(jnp.float32)
        s_col = jnp.sum(s_row * eye, axis=1, keepdims=True)         # (T, 1)

        # gate is a per-(b,t) scalar so it commutes with fc2: gate the Ca-wide
        # tensor BEFORE the matmul (C/Ca fewer VPU ops).
        yg = y3 * s_col[:, None, :]                                 # (T, HW, Ca)

        z2 = jnp.dot(yg.reshape(t * hw, ca).astype(w2_ref.dtype), w2_ref[...],
                     preferred_element_type=jnp.float32)            # (T*HW, C)
        z2 = z2.reshape(t, hw, c) + b2_ref[...]

        o_ref[:, :1, :] = x_ref[:, :1, :]                           # CLS passthrough
        o_ref[:, 1:, :] = (x_ref[:, 1:, :] + z2).astype(o_ref.dtype)  # residual add

    return kernel


def gate_fc2_residual(y2r, twt, tb_row, w2t, b2, x):
    b, thw, ca = y2r.shape
    bt, l, c = x.shape
    t = bt // b
    hw = l - 1
    kern = _make_gate_fc2_kernel(t, hw, ca, c)
    return pl.pallas_call(
        kern,
        out_shape=jax.ShapeDtypeStruct((bt, l, c), x.dtype),
        grid=(b,),
        in_specs=[
            pl.BlockSpec((1, thw, ca), lambda i: (i, 0, 0)),
            pl.BlockSpec((t, t), lambda i: (0, 0)),
            pl.BlockSpec((1, t), lambda i: (0, 0)),
            pl.BlockSpec((ca, c), lambda i: (0, 0)),
            pl.BlockSpec((1, c), lambda i: (0, 0)),
            pl.BlockSpec((t, l, c), lambda i: (i, 0, 0)),
        ],
        out_specs=pl.BlockSpec((t, l, c), lambda i: (i, 0, 0)),
        # NOTE: only avoids the x copy if the caller donates x under jit.
        input_output_aliases={5: 0},
        compiler_params=pltpu.CompilerParams(dimension_semantics=("parallel",)),
    )(y2r, twt, tb_row, w2t, b2, x)


# ----------------------------------------------- one-time weight preparation -
def prepare_params(params, h, w, *, use_bf16=False):
    """Pre-transpose the linear weights, fold the depthwise conv weight/bias onto
    the (h w c) lane axis (with the H/W zero-padding masks baked in), and
    precompute the temporal zero-padding masks."""
    ca, c = params["w1"].shape
    kt, kh, kw, _ = params["wc"].shape
    pt, ph, pw = kt // 2, kh // 2, kw // 2
    f = h * w * ca
    t = T_FIXED
    mm_dtype = jnp.bfloat16 if use_bf16 else jnp.float32

    hh = jnp.arange(h).reshape(h, 1, 1)
    ww = jnp.arange(w).reshape(1, w, 1)
    taps = []
    for dt in range(kt):
        for dh in range(kh):
            for dw in range(kw):
                valid = ((hh + dh - ph >= 0) & (hh + dh - ph < h) &
                         (ww + dw - pw >= 0) & (ww + dw - pw < w))
                wt = jnp.where(valid, params["wc"][dt, dh, dw].reshape(1, 1, ca), 0.0)
                taps.append(wt.astype(jnp.float32).reshape(1, f))
    wl = jnp.stack(taps, axis=0).reshape(kt, kh, kw, 1, f)

    ti = jnp.arange(t).reshape(1, t, 1)
    dts = jnp.arange(kt).reshape(kt, 1, 1)
    src_t = ti + dts - pt
    tmask = ((src_t >= 0) & (src_t < t)).astype(jnp.float32)          # (kt, T, 1)

    bc_lane = jnp.tile(params["bc"].reshape(1, 1, ca), (1, h * w, 1)).reshape(1, f)

    return {
        "w1t": params["w1"].T.astype(mm_dtype),             # (C, Ca)
        "b1": params["b1"].reshape(1, ca).astype(jnp.float32),
        "wl": wl,                                           # (kt, kh, kw, 1, F)
        "tmask": tmask,                                     # (kt, T, 1)
        "bc_lane": bc_lane.astype(jnp.float32),             # (1, F)
        "w2t": params["w2"].T.astype(mm_dtype),             # (Ca, C)
        "b2": params["b2"].reshape(1, c).astype(jnp.float32),
        "twt": params["tw"].T.astype(jnp.float32),          # (T, T)
        "tb_row": params["tb"].reshape(1, t).astype(jnp.float32),
    }


# --------------------------------------------------------------- full forward
def tse_adapter_forward(x, prep):
    """x: (B*T, L, C) with L = H*W + 1 (CLS token first)."""
    bt, l, c = x.shape
    t = T_FIXED
    b = bt // t
    hw = l - 1
    h = w = int(round(math.sqrt(hw)))
    assert h * w == hw and b * t == bt
    ca = prep["w1t"].shape[1]
    f = hw * ca
    inter_dtype = prep["w1t"].dtype            # bf16 intermediates on the bf16 path

    # fc1 on tiled rows (CLS dropped on the Ca-wide result inside the kernel).
    y1 = fc1(x, prep["w1t"], prep["b1"], inter_dtype)              # (BT, HW, Ca)

    # depthwise 3-D conv in the lane-folded (T, H*W*Ca) layout.
    y1f = y1.reshape(b, t, f)                                      # metadata-only
    y2 = conv3d_dw(y1f, prep["wl"], prep["tmask"], prep["bc_lane"],
                   h, w, ca, inter_dtype)                          # (B, T, F)

    # fused mean -> T_linear1 -> softmax -> gate -> fc2 -> residual (in place).
    y2r = y2.reshape(b, t * hw, ca)                                # metadata-only
    return gate_fc2_residual(y2r, prep["twt"], prep["tb_row"],
                             prep["w2t"], prep["b2"], x)


# ---------------------------------------------------------- pure-JAX reference
def ref_forward(x, params):
    bt, l, c = x.shape
    t = T_FIXED
    b = bt // t
    hw = l - 1
    h = w = int(round(math.sqrt(hw)))
    ca = params["w1"].shape[0]
    kt, kh, kw, _ = params["wc"].shape

    xt = x[:, 1:, :]
    y = xt @ params["w1"].T + params["b1"]
    y = y.reshape(b, t, h, w, ca)
    yp = jnp.pad(y, ((0, 0), (kt // 2, kt // 2), (kh // 2, kh // 2),
                     (kw // 2, kw // 2), (0, 0)))
    acc = jnp.zeros_like(y)
    for dt in range(kt):
        for dh in range(kh):
            for dw in range(kw):
                acc = acc + yp[:, dt:dt + t, dh:dh + h, dw:dw + w, :] * params["wc"][dt, dh, dw]
    acc = acc + params["bc"]
    xr = acc.reshape(b, t, h * w * ca)
    m = xr.mean(-1)
    z = m @ params["tw"].T + params["tb"]
    s = jax.nn.softmax(z, axis=1)
    xg = xr * s[:, :, None]
    y2 = xg.reshape(bt * hw, ca) @ params["w2"].T + params["b2"]
    return x.at[:, 1:, :].add(y2.reshape(bt, hw, c))


if __name__ == "__main__":
    B, T, H, W = 2, T_FIXED, 4, 4
    C, Ca = 32, 8               # in_channels, adapter_channels
    K = (3, 3, 3)               # kernel_size
    L = H * W + 1

    ks = jax.random.split(jax.random.PRNGKey(0), 8)
    # NOTE: the PyTorch __init__ zero-inits conv weight/bias and fc biases; we use
    # small deterministic nonzero values instead so every kernel is exercised.
    params = {
        "w1": 0.1 * jax.random.normal(ks[0], (Ca, C), jnp.float32),   # nn.Linear(C, Ca)
        "b1": 0.1 * jax.random.normal(ks[1], (Ca,), jnp.float32),
        "wc": 0.1 * jax.random.normal(ks[2], (*K, Ca), jnp.float32),  # depthwise Conv3d (channel-last)
        "bc": 0.1 * jax.random.normal(ks[3], (Ca,), jnp.float32),
        "w2": 0.1 * jax.random.normal(ks[4], (C, Ca), jnp.float32),   # nn.Linear(Ca, C)
        "b2": 0.1 * jax.random.normal(ks[5], (C,), jnp.float32),
        "tw": 0.1 * jax.random.normal(ks[6], (16, 16), jnp.float32),  # nn.Linear(16, 16)
        "tb": 0.1 * jax.random.normal(ks[7], (16,), jnp.float32),
    }
    x = jax.random.normal(jax.random.PRNGKey(1), (B * T, L, C), jnp.float32)

    ref = ref_forward(x, params)
    fwd = jax.jit(tse_adapter_forward)

    # f32 path: tight correctness check against the pure-JAX reference.
    out_f32 = jax.block_until_ready(fwd(x, prepare_params(params, H, W, use_bf16=False)))
    assert out_f32.shape == x.shape and out_f32.dtype == x.dtype
    err32 = float(jnp.max(jnp.abs(out_f32 - ref)))
    assert jnp.allclose(out_f32, ref, atol=1e-4, rtol=1e-4), f"f32 max abs err {err32}"

    # bf16 MXU + bf16-intermediate path (v6e/v7x perf config): looser tolerance.
    out_bf16 = jax.block_until_ready(fwd(x, prepare_params(params, H, W, use_bf16=True)))
    err16 = float(jnp.max(jnp.abs(out_bf16 - ref)))
    assert jnp.allclose(out_bf16, ref, atol=2e-2, rtol=2e-2), f"bf16 max abs err {err16}"

    print("KERNEL_OK")
</pallas_src>

<mosaic_0001>
module attributes {stable_mosaic.version = 11 : i64} {
  func.func @_fc1_kernel(%arg0: i32, %arg1: memref<16x17x32xf32, #tpu.memory_space<vmem>>, %arg2: memref<32x8xf32, #tpu.memory_space<vmem>>, %arg3: memref<1x8xf32, #tpu.memory_space<vmem>>, %arg4: memref<16x16x8xf32, #tpu.memory_space<vmem>>) attributes {dimension_semantics = [#tpu.dimension_semantics<parallel>], iteration_bounds = array<i64: 2>, scalar_prefetch = 0 : i64, scratch_operands = 0 : i64, tpu.core_type = #tpu.core_type<tc>, window_params = [{transform_indices = @transform_0, window_bounds = array<i64: 16, 17, 32>}, {pipeline_mode = #tpu.pipeline_mode<synchronous>, transform_indices = @transform_1, window_bounds = array<i64: 32, 8>}, {pipeline_mode = #tpu.pipeline_mode<synchronous>, transform_indices = @transform_2, window_bounds = array<i64: 1, 8>}, {transform_indices = @transform_3, window_bounds = array<i64: 16, 16, 8>}]} {
    %c0 = arith.constant 0 : index
    %c0_0 = arith.constant 0 : index
    %c0_1 = arith.constant 0 : index
    %0 = vector.load %arg1[%c0, %c0_0, %c0_1] : memref<16x17x32xf32, #tpu.memory_space<vmem>>, vector<16x17x32xf32>
    %1 = vector.shape_cast %0 : vector<16x17x32xf32> to vector<272x32xf32>
    %c0_2 = arith.constant 0 : index
    %c0_3 = arith.constant 0 : index
    %2 = vector.load %arg2[%c0_2, %c0_3] : memref<32x8xf32, #tpu.memory_space<vmem>>, vector<32x8xf32>
    %cst = arith.constant dense<0.000000e+00> : vector<272x8xf32>
    %3 = tpu.matmul %1, %2, %cst {dimension_numbers = #tpu.dot_dimension_numbers<[1], [0], [0], [1], [0, 0, 1, 1], [], []>} : vector<272x32xf32>, vector<32x8xf32>, vector<272x8xf32> -> vector<272x8xf32>
    %c0_4 = arith.constant 0 : index
    %c0_5 = arith.constant 0 : index
    %4 = vector.load %arg3[%c0_4, %c0_5] : memref<1x8xf32, #tpu.memory_space<vmem>>, vector<1x8xf32>
    %5 = vector.broadcast %4 : vector<1x8xf32> to vector<272x8xf32>
    %6 = arith.addf %3, %5 : vector<272x8xf32>
    %7 = vector.shape_cast %6 : vector<272x8xf32> to vector<16x17x8xf32>
    %8 = vector.extract_strided_slice %7 {offsets = [0, 1, 0], sizes = [16, 16, 8], strides = [1, 1, 1]} : vector<16x17x8xf32> to vector<16x16x8xf32>
    %c0_6 = arith.constant 0 : index
    %c0_7 = arith.constant 0 : index
    %c0_8 = arith.constant 0 : index
    %9 = vector.load %arg4[%c0_6, %c0_7, %c0_8] : memref<16x16x8xf32, #tpu.memory_space<vmem>>, vector<16x16x8xf32>
    tpu.vector_store %arg4[%c0_6, %c0_7, %c0_8], %8 {strides = array<i32>} : memref<16x16x8xf32, #tpu.memory_space<vmem>>, vector<16x16x8xf32>,
    return
  }
  func.func @transform_0(%arg0: i32) -> (i32, i32, i32) {
    %c0_i32 = arith.constant 0 : i32
    %c0_i32_0 = arith.constant 0 : i32
    %c0_i32_1 = arith.constant 0 : i32
    return %arg0, %c0_i32, %c0_i32_0 : i32, i32, i32
  }
  func.func @transform_1(%arg0: i32) -> (i32, i32) {
    %c0_i32 = arith.constant 0 : i32
    %c0_i32_0 = arith.constant 0 : i32
    %c0_i32_1 = arith.constant 0 : i32
    return %c0_i32, %c0_i32_0 : i32, i32
  }
  func.func @transform_2(%arg0: i32) -> (i32, i32) {
    %c0_i32 = arith.constant 0 : i32
    %c0_i32_0 = arith.constant 0 : i32
    %c0_i32_1 = arith.constant 0 : i32
    return %c0_i32, %c0_i32_0 : i32, i32
  }
  func.func @transform_3(%arg0: i32) -> (i32, i32, i32) {
    %c0_i32 = arith.constant 0 : i32
    %c0_i32_0 = arith.constant 0 : i32
    %c0_i32_1 = arith.constant 0 : i32
    return %arg0, %c0_i32, %c0_i32_0 : i32, i32, i32
  }
}

module attributes {stable_mosaic.version = 11 : i64} {
  func.func @kernel(%arg0: i32, %arg1: memref<1x16x128xf32, #tpu.memory_space<vmem>>, %arg2: memref<3x3x3x1x128xf32, #tpu.memory_space<vmem>>, %arg3: memref<3x16x1xf32, #tpu.memory_space<vmem>>, %arg4: memref<1x128xf32, #tpu.memory_space<vmem>>, %arg5: memref<1x16x128xf32, #tpu.memory_space<vmem>>) attributes {dimension_semantics = [#tpu.dimension_semantics<parallel>], iteration_bounds = array<i64: 2>, scalar_prefetch = 0 : i64, scratch_operands = 0 : i64, tpu.core_type = #tpu.core_type<tc>, window_params = [{transform_indices = @transform_0, window_bounds = array<i64: 1, 16, 128>}, {pipeline_mode = #tpu.pipeline_mode<synchronous>, transform_indices = @transform_1, window_bounds = array<i64: 3, 3, 3, 1, 128>}, {pipeline_mode = #tpu.pipeline_mode<synchronous>, transform_indices = @transform_2, window_bounds = array<i64: 3, 16, 1>}, {pipeline_mode = #tpu.pipeline_mode<synchronous>, transform_indices = @transform_3, window_bounds = array<i64: 1, 128>}, {transform_indices = @transform_4, window_bounds = array<i64: 1, 16, 128>}]} {
    %c0 = arith.constant 0 : index
    %c0_0 = arith.constant 0 : index
    %c0_1 = arith.constant 0 : index
    %0 = vector.load %arg1[%c0, %c0_0, %c0_1] : memref<1x16x128xf32, #tpu.memory_space<vmem>>, vector<1x16x128xf32>
    %1 = vector.shape_cast %0 : vector<1x16x128xf32> to vector<16x128xf32>
    %c1_i32 = arith.constant 1 : i32
    %2 = tpu.dynamic_rotate %1 by %c1_i32 dim 0 : vector<16x128xf32>, i32 -> vector<16x128xf32>
    %c0_2 = arith.constant 0 : index
    %c0_3 = arith.constant 0 : index
    %c0_4 = arith.constant 0 : index
    %3 = vector.load %arg3[%c0_2, %c0_3, %c0_4] : memref<3x16x1xf32, #tpu.memory_space<vmem>>, vector<1x16x1xf32>
    %4 = vector.shape_cast %3 : vector<1x16x1xf32> to vector<16x1xf32>
    %5 = vector.broadcast %4 : vector<16x1xf32> to vector<16x128xf32>
    %6 = arith.mulf %2, %5 : vector<16x128xf32>
    %c15_i32 = arith.constant 15 : i32
    %7 = tpu.dynamic_rotate %1 by %c15_i32 dim 0 : vector<16x128xf32>, i32 -> vector<16x128xf32>
    %c2 = arith.constant 2 : index
    %c0_5 = arith.constant 0 : index
    %c0_6 = arith.constant 0 : index
    %8 = vector.load %arg3[%c2, %c0_5, %c0_6] : memref<3x16x1xf32, #tpu.memory_space<vmem>>, vector<1x16x1xf32>
    %9 = vector.shape_cast %8 : vector<1x16x1xf32> to vector<16x1xf32>
    %10 = vector.broadcast %9 : vector<16x1xf32> to vector<16x128xf32>
    %11 = arith.mulf %7, %10 : vector<16x128xf32>
    %cst = arith.constant 0.000000e+00 : f32
    %12 = vector.broadcast %cst : f32 to vector<16x128xf32>
    %c40_i32 = arith.constant 40 : i32
    %13 = tpu.dynamic_rotate %6 by %c40_i32 dim 1 : vector<16x128xf32>, i32 -> vector<16x128xf32>
    %c0_7 = arith.constant 0 : index
    %c0_8 = arith.constant 0 : index
    %c0_9 = arith.constant 0 : index
    %c0_10 = arith.constant 0 : index
    %c0_11 = arith.constant 0 : index
    %14 = vector.load %arg2[%c0_7, %c0_8, %c0_9, %c0_10, %c0_11] : memref<3x3x3x1x128xf32, #tpu.memory_space<vmem>>, vector<1x1x1x1x128xf32>
    %15 = vector.shape_cast %14 : vector<1x1x1x1x128xf32> to vector<1x128xf32>
    %16 = vector.broadcast %15 : vector<1x128xf32> to vector<16x128xf32>
    %17 = arith.mulf %13, %16 : vector<16x128xf32>
    %18 = arith.addf %12, %17 : vector<16x128xf32>
    %c40_i32_12 = arith.constant 40 : i32
    %19 = tpu.dynamic_rotate %1 by %c40_i32_12 dim 1 : vector<16x128xf32>, i32 -> vector<16x128xf32>
    %c1 = arith.constant 1 : index
    %c0_13 = arith.constant 0 : index
    %c0_14 = arith.constant 0 : index
    %c0_15 = arith.constant 0 : index
    %c0_16 = arith.constant 0 : index
    %20 = vector.load %arg2[%c1, %c0_13, %c0_14, %c0_15, %c0_16] : memref<3x3x3x1x128xf32, #tpu.memory_space<vmem>>, vector<1x1x1x1x128xf32>
    %21 = vector.shape_cast %20 : vector<1x1x1x1x128xf32> to vector<1x128xf32>
    %22 = vector.broadcast %21 : vector<1x128xf32> to vector<16x128xf32>
    %23 = arith.mulf %19, %22 : vector<16x128xf32>
    %24 = arith.addf %18, %23 : vector<16x128xf32>
    %c40_i32_17 = arith.constant 40 : i32
    %25 = tpu.dynamic_rotate %11 by %c40_i32_17 dim 1 : vector<16x128xf32>, i32 -> vector<16x128xf32>
    %c2_18 = arith.constant 2 : index
    %c0_19 = arith.constant 0 : index
    %c0_20 = arith.constant 0 : index
    %c0_21 = arith.constant 0 : index
    %c0_22 = arith.constant 0 : index
    %26 = vector.load %arg2[%c2_18, %c0_19, %c0_20, %c0_21, %c0_22] : memref<3x3x3x1x128xf32, #tpu.memory_space<vmem>>, vector<1x1x1x1x128xf32>
    %27 = vector.shape_cast %26 : vector<1x1x1x1x128xf32> to vector<1x128xf32>
    %28 = vector.broadcast %27 : vector<1x128xf32> to vector<16x128xf32>
    %29 = arith.mulf %25, %28 : vector<16x128xf32>
    %30 = arith.addf %24, %29 : vector<16x128xf32>
    %c32_i32 = arith.constant 32 : i32
    %31 = tpu.dynamic_rotate %6 by %c32_i32 dim 1 : vector<16x128xf32>, i32 -> vector<16x128xf32>
    %c0_23 = arith.constant 0 : index
    %c0_24 = arith.constant 0 : index
    %c1_25 = arith.constant 1 : index
    %c0_26 = arith.constant 0 : index
    %c0_27 = arith.constant 0 : index
    %32 = vector.load %arg2[%c0_23, %c0_24, %c1_25, %c0_26, %c0_27] : memref<3x3x3x1x128xf32, #tpu.memory_space<vmem>>, vector<1x1x1x1x128xf32>
    %33 = vector.shape_cast %32 : vector<1x1x1x1x128xf32> to vector<1x128xf32>
    %34 = vector.broadcast %33 : vector<1x128xf32> to vector<16x128xf32>
    %35 = arith.mulf %31, %34 : vector<16x128xf32>
    %36 = arith.addf %30, %35 : vector<16x128xf32>
    %c32_i32_28 = arith.constant 32 : i32
    %37 = tpu.dynamic_rotate %1 by %c32_i32_28 dim 1 : vector<16x128xf32>, i32 -> vector<16x128xf32>
    %c1_29 = arith.constant 1 : index
    %c0_30 = arith.constant 0 : index
    %c1_31 = arith.constant 1 : index
    %c0_32 = arith.constant 0 : index
    %c0_33 = arith.constant 0 : index
    %38 = vector.load %arg2[%c1_29, %c0_30, %c1_31, %c0_32, %c0_33] : memref<3x3x3x1x128xf32, #tpu.memory_space<vmem>>, vector<1x1x1x1x128xf32>
    %39 = vector.shape_cast %38 : vector<1x1x1x1x128xf32> to vector<1x128xf32>
    %40 = vector.broadcast %39 : vector<1x128xf32> to vector<16x128xf32>
    %41 = arith.mulf %37, %40 : vector<16x128xf32>
    %42 = arith.addf %36, %41 : vector<16x128xf32>
    %c32_i32_34 = arith.constant 32 : i32
    %43 = tpu.dynamic_rotate %11 by %c32_i32_34 dim 1 : vector<16x128xf32>, i32 -> vector<16x128xf32>
    %c2_35 = arith.constant 2 : index
    %c0_36 = arith.constant 0 : index
    %c1_37 = arith.constant 1 : index
    %c0_38 = arith.constant 0 : index
    %c0_39 = arith.constant 0 : index
    %44 = vector.load %arg2[%c2_35, %c0_36, %c1_37, %c0_38, %c0_39] : memref<3x3x3x1x128xf32, #tpu.memory_space<vmem>>, vector<1x1x1x1x128xf32>
    %45 = vector.shape_cast %44 : vector<1x1x1x1x128xf32> to vector<1x128xf32>
    %46 = vector.broadcast %45 : vector<1x128xf32> to vector<16x128xf32>
    %47 = arith.mulf %43, %46 : vector<16x128xf32>
    %48 = arith.addf %42, %47 : vector<16x128xf32>
    %c24_i32 = arith.constant 24 : i32
    %49 = tpu.dynamic_rotate %6 by %c24_i32 dim 1 : vector<16x128xf32>, i32 -> vector<16x128xf32>
    %c0_40 = arith.constant 0 : index
    %c0_41 = arith.constant 0 : index
    %c2_42 = arith.constant 2 : index
    %c0_43 = arith.constant 0 : index
    %c0_44 = arith.constant 0 : index
    %50 = vector.load %arg2[%c0_40, %c0_41, %c2_42, %c0_43, %c0_44] : memref<3x3x3x1x128xf32, #tpu.memory_space<vmem>>, vector<1x1x1x1x128xf32>
    %51 = vector.shape_cast %50 : vector<1x1x1x1x128xf32> to vector<1x128xf32>
    %52 = vector.broadcast %51 : vector<1x128xf32> to vector<16x128xf32>
    %53 = arith.mulf %49, %52 : vector<16x128xf32>
    %54 = arith.addf %48, %53 : vector<16x128xf32>
    %c24_i32_45 = arith.constant 24 : i32
    %55 = tpu.dynamic_rotate %1 by %c24_i32_45 dim 1 : vector<16x128xf32>, i32 -> vector<16x128xf32>
    %c1_46 = arith.constant 1 : index
    %c0_47 = arith.constant 0 : index
    %c2_48 = arith.constant 2 : index
    %c0_49 = arith.constant 0 : index
    %c0_50 = arith.constant 0 : index
    %56 = vector.load %arg2[%c1_46, %c0_47, %c2_48, %c0_49, %c0_50] : memref<3x3x3x1x128xf32, #tpu.memory_space<vmem>>, vector<1x1x1x1x128xf32>
    %57 = vector.shape_cast %56 : vector<1x1x1x1x128xf32> to vector<1x128xf32>
    %58 = vector.broadcast %57 : vector<1x128xf32> to vector<16x128xf32>
    %59 = arith.mulf %55, %58 : vector<16x128xf32>
    %60 = arith.addf %54, %59 : vector<16x128xf32>
    %c24_i32_51 = arith.constant 24 : i32
    %61 = tpu.dynamic_rotate %11 by %c24_i32_51 dim 1 : vector<16x128xf32>, i32 -> vector<16x128xf32>
    %c2_52 = arith.constant 2 : index
    %c0_53 = arith.constant 0 : index
    %c2_54 = arith.constant 2 : index
    %c0_55 = arith.constant 0 : index
    %c0_56 = arith.constant 0 : index
    %62 = vector.load %arg2[%c2_52, %c0_53, %c2_54, %c0_55, %c0_56] : memref<3x3x3x1x128xf32, #tpu.memory_space<vmem>>, vector<1x1x1x1x128xf32>
    %63 = vector.shape_cast %62 : vector<1x1x1x1x128xf32> to vector<1x128xf32>
    %64 = vector.broadcast %63 : vector<1x128xf32> to vector<16x128xf32>
    %65 = arith.mulf %61, %64 : vector<16x128xf32>
    %66 = arith.addf %60, %65 : vector<16x128xf32>
    %c8_i32 = arith.constant 8 : i32
    %67 = tpu.dynamic_rotate %6 by %c8_i32 dim 1 : vector<16x128xf32>, i32 -> vector<16x128xf32>
    %c0_57 = arith.constant 0 : index
    %c1_58 = arith.constant 1 : index
    %c0_59 = arith.constant 0 : index
    %c0_60 = arith.constant 0 : index
    %c0_61 = arith.constant 0 : index
    %68 = vector.load %arg2[%c0_57, %c1_58, %c0_59, %c0_60, %c0_61] : memref<3x3x3x1x128xf32, #tpu.memory_space<vmem>>, vector<1x1x1x1x128xf32>
    %69 = vector.shape_cast %68 : vector<1x1x1x1x128xf32> to vector<1x128xf32>
    %70 = vector.broadcast %69 : vector<1x128xf32> to vector<16x128xf32>
    %71 = arith.mulf %67, %70 : vector<16x128xf32>
    %72 = arith.addf %66, %71 : vector<16x128xf32>
    %c8_i32_62 = arith.constant 8 : i32
    %73 = tpu.dynamic_rotate %1 by %c8_i32_62 dim 1 : vector<16x128xf32>, i32 -> vector<16x128xf32>
    %c1_63 = arith.constant 1 : index
    %c1_64 = arith.constant 1 : index
    %c0_65 = arith.constant 0 : index
    %c0_66 = arith.constant 0 : index
    %c0_67 = arith.constant 0 : index
    %74 = vector.load %arg2[%c1_63, %c1_64, %c0_65, %c0_66, %c0_67] : memref<3x3x3x1x128xf32, #tpu.memory_space<vmem>>, vector<1x1x1x1x128xf32>
    %75 = vector.shape_cast %74 : vector<1x1x1x1x128xf32> to vector<1x128xf32>
    %76 = vector.broadcast %75 : vector<1x128xf32> to vector<16x128xf32>
    %77 = arith.mulf %73, %76 : vector<16x128xf32>
    %78 = arith.addf %72, %77 : vector<16x128xf32>
    %c8_i32_68 = arith.constant 8 : i32
    %79 = tpu.dynamic_rotate %11 by %c8_i32_68 dim 1 : vector<16x128xf32>, i32 -> vector<16x128xf32>
    %c2_69 = arith.constant 2 : index
    %c1_70 = arith.constant 1 : index
    %c0_71 = arith.constant 0 : index
    %c0_72 = arith.constant 0 : index
    %c0_73 = arith.constant 0 : index
    %80 = vector.load %arg2[%c2_69, %c1_70, %c0_71, %c0_72, %c0_73] : memref<3x3x3x1x128xf32, #tpu.memory_space<vmem>>, vector<1x1x1x1x128xf32>
    %81 = vector.shape_cast %80 : vector<1x1x1x1x128xf32> to vector<1x128xf32>
    %82 = vector.broadcast %81 : vector<1x128xf32> to vector<16x128xf32>
    %83 = arith.mulf %79, %82 : vector<16x128xf32>
    %84 = arith.addf %78, %83 : vector<16x128xf32>
    %c0_74 = arith.constant 0 : index
    %c1_75 = arith.constant 1 : index
    %c1_76 = arith.constant 1 : index
    %c0_77 = arith.constant 0 : index
    %c0_78 = arith.constant 0 : index
    %85 = vector.load %arg2[%c0_74, %c1_75, %c1_76, %c0_77, %c0_78] : memref<3x3x3x1x128xf32, #tpu.memory_space<vmem>>, vector<1x1x1x1x128xf32>
    %86 = vector.shape_cast %85 : vector<1x1x1x1x128xf32> to vector<1x128xf32>
    %87 = vector.broadcast %86 : vector<1x128xf32> to vector<16x128xf32>
    %88 = arith.mulf %6, %87 : vector<16x128xf32>
    %89 = arith.addf %84, %88 : vector<16x128xf32>
    %c1_79 = arith.constant 1 : index
    %c1_80 = arith.constant 1 : index
    %c1_81 = arith.constant 1 : index
    %c0_82 = arith.constant 0 : index
    %c0_83 = arith.constant 0 : index
    %90 = vector.load %arg2[%c1_79, %c1_80, %c1_81, %c0_82, %c0_83] : memref<3x3x3x1x128xf32, #tpu.memory_space<vmem>>, vector<1x1x1x1x128xf32>
    %91 = vector.shape_cast %90 : vector<1x1x1x1x128xf32> to vector<1x128xf32>
    %92 = vector.broadcast %91 : vector<1x128xf32> to vector<16x128xf32>
    %93 = arith.mulf %1, %92 : vector<16x128xf32>
    %94 = arith.addf %89, %93 : vector<16x128xf32>
    %c2_84 = arith.constant 2 : index
    %c1_85 = arith.constant 1 : index
    %c1_86 = arith.constant 1 : index
    %c0_87 = arith.constant 0 : index
    %c0_88 = arith.constant 0 : index
    %95 = vector.load %arg2[%c2_84, %c1_85, %c1_86, %c0_87, %c0_88] : memref<3x3x3x1x128xf32, #tpu.memory_space<vmem>>, vector<1x1x1x1x128xf32>
    %96 = vector.shape_cast %95 : vector<1x1x1x1x128xf32> to vector<1x128xf32>
    %97 = vector.broadcast %96 : vector<1x128xf32> to vector<16x128xf32>
    %98 = arith.mulf %11, %97 : vector<16x128xf32>
    %99 = arith.addf %94, %98 : vector<16x128xf32>
    %c120_i32 = arith.constant 120 : i32
    %100 = tpu.dynamic_rotate %6 by %c120_i32 dim 1 : vector<16x128xf32>, i32 -> vector<16x128xf32>
    %c0_89 = arith.constant 0 : index
    %c1_90 = arith.constant 1 : index
    %c2_91 = arith.constant 2 : index
    %c0_92 = arith.constant 0 : index
    %c0_93 = arith.constant 0 : index
    %101 = vector.load %arg2[%c0_89, %c1_90, %c2_91, %c0_92, %c0_93] : memref<3x3x3x1x128xf32, #tpu.memory_space<vmem>>, vector<1x1x1x1x128xf32>
    %102 = vector.shape_cast %101 : vector<1x1x1x1x128xf32> to vector<1x128xf32>
    %103 = vector.broadcast %102 : vector<1x128xf32> to vector<16x128xf32>
    %104 = arith.mulf %100, %103 : vector<16x128xf32>
    %105 = arith.addf %99, %104 : vector<16x128xf32>
    %c120_i32_94 = arith.constant 120 : i32
    %106 = tpu.dynamic_rotate %1 by %c120_i32_94 dim 1 : vector<16x128xf32>, i32 -> vector<16x128xf32>
    %c1_95 = arith.constant 1 : index
    %c1_96 = arith.constant 1 : index
    %c2_97 = arith.constant 2 : index
    %c0_98 = arith.constant 0 : index
    %c0_99 = arith.constant 0 : index
    %107 = vector.load %arg2[%c1_95, %c1_96, %c2_97, %c0_98, %c0_99] : memref<3x3x3x1x128xf32, #tpu.memory_space<vmem>>, vector<1x1x1x1x128xf32>
    %108 = vector.shape_cast %107 : vector<1x1x1x1x128xf32> to vector<1x128xf32>
    %109 = vector.broadcast %108 : vector<1x128xf32> to vector<16x128xf32>
    %110 = arith.mulf %106, %109 : vector<16x128xf32>
    %111 = arith.addf %105, %110 : vector<16x128xf32>
    %c120_i32_100 = arith.constant 120 : i32
    %112 = tpu.dynamic_rotate %11 by %c120_i32_100 dim 1 : vector<16x128xf32>, i32 -> vector<16x128xf32>
    %c2_101 = arith.constant 2 : index
    %c1_102 = arith.constant 1 : index
    %c2_103 = arith.constant 2 : index
    %c0_104 = arith.constant 0 : index
    %c0_105 = arith.constant 0 : index
    %113 = vector.load %arg2[%c2_101, %c1_102, %c2_103, %c0_104, %c0_105] : memref<3x3x3x1x128xf32, #tpu.memory_space<vmem>>, vector<1x1x1x1x128xf32>
    %114 = vector.shape_cast %113 : vector<1x1x1x1x128xf32> to vector<1x128xf32>
    %115 = vector.broadcast %114 : vector<1x128xf32> to vector<16x128xf32>
    %116 = arith.mulf %112, %115 : vector<16x128xf32>
    %117 = arith.addf %111, %116 : vector<16x128xf32>
    %c104_i32 = arith.constant 104 : i32
    %118 = tpu.dynamic_rotate %6 by %c104_i32 dim 1 : vector<16x128xf32>, i32 -> vector<16x128xf32>
    %c0_106 = arith.constant 0 : index
    %c2_107 = arith.constant 2 : index
    %c0_108 = arith.constant 0 : index
    %c0_109 = arith.constant 0 : index
    %c0_110 = arith.constant 0 : index
    %119 = vector.load %arg2[%c0_106, %c2_107, %c0_108, %c0_109, %c0_110] : memref<3x3x3x1x128xf32, #tpu.memory_space<vmem>>, vector<1x1x1x1x128xf32>
    %120 = vector.shape_cast %119 : vector<1x1x1x1x128xf32> to vector<1x128xf32>
    %121 = vector.broadcast %120 : vector<1x128xf32> to vector<16x128xf32>
    %122 = arith.mulf %118, %121 : vector<16x128xf32>
    %123 = arith.addf %117, %122 : vector<16x128xf32>
    %c104_i32_111 = arith.constant 104 : i32
    %124 = tpu.dynamic_rotate %1 by %c104_i32_111 dim 1 : vector<16x128xf32>, i32 -> vector<16x128xf32>
    %c1_112 = arith.constant 1 : index
    %c2_113 = arith.constant 2 : index
    %c0_114 = arith.constant 0 : index
    %c0_115 = arith.constant 0 : index
    %c0_116 = arith.constant 0 : index
    %125 = vector.load %arg2[%c1_112, %c2_113, %c0_114, %c0_115, %c0_116] : memref<3x3x3x1x128xf32, #tpu.memory_space<vmem>>, vector<1x1x1x1x128xf32>
    %126 = vector.shape_cast %125 : vector<1x1x1x1x128xf32> to vector<1x128xf32>
    %127 = vector.broadcast %126 : vector<1x128xf32> to vector<16x128xf32>
    %128 = arith.mulf %124, %127 : vector<16x128xf32>
    %129 = arith.addf %123, %128 : vector<16x128xf32>
    %c104_i32_117 = arith.constant 104 : i32
    %130 = tpu.dynamic_rotate %11 by %c104_i32_117 dim 1 : vector<16x128xf32>, i32 -> vector<16x128xf32>
    %c2_118 = arith.constant 2 : index
    %c2_119 = arith.constant 2 : index
    %c0_120 = arith.constant 0 : index
    %c0_121 = arith.constant 0 : index
    %c0_122 = arith.constant 0 : index
    %131 = vector.load %arg2[%c2_118, %c2_119, %c0_120, %c0_121, %c0_122] : memref<3x3x3x1x128xf32, #tpu.memory_space<vmem>>, vector<1x1x1x1x128xf32>
    %132 = vector.shape_cast %131 : vector<1x1x1x1x128xf32> to vector<1x128xf32>
    %133 = vector.broadcast %132 : vector<1x128xf32> to vector<16x128xf32>
    %134 = arith.mulf %130, %133 : vector<16x128xf32>
    %135 = arith.addf %129, %134 : vector<16x128xf32>
    %c96_i32 = arith.constant 96 : i32
    %136 = tpu.dynamic_rotate %6 by %c96_i32 dim 1 : vector<16x128xf32>, i32 -> vector<16x128xf32>
    %c0_123 = arith.constant 0 : index
    %c2_124 = arith.constant 2 : index
    %c1_125 = arith.constant 1 : index
    %c0_126 = arith.constant 0 : index
    %c0_127 = arith.constant 0 : index
    %137 = vector.load %arg2[%c0_123, %c2_124, %c1_125, %c0_126, %c0_127] : memref<3x3x3x1x128xf32, #tpu.memory_space<vmem>>, vector<1x1x1x1x128xf32>
    %138 = vector.shape_cast %137 : vector<1x1x1x1x128xf32> to vector<1x128xf32>
    %139 = vector.broadcast %138 : vector<1x128xf32> to vector<16x128xf32>
    %140 = arith.mulf %136, %139 : vector<16x128xf32>
    %141 = arith.addf %135, %140 : vector<16x128xf32>
    %c96_i32_128 = arith.constant 96 : i32
    %142 = tpu.dynamic_rotate %1 by %c96_i32_128 dim 1 : vector<16x128xf32>, i32 -> vector<16x128xf32>
    %c1_129 = arith.constant 1 : index
    %c2_130 = arith.constant 2 : index
    %c1_131 = arith.constant 1 : index
    %c0_132 = arith.constant 0 : index
    %c0_133 = arith.constant 0 : index
    %143 = vector.load %arg2[%c1_129, %c2_130, %c1_131, %c0_132, %c0_133] : memref<3x3x3x1x128xf32, #tpu.memory_space<vmem>>, vector<1x1x1x1x128xf32>
    %144 = vector.shape_cast %143 : vector<1x1x1x1x128xf32> to vector<1x128xf32>
    %145 = vector.broadcast %144 : vector<1x128xf32> to vector<16x128xf32>
    %146 = arith.mulf %142, %145 : vector<16x128xf32>
    %147 = arith.addf %141, %146 : vector<16x128xf32>
    %c96_i32_134 = arith.constant 96 : i32
    %148 = tpu.dynamic_rotate %11 by %c96_i32_134 dim 1 : vector<16x128xf32>, i32 -> vector<16x128xf32>
    %c2_135 = arith.constant 2 : index
    %c2_136 = arith.constant 2 : index
    %c1_137 = arith.constant 1 : index
    %c0_138 = arith.constant 0 : index
    %c0_139 = arith.constant 0 : index
    %149 = vector.load %arg2[%c2_135, %c2_136, %c1_137, %c0_138, %c0_139] : memref<3x3x3x1x128xf32, #tpu.memory_space<vmem>>, vector<1x1x1x1x128xf32>
    %150 = vector.shape_cast %149 : vector<1x1x1x1x128xf32> to vector<1x128xf32>
    %151 = vector.broadcast %150 : vector<1x128xf32> to vector<16x128xf32>
    %152 = arith.mulf %148, %151 : vector<16x128xf32>
    %153 = arith.addf %147, %152 : vector<16x128xf32>
    %c88_i32 = arith.constant 88 : i32
    %154 = tpu.dynamic_rotate %6 by %c88_i32 dim 1 : vector<16x128xf32>, i32 -> vector<16x128xf32>
    %c0_140 = arith.constant 0 : index
    %c2_141 = arith.constant 2 : index
    %c2_142 = arith.constant 2 : index
    %c0_143 = arith.constant 0 : index
    %c0_144 = arith.constant 0 : index
    %155 = vector.load %arg2[%c0_140, %c2_141, %c2_142, %c0_143, %c0_144] : memref<3x3x3x1x128xf32, #tpu.memory_space<vmem>>, vector<1x1x1x1x128xf32>
    %156 = vector.shape_cast %155 : vector<1x1x1x1x128xf32> to vector<1x128xf32>
    %157 = vector.broadcast %156 : vector<1x128xf32> to vector<16x128xf32>
    %158 = arith.mulf %154, %157 : vector<16x128xf32>
    %159 = arith.addf %153, %158 : vector<16x128xf32>
    %c88_i32_145 = arith.constant 88 : i32
    %160 = tpu.dynamic_rotate %1 by %c88_i32_145 dim 1 : vector<16x128xf32>, i32 -> vector<16x128xf32>
    %c1_146 = arith.constant 1 : index
    %c2_147 = arith.constant 2 : index
    %c2_148 = arith.constant 2 : index
    %c0_149 = arith.constant 0 : index
    %c0_150 = arith.constant 0 : index
    %161 = vector.load %arg2[%c1_146, %c2_147, %c2_148, %c0_149, %c0_150] : memref<3x3x3x1x128xf32, #tpu.memory_space<vmem>>, vector<1x1x1x1x128xf32>
    %162 = vector.shape_cast %161 : vector<1x1x1x1x128xf32> to vector<1x128xf32>
    %163 = vector.broadcast %162 : vector<1x128xf32> to vector<16x128xf32>
    %164 = arith.mulf %160, %163 : vector<16x128xf32>
    %165 = arith.addf %159, %164 : vector<16x128xf32>
    %c88_i32_151 = arith.constant 88 : i32
    %166 = tpu.dynamic_rotate %11 by %c88_i32_151 dim 1 : vector<16x128xf32>, i32 -> vector<16x128xf32>
    %c2_152 = arith.constant 2 : index
    %c2_153 = arith.constant 2 : index
    %c2_154 = arith.constant 2 : index
    %c0_155 = arith.constant 0 : index
    %c0_156 = arith.constant 0 : index
    %167 = vector.load %arg2[%c2_152, %c2_153, %c2_154, %c0_155, %c0_156] : memref<3x3x3x1x128xf32, #tpu.memory_space<vmem>>, vector<1x1x1x1x128xf32>
    %168 = vector.shape_cast %167 : vector<1x1x1x1x128xf32> to vector<1x128xf32>
    %169 = vector.broadcast %168 : vector<1x128xf32> to vector<16x128xf32>
    %170 = arith.mulf %166, %169 : vector<16x128xf32>
    %171 = arith.addf %165, %170 : vector<16x128xf32>
    %c0_157 = arith.constant 0 : index
    %c0_158 = arith.constant 0 : index
    %172 = vector.load %arg4[%c0_157, %c0_158] : memref<1x128xf32, #tpu.memory_space<vmem>>, vector<1x128xf32>
    %173 = vector.broadcast %172 : vector<1x128xf32> to vector<16x128xf32>
    %174 = arith.addf %171, %173 : vector<16x128xf32>
    %c0_159 = arith.constant 0 : index
    %c0_160 = arith.constant 0 : index
    %c0_161 = arith.constant 0 : index
    %175 = vector.load %arg5[%c0_159, %c0_160, %c0_161] : memref<1x16x128xf32, #tpu.memory_space<vmem>>, vector<1x16x128xf32>
    %176 = vector.shape_cast %175 : vector<1x16x128xf32> to vector<16x128xf32>
    %177 = vector.shape_cast %174 : vector<16x128xf32> to vector<1x16x128xf32>
    tpu.vector_store %arg5[%c0_159, %c0_160, %c0_161], %177 {strides = array<i32>} : memref<1x16x128xf32, #tpu.memory_space<vmem>>, vector<1x16x128xf32>,
    return
  }
  func.func @transform_0(%arg0: i32) -> (i32, i32, i32) {
    %c0_i32 = arith.constant 0 : i32
    %c0_i32_0 = arith.constant 0 : i32
    %c0_i32_1 = arith.constant 0 : i32
    return %arg0, %c0_i32, %c0_i32_0 : i32, i32, i32
  }
  func.func @transform_1(%arg0: i32) -> (i32, i32, i32, i32, i32) {
    %c0_i32 = arith.constant 0 : i32
    %c0_i32_0 = arith.constant 0 : i32
    %c0_i32_1 = arith.constant 0 : i32
    %c0_i32_2 = arith.constant 0 : i32
    %c0_i32_3 = arith.constant 0 : i32
    %c0_i32_4 = arith.constant 0 : i32
    return %c0_i32, %c0_i32_0, %c0_i32_1, %c0_i32_2, %c0_i32_3 : i32, i32, i32, i32, i32
  }
  func.func @transform_2(%arg0: i32) -> (i32, i32, i32) {
    %c0_i32 = arith.constant 0 : i32
    %c0_i32_0 = arith.constant 0 : i32
    %c0_i32_1 = arith.constant 0 : i32
    %c0_i32_2 = arith.constant 0 : i32
    return %c0_i32, %c0_i32_0, %c0_i32_1 : i32, i32, i32
  }
  func.func @transform_3(%arg0: i32) -> (i32, i32) {
    %c0_i32 = arith.constant 0 : i32
    %c0_i32_0 = arith.constant 0 : i32
    %c0_i32_1 = arith.constant 0 : i32
    return %c0_i32, %c0_i32_0 : i32, i32
  }
  func.func @transform_4(%arg0: i32) -> (i32, i32, i32) {
    %c0_i32 = arith.constant 0 : i32
    %c0_i32_0 = arith.constant 0 : i32
    %c0_i32_1 = arith.constant 0 : i32
    return %arg0, %c0_i32, %c0_i32_0 : i32, i32, i32
  }
}

module attributes {stable_mosaic.version = 11 : i64} {
  func.func @kernel(%arg0: i32, %arg1: memref<1x256x8xf32, #tpu.memory_space<vmem>>, %arg2: memref<16x16xf32, #tpu.memory_space<vmem>>, %arg3: memref<1x16xf32, #tpu.memory_space<vmem>>, %arg4: memref<8x32xf32, #tpu.memory_space<vmem>>, %arg5: memref<1x32xf32, #tpu.memory_space<vmem>>, %arg6: memref<16x17x32xf32, #tpu.memory_space<vmem>>, %arg7: memref<16x17x32xf32, #tpu.memory_space<vmem>>) attributes {dimension_semantics = [#tpu.dimension_semantics<parallel>], iteration_bounds = array<i64: 2>, scalar_prefetch = 0 : i64, scratch_operands = 0 : i64, tpu.core_type = #tpu.core_type<tc>, window_params = [{transform_indices = @transform_0, window_bounds = array<i64: 1, 256, 8>}, {pipeline_mode = #tpu.pipeline_mode<synchronous>, transform_indices = @transform_1, window_bounds = array<i64: 16, 16>}, {pipeline_mode = #tpu.pipeline_mode<synchronous>, transform_indices = @transform_2, window_bounds = array<i64: 1, 16>}, {pipeline_mode = #tpu.pipeline_mode<synchronous>, transform_indices = @transform_3, window_bounds = array<i64: 8, 32>}, {pipeline_mode = #tpu.pipeline_mode<synchronous>, transform_indices = @transform_4, window_bounds = array<i64: 1, 32>}, {transform_indices = @transform_5, window_bounds = array<i64: 16, 17, 32>}, {transform_indices = @transform_6, window_bounds = array<i64: 16, 17, 32>}]} {
    %c0 = arith.constant 0 : index
    %c0_0 = arith.constant 0 : index
    %c0_1 = arith.constant 0 : index
    %0 = vector.load %arg1[%c0, %c0_0, %c0_1] : memref<1x256x8xf32, #tpu.memory_space<vmem>>, vector<1x256x8xf32>
    %1 = vector.shape_cast %0 : vector<1x256x8xf32> to vector<256x8xf32>
    %2 = vector.shape_cast %1 : vector<256x8xf32> to vector<16x16x8xf32>
    %cst = arith.constant dense<0.000000e+00> : vector<16x16xf32>
    %3 = vector.multi_reduction <add>, %2, %cst [2] : vector<16x16x8xf32> to vector<16x16xf32>
    %cst_2 = arith.constant dense<0.000000e+00> : vector<16xf32>
    %4 = vector.multi_reduction <add>, %3, %cst_2 [1] : vector<16x16xf32> to vector<16xf32>
    %5 = vector.shape_cast %4 : vector<16xf32> to vector<16x1xf32>
    %cst_3 = arith.constant 7.812500e-03 : f32
    %6 = vector.broadcast %cst_3 : f32 to vector<16x1xf32>
    %7 = arith.mulf %5, %6 : vector<16x1xf32>
    %c0_4 = arith.constant 0 : index
    %c0_5 = arith.constant 0 : index
    %8 = vector.load %arg2[%c0_4, %c0_5] : memref<16x16xf32, #tpu.memory_space<vmem>>, vector<16x16xf32>
    %9 = vector.broadcast %7 : vector<16x1xf32> to vector<16x16xf32>
    %10 = arith.mulf %8, %9 : vector<16x16xf32>
    %cst_6 = arith.constant dense<0.000000e+00> : vector<16xf32>
    %11 = vector.multi_reduction <add>, %10, %cst_6 [0] : vector<16x16xf32> to vector<16xf32>
    %12 = vector.shape_cast %11 : vector<16xf32> to vector<1x16xf32>
    %c0_7 = arith.constant 0 : index
    %c0_8 = arith.constant 0 : index
    %13 = vector.load %arg3[%c0_7, %c0_8] : memref<1x16xf32, #tpu.memory_space<vmem>>, vector<1x16xf32>
    %14 = arith.addf %12, %13 : vector<1x16xf32>
    %cst_9 = arith.constant dense<0xFF800000> : vector<1xf32>
    %15 = vector.multi_reduction <maximumf>, %14, %cst_9 [1] : vector<1x16xf32> to vector<1xf32>
    %16 = vector.shape_cast %15 : vector<1xf32> to vector<1x1xf32>
    %17 = vector.broadcast %16 : vector<1x1xf32> to vector<1x16xf32>
    %18 = arith.subf %14, %17 : vector<1x16xf32>
    %19 = math.exp %18 : vector<1x16xf32>
    %cst_10 = arith.constant dense<0.000000e+00> : vector<1xf32>
    %20 = vector.multi_reduction <add>, %19, %cst_10 [1] : vector<1x16xf32> to vector<1xf32>
    %21 = vector.shape_cast %20 : vector<1xf32> to vector<1x1xf32>
    %22 = vector.broadcast %21 : vector<1x1xf32> to vector<1x16xf32>
    %23 = arith.divf %19, %22 : vector<1x16xf32>
    %24 = tpu.iota {dimensions = array<i32: 0>} : vector<16x16xi32>
    %25 = tpu.iota {dimensions = array<i32: 1>} : vector<16x16xi32>
    %26 = arith.cmpi eq, %24, %25 : vector<16x16xi32>
    %27 = arith.extui %26 : vector<16x16xi1> to vector<16x16xi32>
    %28 = arith.sitofp %27 : vector<16x16xi32> to vector<16x16xf32>
    %29 = vector.broadcast %23 : vector<1x16xf32> to vector<16x16xf32>
    %30 = arith.mulf %29, %28 : vector<16x16xf32>
    %cst_11 = arith.constant dense<0.000000e+00> : vector<16xf32>
    %31 = vector.multi_reduction <add>, %30, %cst_11 [1] : vector<16x16xf32> to vector<16xf32>
    %32 = vector.shape_cast %31 : vector<16xf32> to vector<16x1xf32>
    %33 = vector.shape_cast %32 : vector<16x1xf32> to vector<16x1x1xf32>
    %34 = vector.broadcast %33 : vector<16x1x1xf32> to vector<16x16x8xf32>
    %35 = arith.mulf %2, %34 : vector<16x16x8xf32>
    %36 = vector.shape_cast %35 : vector<16x16x8xf32> to vector<256x8xf32>
    %c0_12 = arith.constant 0 : index
    %c0_13 = arith.constant 0 : index
    %37 = vector.load %arg4[%c0_12, %c0_13] : memref<8x32xf32, #tpu.memory_space<vmem>>, vector<8x32xf32>
    %cst_14 = arith.constant dense<0.000000e+00> : vector<256x32xf32>
    %38 = tpu.matmul %36, %37, %cst_14 {dimension_numbers = #tpu.dot_dimension_numbers<[1], [0], [0], [1], [0, 0, 1, 1], [], []>} : vector<256x8xf32>, vector<8x32xf32>, vector<256x32xf32> -> vector<256x32xf32>
    %39 = vector.shape_cast %38 : vector<256x32xf32> to vector<16x16x32xf32>
    %c0_15 = arith.constant 0 : index
    %c0_16 = arith.constant 0 : index
    %40 = vector.load %arg5[%c0_15, %c0_16] : memref<1x32xf32, #tpu.memory_space<vmem>>, vector<1x32xf32>
    %41 = vector.shape_cast %40 : vector<1x32xf32> to vector<1x1x32xf32>
    %42 = vector.broadcast %41 : vector<1x1x32xf32> to vector<16x16x32xf32>
    %43 = arith.addf %39, %42 : vector<16x16x32xf32>
    %c0_17 = arith.constant 0 : index
    %c0_18 = arith.constant 0 : index
    %c0_19 = arith.constant 0 : index
    %44 = vector.load %arg6[%c0_17, %c0_18, %c0_19] : memref<16x17x32xf32, #tpu.memory_space<vmem>>, vector<16x1x32xf32>
    %c0_20 = arith.constant 0 : index
    %c0_21 = arith.constant 0 : index
    %c0_22 = arith.constant 0 : index
    %45 = vector.load %arg7[%c0_20, %c0_21, %c0_22] : memref<16x17x32xf32, #tpu.memory_space<vmem>>, vector<16x1x32xf32>
    tpu.vector_store %arg7[%c0_20, %c0_21, %c0_22], %44 {strides = array<i32>} : memref<16x17x32xf32, #tpu.memory_space<vmem>>, vector<16x1x32xf32>,
    %c0_23 = arith.constant 0 : index
    %c1 = arith.constant 1 : index
    %c0_24 = arith.constant 0 : index
    %46 = vector.load %arg6[%c0_23, %c1, %c0_24] : memref<16x17x32xf32, #tpu.memory_space<vmem>>, vector<16x16x32xf32>
    %47 = arith.addf %46, %43 : vector<16x16x32xf32>
    %c0_25 = arith.constant 0 : index
    %c1_26 = arith.constant 1 : index
    %c0_27 = arith.constant 0 : index
    %48 = vector.load %arg7[%c0_25, %c1_26, %c0_27] : memref<16x17x32xf32, #tpu.memory_space<vmem>>, vector<16x16x32xf32>
    tpu.vector_store %arg7[%c0_25, %c1_26, %c0_27], %47 {strides = array<i32>} : memref<16x17x32xf32, #tpu.memory_space<vmem>>, vector<16x16x32xf32>,
    return
  }
  func.func @transform_0(%arg0: i32) -> (i32, i32, i32) {
    %c0_i32 = arith.constant 0 : i32
    %c0_i32_0 = arith.constant 0 : i32
    %c0_i32_1 = arith.constant 0 : i32
    return %arg0, %c0_i32, %c0_i32_0 : i32, i32, i32
  }
  func.func @transform_1(%arg0: i32) -> (i32, i32) {
    %c0_i32 = arith.constant 0 : i32
    %c0_i32_0 = arith.constant 0 : i32
    %c0_i32_1 = arith.constant 0 : i32
    return %c0_i32, %c0_i32_0 : i32, i32
  }
  func.func @transform_2(%arg0: i32) -> (i32, i32) {
    %c0_i32 = arith.constant 0 : i32
    %c0_i32_0 = arith.constant 0 : i32
    %c0_i32_1 = arith.constant 0 : i32
    return %c0_i32, %c0_i32_0 : i32, i32
  }
  func.func @transform_3(%arg0: i32) -> (i32, i32) {
    %c0_i32 = arith.constant 0 : i32
    %c0_i32_0 = arith.constant 0 : i32
    %c0_i32_1 = arith.constant 0 : i32
    return %c0_i32, %c0_i32_0 : i32, i32
  }
  func.func @transform_4(%arg0: i32) -> (i32, i32) {
    %c0_i32 = arith.constant 0 : i32
    %c0_i32_0 = arith.constant 0 : i32
    %c0_i32_1 = arith.constant 0 : i32
    return %c0_i32, %c0_i32_0 : i32, i32
  }
  func.func @transform_5(%arg0: i32) -> (i32, i32, i32) {
    %c0_i32 = arith.constant 0 : i32
    %c0_i32_0 = arith.constant 0 : i32
    %c0_i32_1 = arith.constant 0 : i32
    return %arg0, %c0_i32, %c0_i32_0 : i32, i32, i32
  }
  func.func @transform_6(%arg0: i32) -> (i32, i32, i32) {
    %c0_i32 = arith.constant 0 : i32
    %c0_i32_0 = arith.constant 0 : i32
    %c0_i32_1 = arith.constant 0 : i32
    return %arg0, %c0_i32, %c0_i32_0 : i32, i32, i32
  }
}

</mosaic_0001>

<bundles_post_ra>
// kernel: tse_adapter_forward.4
= control target key start
LH: loop header
LB: loop body
LE: loop exit
PB: predicated region body
PF: predicated region fallthrough
CT: control target
= control target key end

     0   :  { %s856_s15 = smov 0   ;;  %s1124_s0 = inlined_call_operand.vmem [shape: f32[2,16,128], index: 0, kind: input, shape index: {}]   ;;  %s1125_s1 = inlined_call_operand.vmem [shape: f32[3,3,3,1,128], index: 1, kind: input, shape index: {}]   ;;  %s1126_s2 = inlined_call_operand.vmem [shape: f32[3,16,1], index: 2, kind: input, shape index: {}]   ;;  %s1127_s3 = inlined_call_operand.vmem [shape: f32[1,128], index: 3, kind: input, shape index: {}]   ;;  %s1128_s4 = inlined_call_operand.vmem [shape: f32[2,16,128], index: 4, kind: output, shape index: {}]  }
   0x1 LB: > { %s726_s16 = sadd.s32 4294967295, %s820_s15   ;;  %p730_p0 = scmp.ge.s32.totalorder %s820_s15, 1  ;;  %s820_s15 = sphi %s856_s15, %s14_s15  }
   0x2   : > { %p162_p1 = scmp.lt.s32.totalorder %s820_s15, 3 }
   0x4   : > { %p163_p2 = pnand %p730_p0, %p162_p1 }
   0x5   : > { %p188_p3 = scmp.lt.s32.totalorder (!%p163_p2), %s726_s16, 1  ;;  %s823_s29 = smov (!%p163_p2), 40  }
   0x6   : > { %166 = sbr.rel (%p163_p2) target bundleno = 325 (0x145), region = 36  ;;  %s824_s30 = smov (!%p163_p2), 32  }
   0x7   : > { %s825_s5 = smov (!%p163_p2), 24   ;;  %s826_s6 = smov (!%p163_p2), 8  }
   0x8   : > { %s827_s7 = smov (!%p163_p2), 120   ;;  %s828_s8 = smov (!%p163_p2), 104  }
   0x9   : > { %s829_s9 = smov (!%p163_p2), 96   ;;  %s830_s10 = smov (!%p163_p2), 88  }
   0xb   : > { %v735_v0 = vld [vmem:[%s1126_s2 + $0x20] sm:$0xff]  ;;  %v822_v2 = vmov 0   ;;  %s1130_s16 = smov (!%p188_p3, %s726_s16), 1  ;;  %v736_v3 = vld [vmem:[%s1126_s2 + $0x28] sm:$0xff]  ;;  %v202_v7 = vlaneseq  ;;  %v741_v44 = vld [vmem:[%s1125_s1 + $0x12] ss:$0 sm:$0xff] }
   0xc   : > { %v207_v1 = vld [vmem:[%s1126_s2] sm:$0xff]  ;;  %813 = vset.pattern.permute.xlu1 %v822_v2  ;;  %812 = vset.pattern.permute.xlu0 %v822_v2  ;;  %v208_v4 = vld [vmem:[%s1126_s2 + $0x8] sm:$0xff]  ;;  %s793_s25 = sshll.u32 %s1130_s16, 4  ;;  %v747_v60 = vld [vmem:[%s1125_s1 + $0x13] ss:$0 sm:$0xff] }
   0xd   : > { %231 = vperm.xlu1 %813, %v735_v0   ;;  %211 = vperm.xlu0 %812, %v207_v1   ;;  %s192_s28 = scalar_lea.vmem %s1124_s0, %s793_s25  ;;  %v203_v8 = vshrl.u32 %v202_v7, 7  ;;  %v737_v41 = vld [vmem:[%s1125_s1] ss:$0 sm:$0xff]  ;;  %v739_v43 = vld [vmem:[%s1125_s1 + $0x9] ss:$0 sm:$0xff]  ;;  %s197_s26 = scalar_lea.vmem %s1128_s4, %s793_s25 }
   0xe   : > { %v884_v5 = vld [vmem:[%s192_s28] sm:$0xff]  ;;  %v886_v6 = vld [vmem:[%s192_s28 + $0x8] sm:$0xff] }
   0xf   : > { %v200_v9 = vrot.slane %v884_v5, 7  ;;  %v201_v10 = vrot.slane %v886_v6, 7  ;;  %vm204_vm0 = vcmp.lt.s32.totalorder %v203_v8, 1  ;;  %v221_v11 = vrot.slane %v884_v5, 1  ;;  %v743_v50 = vld [vmem:[%s1125_s1 + $0x1] ss:$0 sm:$0xff] }
  0x10   : > { %v222_v12 = vrot.slane %v886_v6, 1  ;;  %vm223_vm1 = vcmp.lt.s32.totalorder %v203_v8, 7  ;;  %v745_v53 = vld [vmem:[%s1125_s1 + $0xa] ss:$0 sm:$0xff]  ;;  %v749_v8 = vld [vmem:[%s1125_s1 + $0x2] ss:$0 sm:$0xff] }
  0x11   : > { %236 = vperm.xlu1 %813, %v736_v3   ;;  %216 = vperm.xlu0 %812, %v208_v4   ;;  %v206_v13 = vsel %vm204_vm0, %v201_v10, %v200_v9  ;;  %v205_v18 = vsel %vm204_vm0, %v200_v9, %v201_v10 }
  0x12   : > { %v224_v15 = vsel %vm223_vm1, %v221_v11, %v222_v12  ;;  %v225_v23 = vsel %vm223_vm1, %v222_v12, %v221_v11  ;;  %v751_v11 = vld [vmem:[%s1125_s1 + $0xb] ss:$0 sm:$0xff] }
  0x15   : > { %256 = vrot.lane.b32.xlu0 %v884_v5, %s823_s29  ;;  %258 = vrot.lane.b32.xlu1 %v886_v6, %s823_s29 }
  0x19   : > { %304 = vrot.lane.b32.xlu0 %v884_v5, %s824_s30  ;;  %306 = vrot.lane.b32.xlu1 %v886_v6, %s824_s30 }
  0x1d   : > { %352 = vrot.lane.b32.xlu0 %v884_v5, %s825_s5  ;;  %354 = vrot.lane.b32.xlu1 %v886_v6, %s825_s5 }
  0x21   : > { %400 = vrot.lane.b32.xlu0 %v884_v5, %s826_s6  ;;  %402 = vrot.lane.b32.xlu1 %v886_v6, %s826_s6 }
  0x25   : > { %484 = vrot.lane.b32.xlu0 %v884_v5, %s827_s7  ;;  %486 = vrot.lane.b32.xlu1 %v886_v6, %s827_s7 }
  0x29   : > { %532 = vrot.lane.b32.xlu0 %v884_v5, %s828_s8  ;;  %534 = vrot.lane.b32.xlu1 %v886_v6, %s828_s8 }
  0x2d   : > { %580 = vrot.lane.b32.xlu0 %v884_v5, %s829_s9  ;;  %582 = vrot.lane.b32.xlu1 %v886_v6, %s829_s9 }
  0x31   : > { %628 = vrot.lane.b32.xlu0 %v884_v5, %s830_s10  ;;  %630 = vrot.lane.b32.xlu1 %v886_v6, %s830_s10 }
  0x88   : > { %v232_v14 = vpop.permute.xlu1 %231  ;;  %v212_v16 = vpop.permute.xlu0 %211 }
  0x89   : > { %v924_v17 = vmul.f32 %v212_v16, %v206_v13  ;;  %v926_v19 = vmul.f32 %v232_v14, %v224_v15 }
  0x8b   : > { %241 = vrot.lane.b32.xlu0 %v924_v17, %s823_s29 }
  0x8c   : > { %v217_v20 = vpop.permute.xlu0 %216  ;;  %v237_v22 = vpop.permute.xlu1 %236 }
  0x8d   : > { %v930_v21 = vmul.f32 %v217_v20, %v205_v18  ;;  %v936_v24 = vmul.f32 %v237_v22, %v225_v23  ;;  %v753_v20 = vld [vmem:[%s1125_s1 + $0x14] ss:$0 sm:$0xff] }
  0x8f   : > { %272 = vrot.lane.b32.xlu0 %v926_v19, %s823_s29  ;;  %243 = vrot.lane.b32.xlu1 %v930_v21, %s823_s29 }
  0x90   : > { %v257_v25 = vpop.permute.xlu0 %256  ;;  %v259_v26 = vpop.permute.xlu1 %258 }
  0x91   : > { %v268_v48 = vmul.f32 %v739_v43, %v257_v25  ;;  %v269_v56 = vmul.f32 %v739_v43, %v259_v26  ;;  %v755_v43 = vld [vmem:[%s1125_s1 + $0x3] ss:$0 sm:$0xff] }
  0x93   : > { %288 = vrot.lane.b32.xlu0 %v924_v17, %s824_s30  ;;  %274 = vrot.lane.b32.xlu1 %v936_v24, %s823_s29 }
  0x94   : > { %v305_v27 = vpop.permute.xlu0 %304  ;;  %v307_v28 = vpop.permute.xlu1 %306 }
  0x95   : > { %v316_v61 = vmul.f32 %v745_v53, %v305_v27  ;;  %v317_v9 = vmul.f32 %v745_v53, %v307_v28 }
  0x97   : > { %320 = vrot.lane.b32.xlu0 %v926_v19, %s824_s30  ;;  %290 = vrot.lane.b32.xlu1 %v930_v21, %s824_s30 }
  0x98   : > { %v353_v29 = vpop.permute.xlu0 %352  ;;  %v355_v30 = vpop.permute.xlu1 %354 }
  0x99   : > { %v364_v22 = vmul.f32 %v751_v11, %v353_v29 }
  0x9b   : > { %336 = vrot.lane.b32.xlu0 %v924_v17, %s825_s5  ;;  %322 = vrot.lane.b32.xlu1 %v936_v24, %s824_s30 }
  0x9c   : > { %v996_v31 = vpop.permute.xlu0 %400  ;;  %v998_v32 = vpop.permute.xlu1 %402 }
  0x9f   : > { %368 = vrot.lane.b32.xlu0 %v926_v19, %s825_s5  ;;  %338 = vrot.lane.b32.xlu1 %v930_v21, %s825_s5 }
  0xa0   : > { %v1000_v33 = vpop.permute.xlu0 %484  ;;  %v1002_v34 = vpop.permute.xlu1 %486 }
  0xa3   : > { %384 = vrot.lane.b32.xlu0 %v924_v17, %s826_s6  ;;  %370 = vrot.lane.b32.xlu1 %v936_v24, %s825_s5 }
  0xa4   : > { %v1004_v35 = vpop.permute.xlu0 %532  ;;  %v1006_v36 = vpop.permute.xlu1 %534 }
  0xa7   : > { %416 = vrot.lane.b32.xlu0 %v926_v19, %s826_s6  ;;  %386 = vrot.lane.b32.xlu1 %v930_v21, %s826_s6 }
  0xa8   : > { %v1008_v37 = vpop.permute.xlu0 %580  ;;  %v1010_v38 = vpop.permute.xlu1 %582 }
  0xab   : > { %468 = vrot.lane.b32.xlu0 %v924_v17, %s827_s7  ;;  %418 = vrot.lane.b32.xlu1 %v936_v24, %s826_s6 }
  0xac   : > { %v1012_v39 = vpop.permute.xlu0 %628  ;;  %v1014_v40 = vpop.permute.xlu1 %630 }
  0xaf   : > { %500 = vrot.lane.b32.xlu0 %v926_v19, %s827_s7  ;;  %470 = vrot.lane.b32.xlu1 %v930_v21, %s827_s7 }
  0xb3   : > { %516 = vrot.lane.b32.xlu0 %v924_v17, %s828_s8  ;;  %502 = vrot.lane.b32.xlu1 %v936_v24, %s827_s7 }
  0xb7   : > { %548 = vrot.lane.b32.xlu0 %v926_v19, %s828_s8  ;;  %518 = vrot.lane.b32.xlu1 %v930_v21, %s828_s8 }
  0xbb   : > { %564 = vrot.lane.b32.xlu0 %v924_v17, %s829_s9  ;;  %550 = vrot.lane.b32.xlu1 %v936_v24, %s828_s8 }
  0xbf   : > { %596 = vrot.lane.b32.xlu0 %v926_v19, %s829_s9  ;;  %566 = vrot.lane.b32.xlu1 %v930_v21, %s829_s9 }
  0xc3   : > { %612 = vrot.lane.b32.xlu0 %v924_v17, %s830_s10  ;;  %598 = vrot.lane.b32.xlu1 %v936_v24, %s829_s9 }
  0xc7   : > { %644 = vrot.lane.b32.xlu0 %v926_v19, %s830_s10  ;;  %614 = vrot.lane.b32.xlu1 %v930_v21, %s830_s10 }
  0xcb   : > { %646 = vrot.lane.b32.xlu1 %v936_v24, %s830_s10 }
  0xfd   : > { %v242_v42 = vpop.permute.xlu0 %241 }
  0xfe   : > { %v252_v45 = vmul.f32 %v737_v41, %v242_v42 }
 0x100   : > { %v270_v51 = vadd.f32 %v268_v48, %v252_v45 }
 0x101   : > { %v273_v46 = vpop.permute.xlu0 %272  ;;  %v244_v47 = vpop.permute.xlu1 %243 }
 0x102   : > { %v284_v49 = vmul.f32 %v741_v44, %v273_v46  ;;  %v253_v52 = vmul.f32 %v737_v41, %v244_v47  ;;  %v757_v46 = vld [vmem:[%s1125_s1 + $0xc] ss:$0 sm:$0xff] }
 0x103   : > { %v412_v53 = vmul.f32 %v757_v46, %v996_v31 }
 0x104   : > { %v286_v57 = vadd.f32 %v284_v49, %v270_v51  ;;  %v271_v62 = vadd.f32 %v269_v56, %v253_v52  ;;  %v759_v52 = vld [vmem:[%s1125_s1 + $0x15] ss:$0 sm:$0xff] }
 0x105   : > { %v289_v54 = vpop.permute.xlu0 %288  ;;  %v275_v55 = vpop.permute.xlu1 %274 }
 0x106   : > { %v300_v58 = vmul.f32 %v743_v50, %v289_v54  ;;  %v285_v59 = vmul.f32 %v741_v44, %v275_v55  ;;  %v365_v44 = vmul.f32 %v751_v11, %v355_v30  ;;  %v761_v30 = vld [vmem:[%s1125_s1 + $0x4] ss:$0 sm:$0xff] }
 0x108   : > { %v302_v63 = vadd.f32 %v300_v58, %v286_v57  ;;  %v287_v2 = vadd.f32 %v285_v59, %v271_v62  ;;  %v763_v57 = vld [vmem:[%s1125_s1 + $0xd] ss:$0 sm:$0xff]  ;;  %v440_v62 = vmul.f32 %v761_v30, %v924_v17  ;;  %v767_v17 = vld [vmem:[%s1125_s1 + $0x5] ss:$0 sm:$0xff] }
 0x109   : > { %v321_v0 = vpop.permute.xlu0 %320  ;;  %v291_v1 = vpop.permute.xlu1 %290 }
 0x10a   : > { %v318_v3 = vadd.f32 %v316_v61, %v302_v63  ;;  %v332_v4 = vmul.f32 %v747_v60, %v321_v0  ;;  %v301_v7 = vmul.f32 %v743_v50, %v291_v1  ;;  %v413_v63 = vmul.f32 %v757_v46, %v998_v32 }
 0x10b   : > { %v452_v1 = vmul.f32 %v763_v57, %v884_v5  ;;  %v453_v5 = vmul.f32 %v763_v57, %v886_v6  ;;  %v773_v6 = vld [vmem:[%s1125_s1 + $0x6] ss:$0 sm:$0xff] }
 0x10c   : > { %v303_v10 = vadd.f32 %v301_v7, %v287_v2  ;;  %v334_v14 = vadd.f32 %v332_v4, %v318_v3  ;;  %v765_v2 = vld [vmem:[%s1125_s1 + $0x16] ss:$0 sm:$0xff] }
 0x10d   : > { %v337_v12 = vpop.permute.xlu0 %336  ;;  %v323_v13 = vpop.permute.xlu1 %322 }
 0x10e   : > { %v348_v15 = vmul.f32 %v749_v8, %v337_v12  ;;  %v319_v16 = vadd.f32 %v317_v9, %v303_v10  ;;  %v333_v18 = vmul.f32 %v747_v60, %v323_v13  ;;  %v464_v10 = vmul.f32 %v765_v2, %v926_v19  ;;  %v769_v13 = vld [vmem:[%s1125_s1 + $0xe] ss:$0 sm:$0xff]  ;;  %v771_v19 = vld [vmem:[%s1125_s1 + $0x17] ss:$0 sm:$0xff] }
 0x10f   : > { %v441_v12 = vmul.f32 %v761_v30, %v930_v21  ;;  %v465_v21 = vmul.f32 %v765_v2, %v936_v24 }
 0x110   : > { %v350_v23 = vadd.f32 %v348_v15, %v334_v14  ;;  %v335_v27 = vadd.f32 %v333_v18, %v319_v16 }
 0x111   : > { %v369_v25 = vpop.permute.xlu0 %368  ;;  %v339_v26 = vpop.permute.xlu1 %338 }
 0x112   : > { %v366_v28 = vadd.f32 %v364_v22, %v350_v23  ;;  %v380_v41 = vmul.f32 %v753_v20, %v369_v25  ;;  %v349_v42 = vmul.f32 %v749_v8, %v339_v26  ;;  %v496_v22 = vmul.f32 %v769_v13, %v1000_v33 }
 0x113   : > { %v497_v33 = vmul.f32 %v769_v13, %v1002_v34 }
 0x114   : > { %v351_v45 = vadd.f32 %v349_v42, %v335_v27  ;;  %v382_v29 = vadd.f32 %v380_v41, %v366_v28 }
 0x115   : > { %v385_v47 = vpop.permute.xlu0 %384  ;;  %v371_v48 = vpop.permute.xlu1 %370 }
 0x116   : > { %v396_v49 = vmul.f32 %v755_v43, %v385_v47  ;;  %v367_v50 = vadd.f32 %v365_v44, %v351_v45  ;;  %v381_v51 = vmul.f32 %v753_v20, %v371_v48  ;;  %v775_v44 = vld [vmem:[%s1125_s1 + $0xf] ss:$0 sm:$0xff]  ;;  %v777_v47 = vld [vmem:[%s1125_s1 + $0x18] ss:$0 sm:$0xff] }
 0x118   : > { %v398_v54 = vadd.f32 %v396_v49, %v382_v29  ;;  %v383_v58 = vadd.f32 %v381_v51, %v367_v50  ;;  %v544_v49 = vmul.f32 %v775_v44, %v1004_v35 }
 0x119   : > { %v417_v55 = vpop.permute.xlu0 %416  ;;  %v387_v56 = vpop.permute.xlu1 %386 }
 0x11a   : > { %v414_v59 = vadd.f32 %v412_v53, %v398_v54  ;;  %v428_v60 = vmul.f32 %v759_v52, %v417_v55  ;;  %v397_v61 = vmul.f32 %v755_v43, %v387_v56  ;;  %v779_v53 = vld [vmem:[%s1125_s1 + $0x7] ss:$0 sm:$0xff]  ;;  %v781_v56 = vld [vmem:[%s1125_s1 + $0x10] ss:$0 sm:$0xff] }
 0x11c   : > { %v430_v31 = vadd.f32 %v428_v60, %v414_v59  ;;  %v399_v0 = vadd.f32 %v397_v61, %v383_v58  ;;  %v545_v59 = vmul.f32 %v775_v44, %v1006_v36  ;;  %v785_v36 = vld [vmem:[%s1125_s1 + $0x8] ss:$0 sm:$0xff] }
 0x11d   : > { %v469_v3 = vpop.permute.xlu0 %468  ;;  %v419_v4 = vpop.permute.xlu1 %418 }
 0x11e   : > { %v442_v7 = vadd.f32 %v440_v62, %v430_v31  ;;  %v415_v8 = vadd.f32 %v413_v63, %v399_v0  ;;  %v429_v9 = vmul.f32 %v759_v52, %v419_v4  ;;  %v480_v18 = vmul.f32 %v767_v17, %v469_v3  ;;  %v783_v62 = vld [vmem:[%s1125_s1 + $0x19] ss:$0 sm:$0xff] }
 0x11f   : > { %v592_v63 = vmul.f32 %v781_v56, %v1008_v37  ;;  %v787_v37 = vld [vmem:[%s1125_s1 + $0x11] ss:$0 sm:$0xff] }
 0x120   : > { %v454_v32 = vadd.f32 %v452_v1, %v442_v7  ;;  %v431_v11 = vadd.f32 %v429_v9, %v415_v8 }
 0x121   : > { %v501_v14 = vpop.permute.xlu0 %500  ;;  %v471_v15 = vpop.permute.xlu1 %470 }
 0x122   : > { %v466_v16 = vadd.f32 %v464_v10, %v454_v32  ;;  %v443_v20 = vadd.f32 %v441_v12, %v431_v11  ;;  %v512_v41 = vmul.f32 %v771_v19, %v501_v14  ;;  %v481_v43 = vmul.f32 %v767_v17, %v471_v15  ;;  %v789_v15 = vld [vmem:[%s1125_s1 + $0x1a] ss:$0 sm:$0xff] }
 0x123   : > { %v593_v10 = vmul.f32 %v781_v56, %v1010_v38 }
 0x124   : > { %v482_v23 = vadd.f32 %v480_v18, %v466_v16  ;;  %v455_v25 = vadd.f32 %v453_v5, %v443_v20  ;;  %v640_v16 = vmul.f32 %v787_v37, %v1012_v39 }
 0x125   : > { %v517_v26 = vpop.permute.xlu0 %516  ;;  %v503_v27 = vpop.permute.xlu1 %502 }
 0x126   : > { %v498_v28 = vadd.f32 %v496_v22, %v482_v23  ;;  %v467_v42 = vadd.f32 %v465_v21, %v455_v25  ;;  %v528_v24 = vmul.f32 %v773_v6, %v517_v26  ;;  %v513_v52 = vmul.f32 %v771_v19, %v503_v27  ;;  %v790_v25 = vld [vmem:[%s1127_s3] ss:$0 sm:$0xff] }
 0x128   : > { %v514_v45 = vadd.f32 %v512_v41, %v498_v28  ;;  %v483_v46 = vadd.f32 %v481_v43, %v467_v42 }
 0x129   : > { %v549_v48 = vpop.permute.xlu0 %548  ;;  %v519_v29 = vpop.permute.xlu1 %518 }
 0x12a   : > { %v530_v50 = vadd.f32 %v528_v24, %v514_v45  ;;  %v499_v51 = vadd.f32 %v497_v33, %v483_v46  ;;  %v560_v30 = vmul.f32 %v777_v47, %v549_v48  ;;  %v529_v55 = vmul.f32 %v773_v6, %v519_v29 }
 0x12b   : > { %v641_v6 = vmul.f32 %v787_v37, %v1014_v40 }
 0x12c   : > { %v515_v54 = vadd.f32 %v513_v52, %v499_v51  ;;  %v546_v34 = vadd.f32 %v544_v49, %v530_v50 }
 0x12d   : > { %v565_v57 = vpop.permute.xlu0 %564  ;;  %v551_v58 = vpop.permute.xlu1 %550 }
 0x12e   : > { %v562_v35 = vadd.f32 %v560_v30, %v546_v34  ;;  %v531_v60 = vadd.f32 %v529_v55, %v515_v54  ;;  %v576_v61 = vmul.f32 %v779_v53, %v565_v57  ;;  %v561_v1 = vmul.f32 %v777_v47, %v551_v58 }
 0x130   : > { %v578_v31 = vadd.f32 %v576_v61, %v562_v35  ;;  %v547_v0 = vadd.f32 %v545_v59, %v531_v60 }
 0x131   : > { %v597_v2 = vpop.permute.xlu0 %596  ;;  %v567_v3 = vpop.permute.xlu1 %566 }
 0x132   : > { %v563_v4 = vadd.f32 %v561_v1, %v547_v0  ;;  %v594_v7 = vadd.f32 %v592_v63, %v578_v31  ;;  %v608_v8 = vmul.f32 %v783_v62, %v597_v2  ;;  %v577_v9 = vmul.f32 %v779_v53, %v567_v3 }
 0x134   : > { %v579_v17 = vadd.f32 %v577_v9, %v563_v4  ;;  %v610_v12 = vadd.f32 %v608_v8, %v594_v7 }
 0x135   : > { %v613_v32 = vpop.permute.xlu0 %612  ;;  %v599_v11 = vpop.permute.xlu1 %598 }
 0x136   : > { %v624_v5 = vmul.f32 %v785_v36, %v613_v32  ;;  %v595_v13 = vadd.f32 %v593_v10, %v579_v17  ;;  %v609_v14 = vmul.f32 %v783_v62, %v599_v11 }
 0x138   : > { %v626_v18 = vadd.f32 %v624_v5, %v610_v12  ;;  %v611_v19 = vadd.f32 %v609_v14, %v595_v13 }
 0x139   : > { %v645_v38 = vpop.permute.xlu0 %644  ;;  %v615_v20 = vpop.permute.xlu1 %614 }
 0x13a   : > { %v642_v22 = vadd.f32 %v640_v16, %v626_v18  ;;  %v656_v23 = vmul.f32 %v789_v15, %v645_v38  ;;  %v625_v21 = vmul.f32 %v785_v36, %v615_v20 }
 0x13c   : > { %v658_v26 = vadd.f32 %v656_v23, %v642_v22  ;;  %v627_v27 = vadd.f32 %v625_v21, %v611_v19 }
 0x13d   : > { %v647_v39 = vpop.permute.xlu1 %646 }
 0x13e   : > { %v667_v28 = vadd.f32 %v790_v25, %v658_v26  ;;  %v643_v41 = vadd.f32 %v641_v6, %v627_v27  ;;  %v657_v42 = vmul.f32 %v789_v15, %v647_v39 }
 0x140   : > { %669 = vst [vmem:[%s197_s26] sm:$0xff] %v667_v28  ;;  %v659_v43 = vadd.f32 %v657_v42, %v643_v41 }
 0x142   : > { %v668_v44 = vadd.f32 %v790_v25, %v659_v43 }
 0x144   : > { %670 = vst [vmem:[%s197_s26 + $0x8] sm:$0xff] %v668_v44 }
 0x145 PF: > { %s14_s15 = sadd.s32 1, %s820_s15  }
 0x146   : > { %p11_p4 = scmp.ge.s32.totalorder %s14_s15, 4  }
 0x148   :  { %13 = sbr.rel (!%p11_p4) target bundleno = 1 (0x1), region = 93 }

// kernel: tse_adapter_forward.5
= control target key start
LH: loop header
LB: loop body
LE: loop exit
PB: predicated region body
PF: predicated region fallthrough
CT: control target
= control target key end

     0   :  { %s1536_s21 = smov 0   ;;  %s2189_s0 = inlined_call_operand.vmem [shape: f32[2,256,8], index: 0, kind: input, shape index: {}]   ;;  %s2190_s1 = inlined_call_operand.vmem [shape: f32[16,16], index: 1, kind: input, shape index: {}]   ;;  %s2191_s2 = inlined_call_operand.vmem [shape: f32[1,16], index: 2, kind: input, shape index: {}]   ;;  %s2192_s3 = inlined_call_operand.vmem [shape: f32[8,32], index: 3, kind: input, shape index: {}]   ;;  %s2193_s4 = inlined_call_operand.vmem [shape: f32[1,32], index: 4, kind: input, shape index: {}]   ;;  %s2194_s5 = inlined_call_operand.vmem [shape: f32[32,17,32], index: 5, kind: input, shape index: {}, may-alias: {5,6}]   ;;  %s2195_s6 = inlined_call_operand.vmem [shape: f32[32,17,32], index: 6, kind: output, shape index: {}, may-alias: {5,6}]  }
   0x1 LB: > { %s1542_s22 = sadd.s32 4294967295, %s1498_s21   ;;  %p1348_p0 = scmp.ge.s32.totalorder %s1498_s21, 1  ;;  %s1498_s21 = sphi %s1536_s21, %s16_s21  }
   0x2   : > { %p224_p1 = scmp.lt.s32.totalorder %s1498_s21, 3 }
   0x4   : > { %p225_p2 = pnand %p1348_p0, %p224_p1 }
   0x6   : > { %228 = sbr.rel (%p225_p2) target bundleno = 1069 (0x42d), region = 44 }
   0xb   : > { %p261_p3 = scmp.lt.s32.totalorder %s1542_s22, 1  ;;  %vm312_vm0 = vcmask 64512   ;;  %vm452_vm1 = vcmask 130112   ;;  %vm589_vm2 = vcmask 1041409   ;;  %vm591_vm3 = vcmask 1042434   ;;  %s1351_s12 = sshll.u32 %s1542_s22, 4 }
   0xc   : > { %vm593_vm4 = vcmask 1043459   ;;  %vm595_vm5 = vcmask 1044484   ;;  %vm597_vm6 = vcmask 1045509   ;;  %vm599_vm7 = vcmask 1046534   ;;  %p267_p4 = scmp.lt.s32.totalorder %s1351_s12, 31 }
   0xd   : > { %s262_s23 = scalar_select %p261_p3, %s1542_s22, 1  ;;  %vm601_vm8 = vcmask 1047559   ;;  %vm612_vm9 = vcmask 130048   ;;  %vm636_vm10 = vcmask 122880   ;;  %vm1160_vm13 = vcmask 253952  }
   0xe   : > { %s2215_s12 = smov (!%p267_p4, %s1351_s12), 31  ;;  %vm1241_vm14 = vcmask 261120  }
   0xf   : > { %s1392_s24 = sshll.u32 %s262_s23, 8  ;;  %s1478_s13 = smul.u32 24, %s2215_s12 }
  0x10   : > { %s1551_s27 = scalar_lea.vmem %s2189_s0, %s1392_s24 }
  0x11   : > { %v1554_v0 = vld [vmem:[%s1551_s27 + $0x10] sm:$0xff]  ;;  %v1557_v1 = vld [vmem:[%s1551_s27] sm:$0xff]  ;;  %v1560_v2 = vld [vmem:[%s1551_s27 + $0x18] sm:$0xff]  ;;  %s1932_s16 = scalar_lea.vmem %s2194_s5, %s1478_s13  ;;  %s1946_s19 = scalar_lea.vmem %s2195_s6, %s1478_s13 }
  0x12   : > { %v319_v3 = vsel %vm312_vm0, %v1554_v0, 0.0  ;;  %v313_v4 = vsel %vm312_vm0, %v1557_v1, 0.0  ;;  %v1567_v5 = vld [vmem:[%s1551_s27 + $0x8] sm:$0xff]  ;;  %v322_v6 = vsel %vm312_vm0, %v1560_v2, 0.0  ;;  %v1577_v9 = vld [vmem:[%s1551_s27 + $0x80] sm:$0xff]  ;;  %v1584_v12 = vld [vmem:[%s1551_s27 + $0x98] sm:$0xff] }
  0x13   : > { %320 = vadd.xlane.f32.xlu1 %v319_v3  ;;  %314 = vadd.xlane.f32.xlu0 %v313_v4  ;;  %v316_v7 = vsel %vm312_vm0, %v1567_v5, 0.0  ;;  %v1574_v8 = vld [vmem:[%s1551_s27 + $0x88] sm:$0xff]  ;;  %v361_v11 = vsel %vm312_vm0, %v1577_v9, 0.0  ;;  %v1587_v13 = vld [vmem:[%s1551_s27 + $0x90] sm:$0xff]  ;;  %v370_v14 = vsel %vm312_vm0, %v1584_v12, 0.0  ;;  %v1597_v17 = vld [vmem:[%s1551_s27 + $0x20] sm:$0xff] }
  0x14   : > { %v364_v10 = vsel %vm312_vm0, %v1574_v8, 0.0  ;;  %v367_v15 = vsel %vm312_vm0, %v1587_v13, 0.0  ;;  %v1594_v16 = vld [vmem:[%s1551_s27 + $0x28] sm:$0xff]  ;;  %v325_v19 = vsel %vm312_vm0, %v1597_v17, 0.0  ;;  %v1607_v21 = vld [vmem:[%s1551_s27 + $0xa0] sm:$0xff]  ;;  %v1614_v24 = vld [vmem:[%s1551_s27 + $0x38] sm:$0xff] }
  0x15   : > { %v328_v18 = vsel %vm312_vm0, %v1594_v16, 0.0  ;;  %v1604_v20 = vld [vmem:[%s1551_s27 + $0xa8] sm:$0xff]  ;;  %v373_v23 = vsel %vm312_vm0, %v1607_v21, 0.0  ;;  %v1617_v25 = vld [vmem:[%s1551_s27 + $0x30] sm:$0xff]  ;;  %v334_v26 = vsel %vm312_vm0, %v1614_v24, 0.0  ;;  %v1624_v28 = vld [vmem:[%s1551_s27 + $0xb8] sm:$0xff] }
  0x16   : > { %v376_v22 = vsel %vm312_vm0, %v1604_v20, 0.0  ;;  %v331_v27 = vsel %vm312_vm0, %v1617_v25, 0.0  ;;  %v1627_v29 = vld [vmem:[%s1551_s27 + $0xb0] sm:$0xff]  ;;  %v382_v30 = vsel %vm312_vm0, %v1624_v28, 0.0  ;;  %v1634_v32 = vld [vmem:[%s1551_s27 + $0x48] sm:$0xff]  ;;  %v1637_v33 = vld [vmem:[%s1551_s27 + $0x40] sm:$0xff] }
  0x17   : > { %323 = vadd.xlane.f32.xlu1 %v322_v6  ;;  %317 = vadd.xlane.f32.xlu0 %v316_v7  ;;  %v379_v31 = vsel %vm312_vm0, %v1627_v29, 0.0  ;;  %v340_v34 = vsel %vm312_vm0, %v1634_v32, 0.0  ;;  %v337_v35 = vsel %vm312_vm0, %v1637_v33, 0.0  ;;  %v1644_v36 = vld [vmem:[%s1551_s27 + $0xc8] sm:$0xff]  ;;  %v1647_v37 = vld [vmem:[%s1551_s27 + $0xc0] sm:$0xff]  ;;  %v1654_v40 = vld [vmem:[%s1551_s27 + $0x58] sm:$0xff] }
  0x18   : > { %v388_v38 = vsel %vm312_vm0, %v1644_v36, 0.0  ;;  %v385_v39 = vsel %vm312_vm0, %v1647_v37, 0.0  ;;  %v1657_v41 = vld [vmem:[%s1551_s27 + $0x50] sm:$0xff]  ;;  %v346_v42 = vsel %vm312_vm0, %v1654_v40, 0.0  ;;  %v1664_v44 = vld [vmem:[%s1551_s27 + $0xd8] sm:$0xff]  ;;  %v1674_v48 = vld [vmem:[%s1551_s27 + $0x68] sm:$0xff] }
  0x19   : > { %v343_v43 = vsel %vm312_vm0, %v1657_v41, 0.0  ;;  %v1667_v45 = vld [vmem:[%s1551_s27 + $0xd0] sm:$0xff]  ;;  %v394_v46 = vsel %vm312_vm0, %v1664_v44, 0.0  ;;  %2202 = vst [vmem:[#allocation2_spill] sm:$0xff] %v1674_v48  ;;  %v1677_v49 = vld [vmem:[%s1551_s27 + $0x60] sm:$0xff]  ;;  %v352_v50 = vsel %vm312_vm0, %v1674_v48, 0.0 }
  0x1a   : > { %v391_v47 = vsel %vm312_vm0, %v1667_v45, 0.0  ;;  %v349_v51 = vsel %vm312_vm0, %v1677_v49, 0.0  ;;  %v1684_v52 = vld [vmem:[%s1551_s27 + $0xe8] sm:$0xff]  ;;  %v1687_v53 = vld [vmem:[%s1551_s27 + $0xe0] sm:$0xff]  ;;  %v1694_v56 = vld [vmem:[%s1551_s27 + $0x78] sm:$0xff] }
  0x1b   : > { %365 = vadd.xlane.f32.xlu1 %v364_v10  ;;  %362 = vadd.xlane.f32.xlu0 %v361_v11  ;;  %2203 = vst [vmem:[#allocation3_spill] sm:$0xff] %v1684_v52  ;;  %v400_v54 = vsel %vm312_vm0, %v1684_v52, 0.0  ;;  %v397_v55 = vsel %vm312_vm0, %v1687_v53, 0.0  ;;  %2204 = vst [vmem:[#allocation4_spill] sm:$0xff] %v1694_v56  ;;  %v1697_v57 = vld [vmem:[%s1551_s27 + $0x70] sm:$0xff]  ;;  %v358_v58 = vsel %vm312_vm0, %v1694_v56, 0.0 }
  0x1c   : > { %2205 = vst [vmem:[#allocation5_spill] sm:$0xff] %v1697_v57  ;;  %v355_v59 = vsel %vm312_vm0, %v1697_v57, 0.0  ;;  %v1704_v60 = vld [vmem:[%s1551_s27 + $0xf8] sm:$0xff]  ;;  %v1707_v61 = vld [vmem:[%s1551_s27 + $0xf0] sm:$0xff] }
  0x1d   : > { %2206 = vst [vmem:[#allocation6_spill] sm:$0xff] %v1704_v60  ;;  %2207 = vst [vmem:[#allocation7_spill] sm:$0xff] %v1707_v61  ;;  %v406_v62 = vsel %vm312_vm0, %v1704_v60, 0.0  ;;  %v403_v63 = vsel %vm312_vm0, %v1707_v61, 0.0 }
  0x1f   : > { %371 = vadd.xlane.f32.xlu1 %v370_v14  ;;  %368 = vadd.xlane.f32.xlu0 %v367_v15 }
  0x23   : > { %329 = vadd.xlane.f32.xlu1 %v328_v18  ;;  %326 = vadd.xlane.f32.xlu0 %v325_v19 }
  0x27   : > { %377 = vadd.xlane.f32.xlu1 %v376_v22  ;;  %374 = vadd.xlane.f32.xlu0 %v373_v23 }
  0x2b   : > { %335 = vadd.xlane.f32.xlu1 %v334_v26  ;;  %332 = vadd.xlane.f32.xlu0 %v331_v27 }
  0x2f   : > { %383 = vadd.xlane.f32.xlu1 %v382_v30  ;;  %380 = vadd.xlane.f32.xlu0 %v379_v31 }
  0x33   : > { %341 = vadd.xlane.f32.xlu1 %v340_v34  ;;  %338 = vadd.xlane.f32.xlu0 %v337_v35  ;;  %v441_v34 = vlaneseq }
  0x37   : > { %389 = vadd.xlane.f32.xlu1 %v388_v38  ;;  %386 = vadd.xlane.f32.xlu0 %v385_v39  ;;  %v1723_v39 = vand.u32 127, %v441_v34 }
  0x3b   : > { %347 = vadd.xlane.f32.xlu1 %v346_v42  ;;  %344 = vadd.xlane.f32.xlu0 %v343_v43  ;;  %v447_v42 = vadd.s32 4294967288, %v1723_v39 }
  0x3f   : > { %395 = vadd.xlane.f32.xlu1 %v394_v46  ;;  %392 = vadd.xlane.f32.xlu0 %v391_v47  ;;  %v1730_v47 = vshrl.u32 %v441_v34, 7 }
  0x41   : > { %vm651_vm12 = vcmp.eq.s32.totalorder %v1730_v47, %v1723_v39 }
  0x43   : > { %353 = vadd.xlane.f32.xlu1 %v352_v50  ;;  %350 = vadd.xlane.f32.xlu0 %v349_v51  ;;  %v1733_v50 = vsub.s32 %v447_v42, %v1730_v47 }
  0x47   : > { %401 = vadd.xlane.f32.xlu1 %v400_v54  ;;  %398 = vadd.xlane.f32.xlu0 %v397_v55  ;;  %v1737_v55 = vsub.s32 %v1723_v39, %v1730_v47 }
  0x4b   : > { %359 = vadd.xlane.f32.xlu1 %v358_v58  ;;  %356 = vadd.xlane.f32.xlu0 %v355_v59 }
  0x4f   : > { %407 = vadd.xlane.f32.xlu1 %v406_v62  ;;  %404 = vadd.xlane.f32.xlu0 %v403_v63 }
  0x9c   : > { %v321_v3 = vpop.xlane.xlu1 %320  ;;  %v315_v4 = vpop.xlane.xlu0 %314 }
  0x9d   : > { %v457_v34 = vrot.slane %v321_v3, %v1737_v55  ;;  %v446_v42 = vrot.slane %v315_v4, %v1737_v55 }
  0xa0   : > { %v324_v6 = vpop.xlane.xlu1 %323  ;;  %v318_v7 = vpop.xlane.xlu0 %317 }
  0xa1   : > { %v461_v58 = vrot.slane %v324_v6, %v1733_v50  ;;  %v451_v59 = vrot.slane %v318_v7, %v1733_v50 }
  0xa3   : > { %v462_v6 = vsel %vm452_vm1, %v461_v58, %v457_v34  ;;  %v453_v7 = vsel %vm452_vm1, %v451_v59, %v446_v42 }
  0xa4   : > { %v366_v10 = vpop.xlane.xlu1 %365  ;;  %v363_v11 = vpop.xlane.xlu0 %362 }
  0xa5   : > { %v524_v61 = vrot.slane %v366_v10, %v1733_v50  ;;  %v520_v57 = vrot.slane %v363_v11, %v1737_v55 }
  0xa8   : > { %v1713_v14 = vpop.xlane.xlu1 %371  ;;  %v369_v15 = vpop.xlane.xlu0 %368 }
  0xa9   : > { %v533_v4 = vrot.slane %v1713_v14, %v1733_v50 }
  0xac   : > { %v330_v18 = vpop.xlane.xlu1 %329  ;;  %v327_v19 = vpop.xlane.xlu0 %326 }
  0xad   : > { %v470_v60 = vrot.slane %v330_v18, %v1733_v50  ;;  %v466_v56 = vrot.slane %v327_v19, %v1737_v55  ;;  %v529_v18 = vrot.slane %v369_v15, %v1737_v55 }
  0xaf   : > { %v471_v58 = vsel %vm452_vm1, %v470_v60, %v466_v56  ;;  %v534_v42 = vsel %vm452_vm1, %v533_v4, %v529_v18 }
  0xb0   : > { %v1715_v22 = vpop.xlane.xlu1 %377  ;;  %v1717_v23 = vpop.xlane.xlu0 %374 }
  0xb1   : > { %v542_v11 = vrot.slane %v1715_v22, %v1733_v50  ;;  %v538_v34 = vrot.slane %v1717_v23, %v1737_v55 }
  0xb4   : > { %v336_v26 = vpop.xlane.xlu1 %335  ;;  %v333_v27 = vpop.xlane.xlu0 %332 }
  0xb5   : > { %v479_v19 = vrot.slane %v336_v26, %v1733_v50  ;;  %v475_v48 = vrot.slane %v333_v27, %v1737_v55  ;;  %v590_v26 = vsel %vm589_vm2, %v462_v6, %v453_v7  ;;  %v525_v27 = vsel %vm452_vm1, %v524_v61, %v520_v57 }
  0xb6   : > { %v543_v6 = vsel %vm452_vm1, %v542_v11, %v538_v34 }
  0xb7   : > { %v480_v22 = vsel %vm452_vm1, %v479_v19, %v475_v48 }
  0xb8   : > { %v1719_v30 = vpop.xlane.xlu1 %383  ;;  %v1721_v31 = vpop.xlane.xlu0 %380 }
  0xb9   : > { %v551_v23 = vrot.slane %v1719_v30, %v1733_v50 }
  0xbc   : > { %v342_v35 = vpop.xlane.xlu1 %341  ;;  %v339_v38 = vpop.xlane.xlu0 %338 }
  0xbd   : > { %v488_v59 = vrot.slane %v342_v35, %v1733_v50  ;;  %v484_v10 = vrot.slane %v339_v38, %v1737_v55 }
  0xbf   : > { %v489_v57 = vsel %vm452_vm1, %v488_v59, %v484_v10 }
  0xc0   : > { %v1726_v43 = vpop.xlane.xlu1 %389  ;;  %v1728_v46 = vpop.xlane.xlu0 %386 }
  0xc1   : > { %v556_v61 = vrot.slane %v1728_v46, %v1737_v55 }
  0xc4   : > { %v348_v51 = vpop.xlane.xlu1 %347  ;;  %v345_v54 = vpop.xlane.xlu0 %344 }
  0xc5   : > { %v497_v14 = vrot.slane %v348_v51, %v1733_v50  ;;  %v493_v15 = vrot.slane %v345_v54, %v1737_v55  ;;  %v547_v51 = vrot.slane %v1721_v31, %v1737_v55  ;;  %v592_v54 = vsel %vm591_vm3, %v471_v58, %v590_v26 }
  0xc6   : > { %v594_v7 = vsel %vm593_vm4, %v480_v22, %v592_v54 }
  0xc7   : > { %v498_v48 = vsel %vm452_vm1, %v497_v14, %v493_v15  ;;  %v552_v19 = vsel %vm452_vm1, %v551_v23, %v547_v51  ;;  %v596_v58 = vsel %vm595_vm5, %v489_v57, %v594_v7 }
  0xc8   : > { %v1741_v62 = vpop.xlane.xlu1 %395  ;;  %v1743_v63 = vpop.xlane.xlu0 %392  ;;  %v598_v11 = vsel %vm597_vm6, %v498_v48, %v596_v58 }
  0xc9   : > { %v569_v30 = vrot.slane %v1741_v62, %v1733_v50  ;;  %v565_v31 = vrot.slane %v1743_v63, %v1737_v55  ;;  %v603_v63 = vsel %vm589_vm2, %v534_v42, %v525_v27 }
  0xca   : > { %v604_v34 = vsel %vm591_vm3, %v543_v6, %v603_v63 }
  0xcb   : > { %v570_v14 = vsel %vm452_vm1, %v569_v30, %v565_v31 }
  0xcc   : > { %v354_v52 = vpop.xlane.xlu1 %353  ;;  %v351_v3 = vpop.xlane.xlu0 %350 }
  0xcd   : > { %v506_v56 = vrot.slane %v354_v52, %v1733_v50  ;;  %v502_v60 = vrot.slane %v351_v3, %v1737_v55  ;;  %v560_v52 = vrot.slane %v1726_v43, %v1733_v50 }
  0xcf   : > { %v507_v3 = vsel %vm452_vm1, %v506_v56, %v502_v60  ;;  %v561_v10 = vsel %vm452_vm1, %v560_v52, %v556_v61  ;;  %v605_v56 = vsel %vm593_vm4, %v552_v19, %v604_v34 }
  0xd0   : > { %v402_v35 = vpop.xlane.xlu1 %401  ;;  %v399_v38 = vpop.xlane.xlu0 %398  ;;  %v600_v26 = vsel %vm599_vm7, %v507_v3, %v598_v11  ;;  %v606_v42 = vsel %vm595_vm5, %v561_v10, %v605_v56  ;;  %v634_v10 = vld [vmem:[%s2191_s2] sm:$0x1] }
  0xd1   : > { %v578_v4 = vrot.slane %v402_v35, %v1733_v50  ;;  %v574_v43 = vrot.slane %v399_v38, %v1737_v55  ;;  %v607_v54 = vsel %vm597_vm6, %v570_v14, %v606_v42  ;;  %v659_v42 = vsub.s32 0, %v1730_v47 }
  0xd3   : > { %v579_v60 = vsel %vm452_vm1, %v578_v4, %v574_v43 }
  0xd4   : > { %v360_v18 = vpop.xlane.xlu1 %359  ;;  %v357_v46 = vpop.xlane.xlu0 %356  ;;  %v608_v52 = vsel %vm599_vm7, %v579_v60, %v607_v54 }
  0xd5   : > { %v515_v59 = vrot.slane %v360_v18, %v1733_v50  ;;  %v511_v62 = vrot.slane %v357_v46, %v1737_v55 }
  0xd7   : > { %v516_v15 = vsel %vm452_vm1, %v515_v59, %v511_v62 }
  0xd8   : > { %v408_v35 = vpop.xlane.xlu1 %407  ;;  %v405_v38 = vpop.xlane.xlu0 %404  ;;  %v602_v27 = vsel %vm601_vm8, %v516_v15, %v600_v26 }
  0xd9   : > { %v587_v22 = vrot.slane %v408_v35, %v1733_v50  ;;  %v583_v23 = vrot.slane %v405_v38, %v1737_v55  ;;  %v613_v51 = vsel %vm612_vm9, %v602_v27, 0.0  ;;  %v621_v50 = vld [vmem:[%s2190_s1] sm:$0xff]  ;;  %v622_v55 = vld [vmem:[%s2190_s1 + $0x8] sm:$0xff]  ;;  %v650_v27 = vadd.s32 8, %v1730_v47 }
  0xda   : > { %614 = vadd.xlane.f32.xlu0 %v613_v51  ;;  %v1500_v51 = vmov 0.0  }
  0xdb   : > { %v588_v57 = vsel %vm452_vm1, %v587_v22, %v583_v23  ;;  %vm652_vm11 = vcmp.eq.s32.totalorder %v650_v27, %v1723_v39  ;;  %v677_v39 = vsub.s32 1, %v1730_v47 }
  0xdc   : > { %v609_v61 = vsel %vm601_vm8, %v588_v57, %v608_v52  ;;  %v1356_v54 = vsel %vm652_vm11, 1.0, %v1500_v51  ;;  %v1355_v57 = vsel %vm651_vm12, 1.0, %v1500_v51 }
  0xdd   : > { %v616_v6 = vsel %vm612_vm9, %v609_v61, 0.0 }
  0xde   : > { %617 = vadd.xlane.f32.xlu1 %v616_v6 }
 0x163   : > { %v615_v48 = vpop.xlane.xlu0 %614 }
 0x164   : > { %v619_v30 = vmul.f32 0.0078125, %v615_v48 }
 0x166   : > { %v623_v7 = vmul.f32 %v621_v50, %v619_v30  ;;  %v783_v50 = vld [vmem:[%s2192_s3] sm:$0xff] }
 0x167   : > { %v618_v31 = vpop.xlane.xlu1 %617  ;;  %1426 = vmatprep.subr.mxu0 %v783_v50  ;;  %1476 = vmatprep.subr.mxu1 %v783_v50 }
 0x168   : > { %v620_v3 = vmul.f32 0.0078125, %v618_v31  ;;  %v625_v43 = vsel %vm612_vm9, %v623_v7, 0.0  ;;  %1427 = vmatpush3.msra.mxu0 %v783_v50  ;;  %1477 = vmatpush3.msra.mxu1 %v783_v50  ;;  %v681_v7 = vsub.s32 2, %v1730_v47  ;;  %v1144_v50 = vld [vmem:[%s1932_s16] sm:$0x1] }
 0x16a   : > { %v624_v4 = vmul.f32 %v622_v55, %v620_v3 }
 0x16c   : > { %v626_v18 = vsel %vm612_vm9, %v624_v4, 0.0 }
 0x16d   : > { %v627_v46 = vadd.f32 %v626_v18, %v625_v43 }
 0x16f   : > { %v628_v19 = vrot.slane %v627_v46, 4 }
 0x171   : > { %v629_v58 = vadd.f32 %v628_v19, %v627_v46 }
 0x173   : > { %v630_v59 = vrot.slane %v629_v58, 2 }
 0x175   : > { %v631_v62 = vadd.f32 %v630_v59, %v629_v58 }
 0x177   : > { %v632_v63 = vrot.slane %v631_v62, 1 }
 0x179   : > { %v633_v11 = vadd.f32 %v632_v63, %v631_v62 }
 0x17b   : > { %v635_v34 = vadd.f32 %v634_v10, %v633_v11 }
 0x17d   : > { %v637_v14 = vsel %vm636_vm10, %v635_v34, -inf }
 0x17e   : > { %638 = vmax.xlane.f32.xlu0 %v637_v14 }
 0x207   : > { %v639_v15 = vpop.xlane.xlu0 %638 }
 0x208   : > { %v640_v26 = vsub.f32 %v635_v34, %v639_v15 }
 0x20a   : > { %v641_v56 = vmul.f32 1.442695, %v640_v26 }
 0x20c   : > { %1488 = vpow2.f32 %v641_v56 }
 0x219   : > { %v1489_v60 = vpop.eup %1488 }
 0x21a   : > { %v643_v35 = vsel %vm636_vm10, %v1489_v60, 0.0 }
 0x21b   : > { %644 = vadd.xlane.f32.xlu1 %v643_v35 }
 0x2a4   : > { %v645_v38 = vpop.xlane.xlu1 %644 }
 0x2a5   : > { %1490 = vrcp.f32 %v645_v38 }
 0x2b2   : > { %v1491_v22 = vpop.eup %1490 }
 0x2b3   : > { %v647_v23 = vmul.f32 %v1491_v22, %v1489_v60 }
 0x2b5   : > { %v660_v52 = vrot.slane %v647_v23, %v659_v42 }
 0x2b7   : > { %v662_v61 = vmul.f32 %v1356_v54, %v660_v52  ;;  %v661_v6 = vmul.f32 %v1355_v57, %v660_v52 }
 0x2b9   : > { %v666_v48 = vsel %vm612_vm9, %v662_v61, 0.0  ;;  %v663_v30 = vsel %vm612_vm9, %v661_v6, 0.0  ;;  %v2212_v61 = vld [vmem:[#allocation4_spill] sm:$0xff] }
 0x2ba   : > { %667 = vadd.xlane.f32.xlu1 %v666_v48  ;;  %664 = vadd.xlane.f32.xlu0 %v663_v30  ;;  %v2213_v48 = vld [vmem:[#allocation6_spill] sm:$0xff] }
 0x343   : > { %v1838_v55 = vpop.xlane.xlu1 %667  ;;  %v1840_v31 = vpop.xlane.xlu0 %664 }
 0x344   : > { %v674_v3 = vrot.slane %v1840_v31, %v659_v42  ;;  %v706_v4 = vrot.slane %v1838_v55, %v659_v42  ;;  %v678_v43 = vrot.slane %v1840_v31, %v677_v39  ;;  %v710_v18 = vrot.slane %v1838_v55, %v677_v39  ;;  %v1145_v39 = vld [vmem:[%s1932_s16 + $0x18] sm:$0x1] }
 0x345   : > { %v682_v62 = vrot.slane %v1840_v31, %v681_v7  ;;  %v714_v11 = vrot.slane %v1838_v55, %v681_v7  ;;  %v1148_v7 = vld [vmem:[%s1932_s16 + $0x60] sm:$0x1] }
 0x346   : > { %v751_v46 = vmul.f32 %v674_v3, %v1557_v1  ;;  %v752_v19 = vmul.f32 %v674_v3, %v1567_v5  ;;  %v767_v58 = vmul.f32 %v706_v4, %v1577_v9  ;;  %v768_v59 = vmul.f32 %v706_v4, %v1574_v8  ;;  %v1149_v3 = vld [vmem:[%s1932_s16 + $0x78] sm:$0x1]  ;;  %v1150_v4 = vld [vmem:[%s1932_s16 + $0x90] sm:$0x1] }
 0x347   : > { %v753_v63 = vmul.f32 %v678_v43, %v1554_v0  ;;  %v769_v10 = vmul.f32 %v710_v18, %v1587_v13  ;;  %v685_v1 = vsub.s32 3, %v1730_v47  ;;  %v754_v5 = vmul.f32 %v678_v43, %v1560_v2  ;;  %v1151_v43 = vld [vmem:[%s1932_s16 + $0xa8] sm:$0x1] }
 0x348   : > { %1428 = vmatprep.mubr.msk.f32.mxu0 %vm312_vm0, %v751_v46  ;;  %1452 = vmatprep.mubr.msk.f32.mxu1 %vm312_vm0, %v767_v58  ;;  %v770_v8 = vmul.f32 %v710_v18, %v1584_v12  ;;  %v689_v0 = vsub.s32 4, %v1730_v47  ;;  %v755_v9 = vmul.f32 %v682_v62, %v1597_v17  ;;  %v771_v13 = vmul.f32 %v714_v11, %v1607_v21  ;;  %v1152_v18 = vld [vmem:[%s1932_s16 + $0xc0] sm:$0x1]  ;;  %v1153_v46 = vld [vmem:[%s1932_s16 + $0xd8] sm:$0x1] }
 0x349   : > { %1429 = vmatmul.mubr.msk.f32.vlgmr.msra.gmra.mxu0 %vm312_vm0, %v752_v19  ;;  %1453 = vmatmul.mubr.msk.f32.vlgmr.msra.gmra.mxu1 %vm312_vm0, %v768_v59  ;;  %v686_v34 = vrot.slane %v1840_v31, %v685_v1  ;;  %v718_v14 = vrot.slane %v1838_v55, %v685_v1  ;;  %v756_v2 = vmul.f32 %v682_v62, %v1594_v16  ;;  %v693_v17 = vsub.s32 5, %v1730_v47  ;;  %v1154_v19 = vld [vmem:[%s1932_s16 + $0xf0] sm:$0x1]  ;;  %v1155_v58 = vld [vmem:[%s1932_s16 + $0x108] sm:$0x1] }
 0x34a   : > { %1431 = vmatprep.mubr.msk.f32.mxu0 %vm312_vm0, %v753_v63  ;;  %1455 = vmatprep.mubr.msk.f32.mxu1 %vm312_vm0, %v769_v10  ;;  %v772_v12 = vmul.f32 %v714_v11, %v1604_v20  ;;  %v690_v26 = vrot.slane %v1840_v31, %v689_v0  ;;  %v722_v56 = vrot.slane %v1838_v55, %v689_v0  ;;  %v1156_v59 = vld [vmem:[%s1932_s16 + $0x120] sm:$0x1]  ;;  %v1157_v62 = vld [vmem:[%s1932_s16 + $0x138] sm:$0x1]  ;;  %v1158_v63 = vld [vmem:[%s1932_s16 + $0x150] sm:$0x1] }
 0x34b   : > { %v757_v21 = vmul.f32 %v686_v34, %v1617_v25  ;;  %v773_v15 = vmul.f32 %v718_v14, %v1627_v29  ;;  %v758_v16 = vmul.f32 %v686_v34, %v1614_v24  ;;  %v774_v20 = vmul.f32 %v718_v14, %v1624_v28  ;;  %v1159_v10 = vld [vmem:[%s1932_s16 + $0x168] sm:$0x1]  ;;  %v1990_v11 = vld [vmem:[%s2193_s4] ss:$0 sm:$0xff] }
 0x34c   : > { %v697_v25 = vsub.s32 6, %v1730_v47  ;;  %v759_v29 = vmul.f32 %v690_v26, %v1637_v33  ;;  %v775_v60 = vmul.f32 %v722_v56, %v1647_v37  ;;  %v694_v35 = vrot.slane %v1840_v31, %v693_v17 }
 0x34d   : > { %1432 = vmatmul.mubr.msk.f32.gmra.mxu0 %vm312_vm0, %v754_v5  ;;  %1456 = vmatmul.mubr.msk.f32.gmra.mxu1 %vm312_vm0, %v770_v8  ;;  %v726_v38 = vrot.slane %v1838_v55, %v693_v17  ;;  %v760_v24 = vmul.f32 %v690_v26, %v1634_v32  ;;  %v776_v28 = vmul.f32 %v722_v56, %v1644_v36  ;;  %v701_v33 = vsub.s32 7, %v1730_v47 }
 0x34e   : > { %1434 = vmatprep.mubr.msk.f32.mxu0 %vm312_vm0, %v755_v9  ;;  %1458 = vmatprep.mubr.msk.f32.mxu1 %vm312_vm0, %v771_v13  ;;  %v761_v37 = vmul.f32 %v694_v35, %v1657_v41  ;;  %v698_v42 = vrot.slane %v1840_v31, %v697_v25  ;;  %v730_v22 = vrot.slane %v1838_v55, %v697_v25 }
 0x34f   : > { %v777_v27 = vmul.f32 %v726_v38, %v1667_v45  ;;  %v762_v32 = vmul.f32 %v694_v35, %v1654_v40  ;;  %v778_v36 = vmul.f32 %v726_v38, %v1664_v44  ;;  %v702_v47 = vrot.slane %v1840_v31, %v701_v33  ;;  %v2208_v40 = vld [vmem:[#allocation2_spill] sm:$0xff]  ;;  %v2209_v44 = vld [vmem:[#allocation3_spill] sm:$0xff] }
 0x350   : > { %v763_v41 = vmul.f32 %v698_v42, %v1677_v49  ;;  %v779_v45 = vmul.f32 %v730_v22, %v1687_v53  ;;  %v734_v23 = vrot.slane %v1838_v55, %v701_v33  ;;  %v764_v51 = vmul.f32 %v698_v42, %v2208_v40  ;;  %v2210_v49 = vld [vmem:[#allocation5_spill] sm:$0xff]  ;;  %v2211_v53 = vld [vmem:[#allocation7_spill] sm:$0xff]  ;;  %v1146_v55 = vld [vmem:[%s1932_s16 + $0x30] sm:$0x1] }
 0x351   : > { %1435 = vmatmul.mubr.msk.f32.gmra.mxu0 %vm312_vm0, %v756_v2  ;;  %1459 = vmatmul.mubr.msk.f32.gmra.mxu1 %vm312_vm0, %v772_v12  ;;  %v780_v54 = vmul.f32 %v730_v22, %v2209_v44  ;;  %v765_v57 = vmul.f32 %v702_v47, %v2210_v49  ;;  %v766_v6 = vmul.f32 %v702_v47, %v2212_v61  ;;  %v1147_v31 = vld [vmem:[%s1932_s16 + $0x48] sm:$0x1] }
 0x352   : > { %1437 = vmatprep.mubr.msk.f32.mxu0 %vm312_vm0, %v757_v21  ;;  %1461 = vmatprep.mubr.msk.f32.mxu1 %vm312_vm0, %v773_v15  ;;  %v781_v52 = vmul.f32 %v734_v23, %v2211_v53  ;;  %v782_v30 = vmul.f32 %v734_v23, %v2213_v48  ;;  %1161 = vst.msk [vmem:[%s1946_s19] sm:$0x1] %vm1160_vm13, %v1144_v50  ;;  %1162 = vst.msk [vmem:[%s1946_s19 + $0x18] sm:$0x1] %vm1160_vm13, %v1145_v39 }
 0x353   : > { %1163 = vst.msk [vmem:[%s1946_s19 + $0x30] sm:$0x1] %vm1160_vm13, %v1146_v55  ;;  %1164 = vst.msk [vmem:[%s1946_s19 + $0x48] sm:$0x1] %vm1160_vm13, %v1147_v31 }
 0x354   : > { %1165 = vst.msk [vmem:[%s1946_s19 + $0x60] sm:$0x1] %vm1160_vm13, %v1148_v7  ;;  %1166 = vst.msk [vmem:[%s1946_s19 + $0x78] sm:$0x1] %vm1160_vm13, %v1149_v3 }
 0x355   : > { %1438 = vmatmul.mubr.msk.f32.gmra.mxu0 %vm312_vm0, %v758_v16  ;;  %1462 = vmatmul.mubr.msk.f32.gmra.mxu1 %vm312_vm0, %v774_v20  ;;  %1167 = vst.msk [vmem:[%s1946_s19 + $0x90] sm:$0x1] %vm1160_vm13, %v1150_v4  ;;  %1168 = vst.msk [vmem:[%s1946_s19 + $0xa8] sm:$0x1] %vm1160_vm13, %v1151_v43 }
 0x356   : > { %1440 = vmatprep.mubr.msk.f32.mxu0 %vm312_vm0, %v759_v29  ;;  %1464 = vmatprep.mubr.msk.f32.mxu1 %vm312_vm0, %v775_v60  ;;  %1169 = vst.msk [vmem:[%s1946_s19 + $0xc0] sm:$0x1] %vm1160_vm13, %v1152_v18  ;;  %1170 = vst.msk [vmem:[%s1946_s19 + $0xd8] sm:$0x1] %vm1160_vm13, %v1153_v46 }
 0x357   : > { %1171 = vst.msk [vmem:[%s1946_s19 + $0xf0] sm:$0x1] %vm1160_vm13, %v1154_v19  ;;  %1172 = vst.msk [vmem:[%s1946_s19 + $0x108] sm:$0x1] %vm1160_vm13, %v1155_v58 }
 0x358   : > { %1173 = vst.msk [vmem:[%s1946_s19 + $0x120] sm:$0x1] %vm1160_vm13, %v1156_v59  ;;  %1174 = vst.msk [vmem:[%s1946_s19 + $0x138] sm:$0x1] %vm1160_vm13, %v1157_v62 }
 0x359   : > { %1441 = vmatmul.mubr.msk.f32.gmra.mxu0 %vm312_vm0, %v760_v24  ;;  %1465 = vmatmul.mubr.msk.f32.gmra.mxu1 %vm312_vm0, %v776_v28  ;;  %1175 = vst.msk [vmem:[%s1946_s19 + $0x150] sm:$0x1] %vm1160_vm13, %v1158_v63  ;;  %1176 = vst.msk [vmem:[%s1946_s19 + $0x168] sm:$0x1] %vm1160_vm13, %v1159_v10 }
 0x35a   : > { %1443 = vmatprep.mubr.msk.f32.mxu0 %vm312_vm0, %v761_v37  ;;  %1467 = vmatprep.mubr.msk.f32.mxu1 %vm312_vm0, %v777_v27 }
 0x35d   : > { %1444 = vmatmul.mubr.msk.f32.gmra.mxu0 %vm312_vm0, %v762_v32  ;;  %1468 = vmatmul.mubr.msk.f32.gmra.mxu1 %vm312_vm0, %v778_v36 }
 0x35e   : > { %1446 = vmatprep.mubr.msk.f32.mxu0 %vm312_vm0, %v763_v41  ;;  %1470 = vmatprep.mubr.msk.f32.mxu1 %vm312_vm0, %v779_v45 }
 0x360   : > { %v1178_v1 = vld [vmem:[%s1932_s16 + $0x9] sm:$0xff]  ;;  %v1177_v9 = vld [vmem:[%s1932_s16 + $0x1] sm:$0xff]  ;;  %v1179_v2 = vld [vmem:[%s1932_s16 + $0x19] sm:$0xff] }
 0x361   : > { %1447 = vmatmul.mubr.msk.f32.gmra.mxu0 %vm312_vm0, %v764_v51  ;;  %1471 = vmatmul.mubr.msk.f32.gmra.mxu1 %vm312_vm0, %v780_v54  ;;  %v1194_v5 = vld [vmem:[%s1932_s16 + $0xc9] sm:$0xff]  ;;  %v1193_v13 = vld [vmem:[%s1932_s16 + $0xc1] sm:$0xff]  ;;  %v1195_v12 = vld [vmem:[%s1932_s16 + $0xd9] sm:$0xff] }
 0x362   : > { %1449 = vmatprep.mubr.msk.f32.mxu0 %vm312_vm0, %v765_v57  ;;  %1473 = vmatprep.mubr.msk.f32.mxu1 %vm312_vm0, %v781_v52  ;;  %v1180_v34 = vld [vmem:[%s1932_s16 + $0x21] sm:$0xff]  ;;  %v1182_v17 = vld [vmem:[%s1932_s16 + $0x39] sm:$0xff]  ;;  %v2003_v15 = vld [vmem:[%s1932_s16 + $0x31] sm:$0xff] }
 0x363   : > { %v1196_v14 = vld [vmem:[%s1932_s16 + $0xe1] sm:$0xff]  ;;  %v1198_v21 = vld [vmem:[%s1932_s16 + $0xf9] sm:$0xff]  ;;  %v2006_v26 = vld [vmem:[%s1932_s16 + $0xf1] sm:$0xff] }
 0x364   : > { %v2009_v56 = vld [vmem:[%s1932_s16 + $0x51] sm:$0xff]  ;;  %v2015_v20 = vld [vmem:[%s1932_s16 + $0x49] sm:$0xff]  ;;  %v2027_v35 = vld [vmem:[%s1932_s16 + $0x61] sm:$0xff] }
 0x365   : > { %1450 = vmatmul.mubr.msk.f32.gmra.mxu0 %vm312_vm0, %v766_v6  ;;  %1474 = vmatmul.mubr.msk.f32.gmra.mxu1 %vm312_vm0, %v782_v30  ;;  %v2012_v16 = vld [vmem:[%s1932_s16 + $0x111] sm:$0xff]  ;;  %v2018_v25 = vld [vmem:[%s1932_s16 + $0x109] sm:$0xff]  ;;  %v2030_v38 = vld [vmem:[%s1932_s16 + $0x121] sm:$0xff] }
 0x366   : > { %v2021_v29 = vld [vmem:[%s1932_s16 + $0x69] sm:$0xff]  ;;  %v2033_v24 = vld [vmem:[%s1932_s16 + $0x81] sm:$0xff]  ;;  %v2039_v33 = vld [vmem:[%s1932_s16 + $0x79] sm:$0xff] }
 0x367   : > { %v2024_v60 = vld [vmem:[%s1932_s16 + $0x129] sm:$0xff]  ;;  %v2036_v28 = vld [vmem:[%s1932_s16 + $0x141] sm:$0xff]  ;;  %v2042_v37 = vld [vmem:[%s1932_s16 + $0x139] sm:$0xff] }
 0x368   : > { %v2045_v27 = vld [vmem:[%s1932_s16 + $0x99] sm:$0xff]  ;;  %v2053_v36 = vld [vmem:[%s1932_s16 + $0x91] sm:$0xff]  ;;  %v2065_v51 = vld [vmem:[%s1932_s16 + $0xa9] sm:$0xff] }
 0x369   : > { %v2048_v42 = vld [vmem:[%s1932_s16 + $0x159] sm:$0xff]  ;;  %v2056_v41 = vld [vmem:[%s1932_s16 + $0x151] sm:$0xff]  ;;  %v2068_v44 = vld [vmem:[%s1932_s16 + $0x169] sm:$0xff] }
 0x36a   : > { %v2059_v45 = vld [vmem:[%s1932_s16 + $0xb1] sm:$0xff] }
 0x36b   : > { %v2062_v40 = vld [vmem:[%s1932_s16 + $0x171] sm:$0xff] }
 0x409   : > { %v1430_v8 = vpop.f32.mrf.mxu0  ;;  %v1454_v0 = vpop.f32.mrf.mxu1 }
 0x40a   : > { %v1113_v22 = vadd.f32 %v1430_v8, %v1990_v11  ;;  %v1129_v32 = vadd.f32 %v1454_v0, %v1990_v11 }
 0x40b   : > { %v946_v47 = vpop.f32.mrf.mxu0  ;;  %v1026_v23 = vpop.f32.mrf.mxu1 }
 0x40c   : > { %v1210_v54 = vadd.f32 %v1178_v1, %v1113_v22  ;;  %v1226_v49 = vadd.f32 %v1194_v5, %v1129_v32  ;;  %v1112_v57 = vadd.f32 %v1990_v11, %v946_v47  ;;  %v1128_v53 = vadd.f32 %v1990_v11, %v1026_v23 }
 0x40d   : > { %v1433_v52 = vpop.f32.mrf.mxu0  ;;  %v1457_v61 = vpop.f32.mrf.mxu1 }
 0x40e   : > { %v1209_v6 = vadd.f32 %v1177_v9, %v1112_v57  ;;  %v1225_v48 = vadd.f32 %v1193_v13, %v1128_v53  ;;  %v1115_v30 = vadd.f32 %v1433_v52, %v1990_v11  ;;  %v1131_v50 = vadd.f32 %v1457_v61, %v1990_v11  ;;  %1243 = vst.msk [vmem:[%s1946_s19 + $0x9] sm:$0xff] %vm1241_vm14, %v1210_v54 }
 0x40f   : > { %1259 = vst.msk [vmem:[%s1946_s19 + $0xc9] sm:$0xff] %vm1241_vm14, %v1226_v49  ;;  %v956_v39 = vpop.f32.mrf.mxu0  ;;  %v1036_v55 = vpop.f32.mrf.mxu1 }
 0x410   : > { %v1212_v31 = vadd.f32 %v1180_v34, %v1115_v30  ;;  %v1228_v7 = vadd.f32 %v1196_v14, %v1131_v50  ;;  %v1114_v3 = vadd.f32 %v1990_v11, %v956_v39  ;;  %v1130_v4 = vadd.f32 %v1990_v11, %v1036_v55  ;;  %1242 = vst.msk [vmem:[%s1946_s19 + $0x1] sm:$0xff] %vm1241_vm14, %v1209_v6 }
 0x411   : > { %1258 = vst.msk [vmem:[%s1946_s19 + $0xc1] sm:$0xff] %vm1241_vm14, %v1225_v48  ;;  %v1436_v43 = vpop.f32.mrf.mxu0  ;;  %v1460_v18 = vpop.f32.mrf.mxu1 }
 0x412   : > { %v1211_v46 = vadd.f32 %v1179_v2, %v1114_v3  ;;  %v1227_v19 = vadd.f32 %v1195_v12, %v1130_v4  ;;  %v1117_v58 = vadd.f32 %v1436_v43, %v1990_v11  ;;  %v1133_v59 = vadd.f32 %v1460_v18, %v1990_v11  ;;  %1245 = vst.msk [vmem:[%s1946_s19 + $0x21] sm:$0xff] %vm1241_vm14, %v1212_v31 }
 0x413   : > { %1261 = vst.msk [vmem:[%s1946_s19 + $0xe1] sm:$0xff] %vm1241_vm14, %v1228_v7  ;;  %v966_v62 = vpop.f32.mrf.mxu0  ;;  %v1046_v63 = vpop.f32.mrf.mxu1 }
 0x414   : > { %v1214_v10 = vadd.f32 %v1182_v17, %v1117_v58  ;;  %v1230_v1 = vadd.f32 %v1198_v21, %v1133_v59  ;;  %v1116_v5 = vadd.f32 %v1990_v11, %v966_v62  ;;  %v1132_v8 = vadd.f32 %v1990_v11, %v1046_v63  ;;  %1244 = vst.msk [vmem:[%s1946_s19 + $0x19] sm:$0xff] %vm1241_vm14, %v1211_v46 }
 0x415   : > { %1260 = vst.msk [vmem:[%s1946_s19 + $0xd9] sm:$0xff] %vm1241_vm14, %v1227_v19  ;;  %v1439_v0 = vpop.f32.mrf.mxu0  ;;  %v1463_v9 = vpop.f32.mrf.mxu1 }
 0x416   : > { %v1213_v13 = vadd.f32 %v2003_v15, %v1116_v5  ;;  %v1229_v34 = vadd.f32 %v2006_v26, %v1132_v8  ;;  %v1119_v14 = vadd.f32 %v1439_v0, %v1990_v11  ;;  %v1135_v2 = vadd.f32 %v1463_v9, %v1990_v11  ;;  %1247 = vst.msk [vmem:[%s1946_s19 + $0x39] sm:$0xff] %vm1241_vm14, %v1214_v10 }
 0x417   : > { %1263 = vst.msk [vmem:[%s1946_s19 + $0xf9] sm:$0xff] %vm1241_vm14, %v1230_v1  ;;  %v976_v12 = vpop.f32.mrf.mxu0  ;;  %v1056_v17 = vpop.f32.mrf.mxu1 }
 0x418   : > { %v1216_v21 = vadd.f32 %v2009_v56, %v1119_v14  ;;  %v1232_v22 = vadd.f32 %v2012_v16, %v1135_v2  ;;  %v1118_v15 = vadd.f32 %v1990_v11, %v976_v12  ;;  %v1134_v26 = vadd.f32 %v1990_v11, %v1056_v17  ;;  %1246 = vst.msk [vmem:[%s1946_s19 + $0x31] sm:$0xff] %vm1241_vm14, %v1213_v13 }
 0x419   : > { %1262 = vst.msk [vmem:[%s1946_s19 + $0xf1] sm:$0xff] %vm1241_vm14, %v1229_v34  ;;  %v1442_v32 = vpop.f32.mrf.mxu0  ;;  %v1466_v47 = vpop.f32.mrf.mxu1 }
 0x41a   : > { %v1215_v23 = vadd.f32 %v2015_v20, %v1118_v15  ;;  %v1231_v54 = vadd.f32 %v2018_v25, %v1134_v26  ;;  %v1121_v56 = vadd.f32 %v1442_v32, %v1990_v11  ;;  %v1137_v16 = vadd.f32 %v1466_v47, %v1990_v11  ;;  %1249 = vst.msk [vmem:[%s1946_s19 + $0x51] sm:$0xff] %vm1241_vm14, %v1216_v21 }
 0x41b   : > { %1265 = vst.msk [vmem:[%s1946_s19 + $0x111] sm:$0xff] %vm1241_vm14, %v1232_v22  ;;  %v986_v49 = vpop.f32.mrf.mxu0  ;;  %v1066_v57 = vpop.f32.mrf.mxu1 }
 0x41c   : > { %v1218_v53 = vadd.f32 %v2021_v29, %v1121_v56  ;;  %v1234_v52 = vadd.f32 %v2024_v60, %v1137_v16  ;;  %v1120_v20 = vadd.f32 %v1990_v11, %v986_v49  ;;  %v1136_v25 = vadd.f32 %v1990_v11, %v1066_v57  ;;  %1248 = vst.msk [vmem:[%s1946_s19 + $0x49] sm:$0xff] %vm1241_vm14, %v1215_v23 }
 0x41d   : > { %1264 = vst.msk [vmem:[%s1946_s19 + $0x109] sm:$0xff] %vm1241_vm14, %v1231_v54  ;;  %v1445_v61 = vpop.f32.mrf.mxu0  ;;  %v1469_v6 = vpop.f32.mrf.mxu1 }
 0x41e   : > { %v1217_v48 = vadd.f32 %v2027_v35, %v1120_v20  ;;  %v1233_v30 = vadd.f32 %v2030_v38, %v1136_v25  ;;  %v1123_v29 = vadd.f32 %v1445_v61, %v1990_v11  ;;  %v1139_v60 = vadd.f32 %v1469_v6, %v1990_v11  ;;  %1251 = vst.msk [vmem:[%s1946_s19 + $0x69] sm:$0xff] %vm1241_vm14, %v1218_v53 }
 0x41f   : > { %1267 = vst.msk [vmem:[%s1946_s19 + $0x129] sm:$0xff] %vm1241_vm14, %v1234_v52  ;;  %v996_v50 = vpop.f32.mrf.mxu0  ;;  %v1076_v39 = vpop.f32.mrf.mxu1 }
 0x420   : > { %v1220_v55 = vadd.f32 %v2033_v24, %v1123_v29  ;;  %v1236_v31 = vadd.f32 %v2036_v28, %v1139_v60  ;;  %v1122_v35 = vadd.f32 %v1990_v11, %v996_v50  ;;  %v1138_v38 = vadd.f32 %v1990_v11, %v1076_v39  ;;  %1250 = vst.msk [vmem:[%s1946_s19 + $0x61] sm:$0xff] %vm1241_vm14, %v1217_v48 }
 0x421   : > { %1266 = vst.msk [vmem:[%s1946_s19 + $0x121] sm:$0xff] %vm1241_vm14, %v1233_v30  ;;  %v1448_v7 = vpop.f32.mrf.mxu0  ;;  %v1472_v3 = vpop.f32.mrf.mxu1 }
 0x422   : > { %v1219_v4 = vadd.f32 %v2039_v33, %v1122_v35  ;;  %v1235_v43 = vadd.f32 %v2042_v37, %v1138_v38  ;;  %v1125_v24 = vadd.f32 %v1448_v7, %v1990_v11  ;;  %v1141_v28 = vadd.f32 %v1472_v3, %v1990_v11  ;;  %1253 = vst.msk [vmem:[%s1946_s19 + $0x81] sm:$0xff] %vm1241_vm14, %v1220_v55 }
 0x423   : > { %1269 = vst.msk [vmem:[%s1946_s19 + $0x141] sm:$0xff] %vm1241_vm14, %v1236_v31  ;;  %v1006_v18 = vpop.f32.mrf.mxu0  ;;  %v1086_v46 = vpop.f32.mrf.mxu1 }
 0x424   : > { %v1222_v19 = vadd.f32 %v2045_v27, %v1125_v24  ;;  %v1238_v58 = vadd.f32 %v2048_v42, %v1141_v28  ;;  %v1124_v33 = vadd.f32 %v1990_v11, %v1006_v18  ;;  %v1140_v37 = vadd.f32 %v1990_v11, %v1086_v46  ;;  %1252 = vst.msk [vmem:[%s1946_s19 + $0x79] sm:$0xff] %vm1241_vm14, %v1219_v4 }
 0x425   : > { %1268 = vst.msk [vmem:[%s1946_s19 + $0x139] sm:$0xff] %vm1241_vm14, %v1235_v43  ;;  %v1451_v59 = vpop.f32.mrf.mxu0  ;;  %v1475_v62 = vpop.f32.mrf.mxu1 }
 0x426   : > { %v1221_v63 = vadd.f32 %v2053_v36, %v1124_v33  ;;  %v1237_v10 = vadd.f32 %v2056_v41, %v1140_v37  ;;  %v1127_v27 = vadd.f32 %v1451_v59, %v1990_v11  ;;  %v1143_v42 = vadd.f32 %v1475_v62, %v1990_v11  ;;  %1255 = vst.msk [vmem:[%s1946_s19 + $0x99] sm:$0xff] %vm1241_vm14, %v1222_v19 }
 0x427   : > { %1271 = vst.msk [vmem:[%s1946_s19 + $0x159] sm:$0xff] %vm1241_vm14, %v1238_v58  ;;  %v1016_v1 = vpop.f32.mrf.mxu0  ;;  %v1096_v5 = vpop.f32.mrf.mxu1 }
 0x428   : > { %v1224_v8 = vadd.f32 %v2059_v45, %v1127_v27  ;;  %v1240_v36 = vadd.f32 %v2062_v40, %v1143_v42  ;;  %v1126_v0 = vadd.f32 %v1990_v11, %v1016_v1  ;;  %v1142_v41 = vadd.f32 %v1990_v11, %v1096_v5  ;;  %1254 = vst.msk [vmem:[%s1946_s19 + $0x91] sm:$0xff] %vm1241_vm14, %v1221_v63 }
 0x429   : > { %1270 = vst.msk [vmem:[%s1946_s19 + $0x151] sm:$0xff] %vm1241_vm14, %v1237_v10 }
 0x42a   : > { %v1223_v9 = vadd.f32 %v2065_v51, %v1126_v0  ;;  %v1239_v13 = vadd.f32 %v2068_v44, %v1142_v41  ;;  %1257 = vst.msk [vmem:[%s1946_s19 + $0xb1] sm:$0xff] %vm1241_vm14, %v1224_v8  ;;  %1273 = vst.msk [vmem:[%s1946_s19 + $0x171] sm:$0xff] %vm1241_vm14, %v1240_v36 }
 0x42c   : > { %1256 = vst.msk [vmem:[%s1946_s19 + $0xa9] sm:$0xff] %vm1241_vm14, %v1223_v9  ;;  %1272 = vst.msk [vmem:[%s1946_s19 + $0x169] sm:$0xff] %vm1241_vm14, %v1239_v13 }
 0x42d PF: > { %s16_s21 = sadd.s32 1, %s1498_s21  }
 0x42e   : > { %p13_p5 = scmp.ge.s32.totalorder %s16_s21, 4  }
 0x430   :  { %15 = sbr.rel (!%p13_p5) target bundleno = 1 (0x1), region = 77 }

// kernel: tse_adapter_forward.3
= control target key start
LH: loop header
LB: loop body
LE: loop exit
PB: predicated region body
PF: predicated region fallthrough
CT: control target
= control target key end

     0   :  { %s7736_s12 = smov 0   ;;  %s8970_s0 = inlined_call_operand.vmem [shape: f32[32,17,32], index: 0, kind: input, shape index: {}]   ;;  %s8971_s1 = inlined_call_operand.vmem [shape: f32[32,8], index: 1, kind: input, shape index: {}]   ;;  %s8972_s2 = inlined_call_operand.vmem [shape: f32[1,8], index: 2, kind: input, shape index: {}]   ;;  %s8973_s3 = inlined_call_operand.vmem [shape: f32[32,16,8], index: 3, kind: output, shape index: {}]  }
   0x1 LB: > { %s7431_s13 = sadd.s32 4294967295, %s7713_s12   ;;  %p7435_p0 = scmp.ge.s32.totalorder %s7713_s12, 1  ;;  %s7713_s12 = sphi %s7736_s12, %s13_s12  }
   0x2   : > { %p139_p1 = scmp.lt.s32.totalorder %s7713_s12, 3 }
   0x4   : > { %p140_p2 = pnand %p7435_p0, %p139_p1 }
   0x5   : > { %s7436_s18 = sshll.u32 (!%p140_p2), %s7431_s13, 4 }
   0x6   : > { %143 = sbr.rel (%p140_p2) target bundleno = 456 (0x1c8), region = 32  ;;  %p166_p3 = scmp.lt.s32.totalorder (!%p140_p2), %s7436_s18, 31 }
   0xb   : > { %v2070_v0 = vld [vmem:[%s8971_s1 + $0x18] sm:$0xff]  ;;  %v2069_v1 = vld [vmem:[%s8971_s1 + $0x10] sm:$0xff]  ;;  %v279_v2 = vlaneseq  ;;  %v7715_v3 = vmov 1966171168   ;;  %v2068_v5 = vld [vmem:[%s8971_s1 + $0x8] sm:$0xff]  ;;  %s8975_s18 = smov (!%p166_p3, %s7436_s18), 31 }
   0xc   : > { %7597 = vmatprep.subr.mxu0 %v2070_v0  ;;  %7656 = vmatprep.subr.mxu1 %v2070_v0  ;;  %v277_v4 = vunpack.c.l.s4 %v7715_v3  ;;  %v2067_v8 = vld [vmem:[%s8971_s1] sm:$0xff]  ;;  %s7664_s23 = smul.u32 24, %s8975_s18  ;;  %vm3744_vm0 = vcmask 261120   ;;  %vm7340_vm1 = vcmask 64512   ;;  %s7558_s29 = sshll.u32 %s8975_s18, 4 }
   0xd   : > { %7598 = vmatpush3.msra.mxu0 %v2070_v0  ;;  %7660 = vmatpush3.msra.mxu1 %v2070_v0  ;;  %v280_v6 = vshrl.u32 %v279_v2, 7  ;;  %s8324_s5 = scalar_lea.vmem %s8973_s3, %s7558_s29 }
   0xe   : > { %7599 = vmatprep.subr.mxu0 %v2069_v1  ;;  %7657 = vmatprep.subr.mxu1 %v2069_v1  ;;  %v278_v7 = vunpack.c.0.s8 %v277_v4  ;;  %s7764_s26 = scalar_lea.vmem %s8970_s0, %s7664_s23 }
   0xf   : > { %7600 = vmatpush3.msra.mxu0 %v2069_v1  ;;  %7661 = vmatpush3.msra.mxu1 %v2069_v1  ;;  %v179_v10 = vld [vmem:[%s7764_s26] sm:$0xff]  ;;  %v204_v11 = vld [vmem:[%s7764_s26 + $0xc8] sm:$0xff]  ;;  %v7772_v17 = vld.sshfl [vmem:[%s7764_s26 + $0xd0] sm:$0x1 pattern:$0x75316420] }
  0x10   : > { %7601 = vmatprep.subr.mxu0 %v2068_v5  ;;  %7658 = vmatprep.subr.mxu1 %v2068_v5  ;;  %v7759_v9 = vsub.s32 %v278_v7, %v280_v6  ;;  %v180_v12 = vld [vmem:[%s7764_s26 + $0x8] sm:$0xff]  ;;  %v275_v13 = vcombine.high %v179_v10, %v179_v10  ;;  %v1220_v15 = vcombine.high %v204_v11, %v204_v11  ;;  %v206_v18 = vld [vmem:[%s7764_s26 + $0xd8] sm:$0xff]  ;;  %v7441_v3 = vld.sshfl [vmem:[%s7764_s26 + $0x10] sm:$0x1 pattern:$0x75316420] }
  0x11   : > { %7602 = vmatpush3.msra.mxu0 %v2068_v5  ;;  %7662 = vmatpush3.msra.mxu1 %v2068_v5  ;;  %v324_v19 = vcombine.high %v180_v12, %v180_v12  ;;  %v1283_v22 = vcombine.high %v206_v18, %v206_v18 }
  0x12   : > { %7603 = vmatprep.subr.mxu0 %v2067_v8  ;;  %7659 = vmatprep.subr.mxu1 %v2067_v8  ;;  %v282_v14 = vrot.slane %v179_v10, %v7759_v9  ;;  %v1227_v16 = vrot.slane %v204_v11, %v7759_v9  ;;  %v331_v20 = vrot.slane %v180_v12, %v7759_v9 }
  0x13   : > { %7604 = vmatpush3.msra.mxu0 %v2067_v8  ;;  %7663 = vmatpush3.msra.mxu1 %v2067_v8  ;;  %v1282_v21 = vrot.slane %v7772_v17, %v7759_v9  ;;  %v289_v23 = vrot.slane %v275_v13, %v7759_v9  ;;  %v1234_v26 = vrot.slane %v1220_v15, %v7759_v9 }
  0x14   : > { %v290_v24 = vcombine.high %v282_v14, %v282_v14  ;;  %v298_v25 = vrot.slane %v282_v14, %v7759_v9  ;;  %v1235_v27 = vcombine.high %v1227_v16, %v1227_v16  ;;  %v1243_v28 = vrot.slane %v1227_v16, %v7759_v9 }
  0x15   : > { %v338_v29 = vrot.slane %v324_v19, %v7759_v9  ;;  %v339_v30 = vcombine.high %v331_v20, %v331_v20  ;;  %v291_v31 = vcombine.high %v289_v23, %v289_v23  ;;  %v305_v32 = vrot.slane %v289_v23, %v7759_v9 }
  0x16   : > { %v312_v33 = vrot.slane %v290_v24, %v7759_v9  ;;  %v1236_v34 = vcombine.high %v1234_v26, %v1234_v26  ;;  %v1250_v35 = vrot.slane %v1234_v26, %v7759_v9  ;;  %v1257_v36 = vrot.slane %v1235_v27, %v7759_v9 }
  0x17   : > { %v340_v37 = vcombine.high %v338_v29, %v338_v29  ;;  %v347_v38 = vrot.slane %v331_v20, %v7759_v9  ;;  %v319_v39 = vrot.slane %v291_v31, %v7759_v9  ;;  %v354_v45 = vrot.slane %v338_v29, %v7759_v9 }
  0x18   : > { %v2078_v40 = vcombine.low %v298_v25, %v312_v33  ;;  %v7458_v41 = vcombine.high %v298_v25, %v312_v33  ;;  %v1264_v42 = vrot.slane %v1236_v34, %v7759_v9  ;;  %v2960_v43 = vcombine.low %v1243_v28, %v1257_v36  ;;  %v182_v25 = vld [vmem:[%s7764_s26 + $0x18] sm:$0xff] }
  0x19   : > { %v7476_v44 = vcombine.high %v1243_v28, %v1257_v36  ;;  %v361_v46 = vrot.slane %v339_v30, %v7759_v9  ;;  %v2080_v47 = vcombine.low %v305_v32, %v319_v39  ;;  %v7459_v48 = vcombine.high %v305_v32, %v319_v39 }
  0x1a   : > { %v2088_v49 = vrot.slane %v2078_v40, %v7759_v9  ;;  %v2095_v50 = vrot.slane %v7458_v41, %v7759_v9  ;;  %v2962_v51 = vcombine.low %v1250_v35, %v1264_v42  ;;  %v7477_v52 = vcombine.high %v1250_v35, %v1264_v42  ;;  %v207_v40 = vld [vmem:[%s7764_s26 + $0xe0] sm:$0xff] }
  0x1b   : > { %v2970_v53 = vrot.slane %v2960_v43, %v7759_v9  ;;  %v2977_v54 = vrot.slane %v7476_v44, %v7759_v9  ;;  %v2102_v55 = vrot.slane %v2080_v47, %v7759_v9  ;;  %v2109_v56 = vrot.slane %v7459_v48, %v7759_v9 }
  0x1c   : > { %v2110_v57 = vcombine.low %v2088_v49, %v2095_v50  ;;  %v368_v58 = vrot.slane %v340_v37, %v7759_v9  ;;  %v2984_v59 = vrot.slane %v2962_v51, %v7759_v9  ;;  %v2991_v60 = vrot.slane %v7477_v52, %v7759_v9 }
  0x1d   : > { %v2992_v61 = vcombine.low %v2970_v53, %v2977_v54  ;;  %v2127_v62 = vcombine.low %v347_v38, %v361_v46  ;;  %v2111_v63 = vcombine.low %v2102_v55, %v2109_v56  ;;  %v7460_v1 = vcombine.high %v347_v38, %v361_v46 }
  0x1e   : > { %v2118_v0 = vrot.slane %v2110_v57, %v7759_v9  ;;  %v2129_v2 = vcombine.low %v354_v45, %v368_v58  ;;  %v2993_v4 = vcombine.low %v2984_v59, %v2991_v60  ;;  %v7461_v6 = vcombine.high %v354_v45, %v368_v58 }
  0x1f   : > { %v3000_v5 = vrot.slane %v2992_v61, %v7759_v9  ;;  %v2137_v7 = vrot.slane %v2127_v62, %v7759_v9  ;;  %v2125_v8 = vrot.slane %v2111_v63, %v7759_v9  ;;  %v2144_v10 = vrot.slane %v7460_v1, %v7759_v9 }
  0x20   : > { %v2151_v11 = vrot.slane %v2129_v2, %v7759_v9  ;;  %v1290_v12 = vrot.slane %v206_v18, %v7759_v9  ;;  %v3007_v13 = vrot.slane %v2993_v4, %v7759_v9  ;;  %v2158_v14 = vrot.slane %v7461_v6, %v7759_v9 }
  0x21   : > { %v1297_v15 = vrot.slane %v1283_v22, %v7759_v9  ;;  %v386_v16 = vrot.slane %v7441_v3, %v7759_v9  ;;  %v2126_v19 = vcombine.low %v2118_v0, %v2125_v8  ;;  %v2159_v20 = vcombine.low %v2137_v7, %v2144_v10 }
  0x22   : > { %v1298_v23 = vcombine.high %v1290_v12, %v1290_v12  ;;  %v1306_v24 = vrot.slane %v1290_v12, %v7759_v9  ;;  %v3008_v26 = vcombine.low %v3000_v5, %v3007_v13  ;;  %v2160_v27 = vcombine.low %v2151_v11, %v2158_v14 }
  0x23   : > { %v1299_v28 = vcombine.high %v1297_v15, %v1297_v15  ;;  %v1313_v18 = vrot.slane %v1297_v15, %v7759_v9  ;;  %7605 = vmatprep.mubr.msk.f32.mxu0 %vm3744_vm0, %v2126_v19  ;;  %v2167_v29 = vrot.slane %v2159_v20, %v7759_v9  ;;  %v387_v35 = vcombine.high %v182_v25, %v182_v25 }
  0x24   : > { %v1320_v22 = vrot.slane %v1298_v23, %v7759_v9  ;;  %v1328_v30 = vcombine.high %v1306_v24, %v1306_v24  ;;  %v3009_v31 = vcombine.low %v1282_v21, %v1306_v24  ;;  %7632 = vmatprep.mubr.msk.f32.mxu1 %vm3744_vm0, %v3008_v26  ;;  %v2174_v32 = vrot.slane %v2160_v27, %v7759_v9 }
  0x25   : > { %v1327_v33 = vrot.slane %v1299_v28, %v7759_v9  ;;  %v1329_v34 = vcombine.high %v1313_v18, %v1313_v18  ;;  %v394_v39 = vrot.slane %v182_v25, %v7759_v9  ;;  %v401_v17 = vrot.slane %v387_v35, %v7759_v9  ;;  %v209_v35 = vld [vmem:[%s7764_s26 + $0xf0] sm:$0xff] }
  0x26   : > { %v1330_v36 = vcombine.high %v1320_v22, %v1320_v22  ;;  %v3010_v37 = vcombine.low %v1320_v22, %v1328_v30  ;;  %v3019_v38 = vrot.slane %v3009_v31, %v7759_v9  ;;  %v2175_v41 = vcombine.low %v2167_v29, %v2174_v32 }
  0x27   : > { %v3012_v42 = vcombine.low %v1327_v33, %v1329_v34  ;;  %v1331_v21 = vcombine.high %v1327_v33, %v1327_v33  ;;  %v402_v45 = vcombine.high %v394_v39, %v394_v39  ;;  %v410_v46 = vrot.slane %v394_v39, %v7759_v9 }
  0x28   : > { %v3011_v43 = vcombine.low %v1330_v36, %v1313_v18  ;;  %v3026_v44 = vrot.slane %v3010_v37, %v7759_v9  ;;  %7606 = vmatmul.mubr.msk.f32.vlgmr.msra.gmra.mxu0 %vm3744_vm0, %v2175_v41  ;;  %v403_v48 = vcombine.high %v401_v17, %v401_v17  ;;  %v417_v49 = vrot.slane %v401_v17, %v7759_v9  ;;  %v7450_v18 = vld.sshfl [vmem:[%s7764_s26 + $0xe8] sm:$0x1 pattern:$0x75316420] }
  0x29   : > { %v3040_v47 = vrot.slane %v3012_v42, %v7759_v9  ;;  %v1332_v50 = vcombine.high %v207_v40, %v207_v40  ;;  %v424_v53 = vrot.slane %v402_v45, %v7759_v9  ;;  %v432_v54 = vcombine.high %v410_v46, %v410_v46 }
  0x2a   : > { %v3033_v51 = vrot.slane %v3011_v43, %v7759_v9  ;;  %v3041_v52 = vcombine.low %v3019_v38, %v3026_v44  ;;  %v431_v55 = vrot.slane %v403_v48, %v7759_v9  ;;  %v433_v56 = vcombine.high %v417_v49, %v417_v49 }
  0x2b   : > { %v2176_v57 = vcombine.low %v386_v16, %v410_v46  ;;  %v1339_v58 = vrot.slane %v207_v40, %v7759_v9  ;;  %v434_v61 = vcombine.high %v424_v53, %v424_v53  ;;  %v2177_v62 = vcombine.low %v424_v53, %v432_v54  ;;  %v183_v16 = vld [vmem:[%s7764_s26 + $0x20] sm:$0xff] }
  0x2c   : > { %v3042_v59 = vcombine.low %v3033_v51, %v3040_v47  ;;  %v3049_v60 = vrot.slane %v3041_v52, %v7759_v9  ;;  %v2179_v63 = vcombine.low %v431_v55, %v433_v56  ;;  %v1346_v1 = vrot.slane %v1332_v50, %v7759_v9 }
  0x2d   : > { %v2186_v0 = vrot.slane %v2176_v57, %v7759_v9  ;;  %v1347_v2 = vcombine.high %v1339_v58, %v1339_v58  ;;  %v2178_v4 = vcombine.low %v434_v61, %v417_v49  ;;  %v2193_v5 = vrot.slane %v2177_v62, %v7759_v9 }
  0x2e   : > { %v3056_v3 = vrot.slane %v3042_v59, %v7759_v9  ;;  %v1355_v6 = vrot.slane %v1339_v58, %v7759_v9  ;;  %v2207_v7 = vrot.slane %v2179_v63, %v7759_v9  ;;  %v1348_v8 = vcombine.high %v1346_v1, %v1346_v1  ;;  %v7442_v63 = vld.sshfl [vmem:[%s7764_s26 + $0x28] sm:$0x1 pattern:$0x75316420] }
  0x2f   : > { %v1362_v10 = vrot.slane %v1346_v1, %v7759_v9  ;;  %v1369_v11 = vrot.slane %v1347_v2, %v7759_v9  ;;  %v2200_v13 = vrot.slane %v2178_v4, %v7759_v9  ;;  %v2208_v14 = vcombine.low %v2186_v0, %v2193_v5  ;;  %v185_v4 = vld [vmem:[%s7764_s26 + $0x30] sm:$0xff] }
  0x30   : > { %v3057_v12 = vcombine.low %v3049_v60, %v3056_v3  ;;  %v1377_v15 = vcombine.high %v1355_v6, %v1355_v6  ;;  %v1376_v19 = vrot.slane %v1348_v8, %v7759_v9  ;;  %v3058_v24 = vcombine.low %v1331_v21, %v1355_v6 }
  0x31   : > { %v1378_v20 = vcombine.high %v1362_v10, %v1362_v10  ;;  %v1379_v23 = vcombine.high %v1369_v11, %v1369_v11  ;;  %v2209_v25 = vcombine.low %v2200_v13, %v2207_v7  ;;  %v2216_v26 = vrot.slane %v2208_v14, %v7759_v9 }
  0x32   : > { %7633 = vmatmul.mubr.msk.f32.vlgmr.msra.gmra.mxu1 %vm3744_vm0, %v3057_v12  ;;  %v3059_v27 = vcombine.low %v1369_v11, %v1377_v15  ;;  %v435_v28 = vcombine.high %v431_v55, %v431_v55  ;;  %v3068_v30 = vrot.slane %v3058_v24, %v7759_v9  ;;  %v436_v31 = vcombine.high %v183_v16, %v183_v16 }
  0x33   : > { %v3060_v29 = vcombine.low %v1379_v23, %v1362_v10  ;;  %v3061_v22 = vcombine.low %v1376_v19, %v1378_v20  ;;  %v2223_v32 = vrot.slane %v2209_v25, %v7759_v9  ;;  %v443_v34 = vrot.slane %v183_v16, %v7759_v9 }
  0x34   : > { %v3075_v33 = vrot.slane %v3059_v27, %v7759_v9  ;;  %v1380_v36 = vcombine.high %v1376_v19, %v1376_v19  ;;  %v450_v39 = vrot.slane %v436_v31, %v7759_v9  ;;  %v1394_v40 = vrot.slane %v7450_v18, %v7759_v9 }
  0x35   : > { %v3082_v37 = vrot.slane %v3060_v29, %v7759_v9  ;;  %v3089_v38 = vrot.slane %v3061_v22, %v7759_v9  ;;  %v2224_v41 = vcombine.low %v2216_v26, %v2223_v32  ;;  %v451_v17 = vcombine.high %v443_v34, %v443_v34  ;;  %v210_v29 = vld [vmem:[%s7764_s26 + $0xf8] sm:$0xff] }
  0x36   : > { %v3090_v42 = vcombine.low %v3068_v30, %v3075_v33  ;;  %v459_v21 = vrot.slane %v443_v34, %v7759_v9  ;;  %v452_v44 = vcombine.high %v450_v39, %v450_v39  ;;  %v466_v45 = vrot.slane %v450_v39, %v7759_v9 }
  0x37   : > { %v3091_v43 = vcombine.low %v3082_v37, %v3089_v38  ;;  %v1395_v46 = vcombine.high %v209_v35, %v209_v35  ;;  %7608 = vmatprep.mubr.msk.f32.mxu0 %vm3744_vm0, %v2224_v41  ;;  %v473_v48 = vrot.slane %v451_v17, %v7759_v9  ;;  %v1402_v54 = vrot.slane %v209_v35, %v7759_v9 }
  0x38   : > { %v3098_v47 = vrot.slane %v3090_v42, %v7759_v9  ;;  %v481_v49 = vcombine.high %v459_v21, %v459_v21  ;;  %v2225_v50 = vcombine.low %v435_v28, %v459_v21  ;;  %v480_v52 = vrot.slane %v452_v44, %v7759_v9 }
  0x39   : > { %v3105_v51 = vrot.slane %v3091_v43, %v7759_v9  ;;  %v482_v53 = vcombine.high %v466_v45, %v466_v45  ;;  %v483_v55 = vcombine.high %v473_v48, %v473_v48  ;;  %v1409_v58 = vrot.slane %v1395_v46, %v7759_v9 }
  0x3a   : > { %v2226_v56 = vcombine.low %v473_v48, %v481_v49  ;;  %v2235_v57 = vrot.slane %v2225_v50, %v7759_v9  ;;  %v1410_v61 = vcombine.high %v1402_v54, %v1402_v54  ;;  %v1418_v62 = vrot.slane %v1402_v54, %v7759_v9 }
  0x3b   : > { %v3106_v59 = vcombine.low %v3098_v47, %v3105_v51  ;;  %v2228_v60 = vcombine.low %v480_v52, %v482_v53  ;;  %v2227_v0 = vcombine.low %v483_v55, %v466_v45  ;;  %v1411_v2 = vcombine.high %v1409_v58, %v1409_v58  ;;  %v186_v47 = vld [vmem:[%s7764_s26 + $0x38] sm:$0xff] }
  0x3c   : > { %v2242_v1 = vrot.slane %v2226_v56, %v7759_v9  ;;  %v1425_v3 = vrot.slane %v1409_v58, %v7759_v9  ;;  %v1432_v6 = vrot.slane %v1410_v61, %v7759_v9  ;;  %v3107_v7 = vcombine.low %v1380_v36, %v1394_v40 }
  0x3d   : > { %7635 = vmatprep.mubr.msk.f32.mxu1 %vm3744_vm0, %v3106_v59  ;;  %v2256_v5 = vrot.slane %v2228_v60, %v7759_v9  ;;  %v484_v8 = vcombine.high %v480_v52, %v480_v52  ;;  %v2249_v10 = vrot.slane %v2227_v0, %v7759_v9  ;;  %v1439_v12 = vrot.slane %v1411_v2, %v7759_v9 }
  0x3e   : > { %v2257_v11 = vcombine.low %v2235_v57, %v2242_v1  ;;  %v498_v13 = vrot.slane %v7442_v63, %v7759_v9  ;;  %v3108_v14 = vcombine.low %v1418_v62, %v1432_v6  ;;  %v7478_v15 = vcombine.high %v1418_v62, %v1432_v6 }
  0x3f   : > { %v3117_v16 = vrot.slane %v3107_v7, %v7759_v9  ;;  %v499_v19 = vcombine.high %v185_v4, %v185_v4  ;;  %v2258_v20 = vcombine.low %v2249_v10, %v2256_v5  ;;  %v3110_v24 = vcombine.low %v1425_v3, %v1439_v12 }
  0x40   : > { %v2265_v23 = vrot.slane %v2257_v11, %v7759_v9  ;;  %v506_v25 = vrot.slane %v185_v4, %v7759_v9  ;;  %v3124_v26 = vrot.slane %v3108_v14, %v7759_v9  ;;  %v3131_v27 = vrot.slane %v7478_v15, %v7759_v9  ;;  %v212_v14 = vld [vmem:[%s7764_s26 + $0x108] sm:$0xff] }
  0x41   : > { %v513_v28 = vrot.slane %v499_v19, %v7759_v9  ;;  %v2274_v18 = vcombine.low %v484_v8, %v498_v13  ;;  %v2272_v22 = vrot.slane %v2258_v20, %v7759_v9  ;;  %v3138_v30 = vrot.slane %v3110_v24, %v7759_v9  ;;  %v7451_v8 = vld.sshfl [vmem:[%s7764_s26 + $0x100] sm:$0x1 pattern:$0x75316420] }
  0x42   : > { %v514_v31 = vcombine.high %v506_v25, %v506_v25  ;;  %v522_v32 = vrot.slane %v506_v25, %v7759_v9  ;;  %v3139_v33 = vcombine.low %v3117_v16, %v3124_v26  ;;  %v1444_v40 = vcombine.high %v210_v29, %v210_v29 }
  0x43   : > { %v515_v34 = vcombine.high %v513_v28, %v513_v28  ;;  %v529_v35 = vrot.slane %v513_v28, %v7759_v9  ;;  %v2284_v36 = vrot.slane %v2274_v18, %v7759_v9  ;;  %v2273_v37 = vcombine.low %v2265_v23, %v2272_v22 }
  0x44   : > { %v3140_v38 = vcombine.low %v3131_v27, %v3138_v30  ;;  %v536_v39 = vrot.slane %v514_v31, %v7759_v9  ;;  %v3147_v41 = vrot.slane %v3139_v33, %v7759_v9  ;;  %v1451_v17 = vrot.slane %v210_v29, %v7759_v9  ;;  %v7443_v33 = vld.sshfl [vmem:[%s7764_s26 + $0x40] sm:$0x1 pattern:$0x75316420] }
  0x45   : > { %v543_v42 = vrot.slane %v515_v34, %v7759_v9  ;;  %v7479_v21 = vcombine.high %v1425_v3, %v1439_v12  ;;  %7609 = vmatmul.mubr.msk.f32.gmra.mxu0 %vm3744_vm0, %v2273_v37  ;;  %v1458_v46 = vrot.slane %v1444_v40, %v7759_v9  ;;  %v548_v59 = vcombine.high %v186_v47, %v186_v47 }
  0x46   : > { %v3154_v43 = vrot.slane %v3140_v38, %v7759_v9  ;;  %v2275_v44 = vcombine.low %v522_v32, %v536_v39  ;;  %v7462_v45 = vcombine.high %v522_v32, %v536_v39  ;;  %v1459_v49 = vcombine.high %v1451_v17, %v1451_v17 }
  0x47   : > { %v2277_v48 = vcombine.low %v529_v35, %v543_v42  ;;  %v1467_v50 = vrot.slane %v1451_v17, %v7759_v9  ;;  %v3166_v51 = vrot.slane %v7479_v21, %v7759_v9  ;;  %v1460_v55 = vcombine.high %v1458_v46, %v1458_v46 }
  0x48   : > { %v3155_v52 = vcombine.low %v3147_v41, %v3154_v43  ;;  %v2291_v53 = vrot.slane %v2275_v44, %v7759_v9  ;;  %v2298_v54 = vrot.slane %v7462_v45, %v7759_v9  ;;  %v1474_v57 = vrot.slane %v1458_v46, %v7759_v9 }
  0x49   : > { %v2305_v56 = vrot.slane %v2277_v48, %v7759_v9  ;;  %v1481_v58 = vrot.slane %v1459_v49, %v7759_v9  ;;  %v1488_v61 = vrot.slane %v1460_v55, %v7759_v9  ;;  %v555_v62 = vrot.slane %v186_v47, %v7759_v9 }
  0x4a   : > { %7636 = vmatmul.mubr.msk.f32.gmra.mxu1 %vm3744_vm0, %v3155_v52  ;;  %v2306_v60 = vcombine.low %v2284_v36, %v2291_v53  ;;  %v7463_v63 = vcombine.high %v529_v35, %v543_v42  ;;  %v562_v3 = vrot.slane %v548_v59, %v7759_v9  ;;  %v1506_v26 = vrot.slane %v7451_v8, %v7759_v9  ;;  %v188_v42 = vld [vmem:[%s7764_s26 + $0x48] sm:$0xff] }
  0x4b   : > { %v2307_v0 = vcombine.low %v2298_v54, %v2305_v56  ;;  %v3157_v1 = vcombine.low %v1467_v50, %v1481_v58  ;;  %v7480_v2 = vcombine.high %v1467_v50, %v1481_v58  ;;  %v3159_v5 = vcombine.low %v1474_v57, %v1488_v61 }
  0x4c   : > { %v2314_v4 = vrot.slane %v2306_v60, %v7759_v9  ;;  %v563_v6 = vcombine.high %v555_v62, %v555_v62  ;;  %v571_v7 = vrot.slane %v555_v62, %v7759_v9  ;;  %v564_v13 = vcombine.high %v562_v3, %v562_v3 }
  0x4d   : > { %v2321_v10 = vrot.slane %v2307_v0, %v7759_v9  ;;  %v3173_v11 = vrot.slane %v3157_v1, %v7759_v9  ;;  %v3180_v12 = vrot.slane %v7480_v2, %v7759_v9  ;;  %v3187_v15 = vrot.slane %v3159_v5, %v7759_v9  ;;  %v213_v1 = vld [vmem:[%s7764_s26 + $0x110] sm:$0xff] }
  0x4e   : > { %v578_v16 = vrot.slane %v562_v3, %v7759_v9  ;;  %v585_v19 = vrot.slane %v563_v6, %v7759_v9  ;;  %v2333_v20 = vrot.slane %v7463_v63, %v7759_v9  ;;  %v592_v25 = vrot.slane %v564_v13, %v7759_v9 }
  0x4f   : > { %v2322_v23 = vcombine.low %v2314_v4, %v2321_v10  ;;  %v3188_v24 = vcombine.low %v3166_v51, %v3173_v11  ;;  %v3189_v27 = vcombine.low %v3180_v12, %v3187_v15  ;;  %v1507_v29 = vcombine.high %v212_v14, %v212_v14 }
  0x50   : > { %v2324_v28 = vcombine.low %v571_v7, %v585_v19  ;;  %v7464_v18 = vcombine.high %v571_v7, %v585_v19  ;;  %v2326_v30 = vcombine.low %v578_v16, %v592_v25  ;;  %v1514_v31 = vrot.slane %v212_v14, %v7759_v9 }
  0x51   : > { %7611 = vmatprep.mubr.msk.f32.mxu0 %vm3744_vm0, %v2322_v23  ;;  %v3196_v22 = vrot.slane %v3188_v24, %v7759_v9  ;;  %v7481_v32 = vcombine.high %v1474_v57, %v1488_v61  ;;  %v3203_v34 = vrot.slane %v3189_v27, %v7759_v9  ;;  %v1521_v37 = vrot.slane %v1507_v29, %v7759_v9 }
  0x52   : > { %v2340_v35 = vrot.slane %v2324_v28, %v7759_v9  ;;  %v2347_v36 = vrot.slane %v7464_v18, %v7759_v9  ;;  %v2354_v38 = vrot.slane %v2326_v30, %v7759_v9  ;;  %v1522_v39 = vcombine.high %v1514_v31, %v1514_v31 }
  0x53   : > { %v1530_v40 = vrot.slane %v1514_v31, %v7759_v9  ;;  %v3215_v41 = vrot.slane %v7481_v32, %v7759_v9  ;;  %v3204_v17 = vcombine.low %v3196_v22, %v3203_v34  ;;  %v1537_v43 = vrot.slane %v1521_v37, %v7759_v9 }
  0x54   : > { %v2355_v21 = vcombine.low %v2333_v20, %v2340_v35  ;;  %v610_v44 = vrot.slane %v7443_v33, %v7759_v9  ;;  %v2356_v45 = vcombine.low %v2347_v36, %v2354_v38  ;;  %v1544_v46 = vrot.slane %v1522_v39, %v7759_v9  ;;  %v189_v33 = vld [vmem:[%s7764_s26 + $0x50] sm:$0xff] }
  0x55   : > { %v1552_v47 = vcombine.high %v1530_v40, %v1530_v40  ;;  %v3206_v48 = vcombine.low %v1506_v26, %v1530_v40  ;;  %7638 = vmatprep.mubr.msk.f32.mxu1 %vm3744_vm0, %v3204_v17  ;;  %v611_v50 = vcombine.high %v188_v42, %v188_v42  ;;  %v618_v51 = vrot.slane %v188_v42, %v7759_v9 }
  0x56   : > { %v2363_v49 = vrot.slane %v2355_v21, %v7759_v9  ;;  %v7465_v52 = vcombine.high %v578_v16, %v592_v25  ;;  %v2370_v53 = vrot.slane %v2356_v45, %v7759_v9  ;;  %v1554_v54 = vcombine.high %v1544_v46, %v1544_v46 }
  0x57   : > { %v3207_v55 = vcombine.low %v1544_v46, %v1552_v47  ;;  %v3222_v56 = vrot.slane %v3206_v48, %v7759_v9  ;;  %v625_v57 = vrot.slane %v611_v50, %v7759_v9  ;;  %v626_v58 = vcombine.high %v618_v51, %v618_v51 }
  0x58   : > { %v634_v59 = vrot.slane %v618_v51, %v7759_v9  ;;  %v2382_v60 = vrot.slane %v7465_v52, %v7759_v9  ;;  %v2371_v61 = vcombine.low %v2363_v49, %v2370_v53  ;;  %v3208_v62 = vcombine.low %v1554_v54, %v1537_v43 }
  0x59   : > { %v3229_v63 = vrot.slane %v3207_v55, %v7759_v9  ;;  %v3237_v0 = vcombine.low %v3215_v41, %v3222_v56  ;;  %v641_v2 = vrot.slane %v625_v57, %v7759_v9  ;;  %v648_v3 = vrot.slane %v626_v58, %v7759_v9  ;;  %v7452_v56 = vld.sshfl [vmem:[%s7764_s26 + $0x118] sm:$0x1 pattern:$0x75316420] }
  0x5a   : > { %v656_v4 = vcombine.high %v634_v59, %v634_v59  ;;  %v2373_v5 = vcombine.low %v610_v44, %v634_v59  ;;  %7612 = vmatmul.mubr.msk.f32.gmra.mxu0 %vm3744_vm0, %v2371_v61  ;;  %v3236_v6 = vrot.slane %v3208_v62, %v7759_v9  ;;  %v1523_v8 = vcombine.high %v1521_v37, %v1521_v37 }
  0x5b   : > { %v3245_v7 = vrot.slane %v3237_v0, %v7759_v9  ;;  %v1553_v10 = vcombine.high %v1537_v43, %v1537_v43  ;;  %v658_v11 = vcombine.high %v648_v3, %v648_v3  ;;  %v1556_v14 = vcombine.high %v213_v1, %v213_v1 }
  0x5c   : > { %v2374_v12 = vcombine.low %v648_v3, %v656_v4  ;;  %v2389_v13 = vrot.slane %v2373_v5, %v7759_v9  ;;  %v3238_v15 = vcombine.low %v3229_v63, %v3236_v6  ;;  %v1551_v16 = vrot.slane %v1523_v8, %v7759_v9 }
  0x5d   : > { %v1563_v19 = vrot.slane %v213_v1, %v7759_v9  ;;  %v627_v20 = vcombine.high %v625_v57, %v625_v57  ;;  %v2375_v23 = vcombine.low %v658_v11, %v641_v2  ;;  %v1570_v26 = vrot.slane %v1556_v14, %v7759_v9  ;;  %v215_v57 = vld [vmem:[%s7764_s26 + $0x120] sm:$0xff] }
  0x5e   : > { %v2396_v24 = vrot.slane %v2374_v12, %v7759_v9  ;;  %v2404_v25 = vcombine.low %v2382_v60, %v2389_v13  ;;  %v3252_v27 = vrot.slane %v3238_v15, %v7759_v9  ;;  %v1555_v28 = vcombine.high %v1551_v16, %v1551_v16 }
  0x5f   : > { %v1571_v18 = vcombine.high %v1563_v19, %v1563_v19  ;;  %v1579_v29 = vrot.slane %v1563_v19, %v7759_v9  ;;  %v2403_v22 = vrot.slane %v2375_v23, %v7759_v9  ;;  %v1586_v31 = vrot.slane %v1570_v26, %v7759_v9 }
  0x60   : > { %v2412_v30 = vrot.slane %v2404_v25, %v7759_v9  ;;  %v3254_v32 = vcombine.low %v1551_v16, %v1553_v10  ;;  %v3253_v34 = vcombine.low %v3245_v7, %v3252_v27  ;;  %v655_v40 = vrot.slane %v627_v20, %v7759_v9  ;;  %v191_v27 = vld [vmem:[%s7764_s26 + $0x60] sm:$0xff] }
  0x61   : > { %v1593_v35 = vrot.slane %v1571_v18, %v7759_v9  ;;  %v1601_v36 = vcombine.high %v1579_v29, %v1579_v29  ;;  %v3255_v37 = vcombine.low %v1555_v28, %v1579_v29  ;;  %v2405_v38 = vcombine.low %v2396_v24, %v2403_v22 }
  0x62   : > { %v3264_v39 = vrot.slane %v3254_v32, %v7759_v9  ;;  %v657_v41 = vcombine.high %v641_v2, %v641_v2  ;;  %7639 = vmatmul.mubr.msk.f32.gmra.mxu1 %vm3744_vm0, %v3253_v34  ;;  %v660_v43 = vcombine.high %v189_v33, %v189_v33  ;;  %v659_v45 = vcombine.high %v655_v40, %v655_v40 }
  0x63   : > { %v1603_v42 = vcombine.high %v1593_v35, %v1593_v35  ;;  %v3256_v17 = vcombine.low %v1593_v35, %v1601_v36  ;;  %v3271_v21 = vrot.slane %v3255_v37, %v7759_v9  ;;  %v2419_v44 = vrot.slane %v2405_v38, %v7759_v9 }
  0x64   : > { %v667_v46 = vrot.slane %v189_v33, %v7759_v9  ;;  %v2421_v47 = vcombine.low %v655_v40, %v657_v41  ;;  %v674_v51 = vrot.slane %v660_v43, %v7759_v9  ;;  %v1572_v61 = vcombine.high %v1570_v26, %v1570_v26  ;;  %v7444_v26 = vld.sshfl [vmem:[%s7764_s26 + $0x58] sm:$0x1 pattern:$0x75316420] }
  0x65   : > { %v3257_v48 = vcombine.low %v1603_v42, %v1586_v31  ;;  %v3278_v49 = vrot.slane %v3256_v17, %v7759_v9  ;;  %v3286_v50 = vcombine.low %v3264_v39, %v3271_v21  ;;  %v2420_v52 = vcombine.low %v2412_v30, %v2419_v44  ;;  %v216_v42 = vld [vmem:[%s7764_s26 + $0x128] sm:$0xff] }
  0x66   : > { %v675_v53 = vcombine.high %v667_v46, %v667_v46  ;;  %v683_v54 = vrot.slane %v667_v46, %v7759_v9  ;;  %v2431_v55 = vrot.slane %v2421_v47, %v7759_v9  ;;  %v690_v60 = vrot.slane %v674_v51, %v7759_v9 }
  0x67   : > { %v3285_v58 = vrot.slane %v3257_v48, %v7759_v9  ;;  %v3294_v59 = vrot.slane %v3286_v50, %v7759_v9  ;;  %7614 = vmatprep.mubr.msk.f32.mxu0 %vm3744_vm0, %v2420_v52  ;;  %v1602_v1 = vcombine.high %v1586_v31, %v1586_v31  ;;  %v1600_v3 = vrot.slane %v1572_v61, %v7759_v9 }
  0x68   : > { %v697_v62 = vrot.slane %v675_v53, %v7759_v9  ;;  %v705_v63 = vcombine.high %v683_v54, %v683_v54  ;;  %v2422_v0 = vcombine.low %v659_v45, %v683_v54  ;;  %v1618_v4 = vrot.slane %v7452_v56, %v7759_v9 }
  0x69   : > { %v3287_v2 = vcombine.low %v3278_v49, %v3285_v58  ;;  %v1626_v5 = vrot.slane %v215_v57, %v7759_v9  ;;  %v676_v10 = vcombine.high %v674_v51, %v674_v51  ;;  %v1604_v12 = vcombine.high %v1600_v3, %v1600_v3 }
  0x6a   : > { %v707_v6 = vcombine.high %v697_v62, %v697_v62  ;;  %v2423_v7 = vcombine.low %v697_v62, %v705_v63  ;;  %v2438_v8 = vrot.slane %v2422_v0, %v7759_v9  ;;  %v3303_v20 = vcombine.low %v1600_v3, %v1602_v1  ;;  %v192_v1 = vld [vmem:[%s7764_s26 + $0x68] sm:$0xff] }
  0x6b   : > { %v3301_v11 = vrot.slane %v3287_v2, %v7759_v9  ;;  %v1634_v13 = vcombine.high %v1626_v5, %v1626_v5  ;;  %v1642_v14 = vrot.slane %v1626_v5, %v7759_v9  ;;  %v3304_v25 = vcombine.low %v1604_v12, %v1618_v4 }
  0x6c   : > { %v2424_v15 = vcombine.low %v707_v6, %v690_v60  ;;  %v2445_v16 = vrot.slane %v2423_v7, %v7759_v9  ;;  %v2453_v19 = vcombine.low %v2431_v55, %v2438_v8  ;;  %v704_v28 = vrot.slane %v676_v10, %v7759_v9 }
  0x6d   : > { %v3302_v23 = vcombine.low %v3294_v59, %v3301_v11  ;;  %v1656_v24 = vrot.slane %v1634_v13, %v7759_v9  ;;  %v3313_v22 = vrot.slane %v3303_v20, %v7759_v9  ;;  %v706_v30 = vcombine.high %v690_v60, %v690_v60 }
  0x6e   : > { %v2452_v18 = vrot.slane %v2424_v15, %v7759_v9  ;;  %v2461_v29 = vrot.slane %v2453_v19, %v7759_v9  ;;  %v3320_v33 = vrot.slane %v3304_v25, %v7759_v9  ;;  %v708_v34 = vcombine.high %v704_v28, %v704_v28 }
  0x6f   : > { %7641 = vmatprep.mubr.msk.f32.mxu1 %vm3744_vm0, %v3302_v23  ;;  %v3305_v31 = vcombine.low %v1642_v14, %v1656_v24  ;;  %v7482_v32 = vcombine.high %v1642_v14, %v1656_v24  ;;  %v722_v36 = vrot.slane %v7444_v26, %v7759_v9  ;;  %v730_v37 = vrot.slane %v191_v27, %v7759_v9 }
  0x70   : > { %v2454_v35 = vcombine.low %v2445_v16, %v2452_v18  ;;  %v2470_v38 = vcombine.low %v704_v28, %v706_v30  ;;  %v3335_v41 = vcombine.low %v3313_v22, %v3320_v33  ;;  %v1619_v17 = vcombine.high %v215_v57, %v215_v57  ;;  %v7453_v28 = vld.sshfl [vmem:[%s7764_s26 + $0x130] sm:$0x1 pattern:$0x75316420] }
  0x71   : > { %v3327_v39 = vrot.slane %v3305_v31, %v7759_v9  ;;  %v3334_v40 = vrot.slane %v7482_v32, %v7759_v9  ;;  %v738_v43 = vcombine.high %v730_v37, %v730_v37  ;;  %v746_v44 = vrot.slane %v730_v37, %v7759_v9 }
  0x72   : > { %v2468_v21 = vrot.slane %v2454_v35, %v7759_v9  ;;  %v2471_v45 = vcombine.low %v708_v34, %v722_v36  ;;  %v3343_v47 = vrot.slane %v3335_v41, %v7759_v9  ;;  %v2480_v48 = vrot.slane %v2470_v38, %v7759_v9  ;;  %v218_v34 = vld [vmem:[%s7764_s26 + $0x138] sm:$0xff] }
  0x73   : > { %v3336_v46 = vcombine.low %v3327_v39, %v3334_v40  ;;  %v1633_v49 = vrot.slane %v1619_v17, %v7759_v9  ;;  %v760_v51 = vrot.slane %v738_v43, %v7759_v9  ;;  %v1675_v53 = vrot.slane %v216_v42, %v7759_v9 }
  0x74   : > { %v2469_v50 = vcombine.low %v2461_v29, %v2468_v21  ;;  %v2487_v52 = vrot.slane %v2471_v45, %v7759_v9  ;;  %v723_v57 = vcombine.high %v191_v27, %v191_v27  ;;  %v779_v15 = vrot.slane %v192_v1, %v7759_v9  ;;  %v7445_v45 = vld.sshfl [vmem:[%s7764_s26 + $0x70] sm:$0x1 pattern:$0x75316420] }
  0x75   : > { %v3350_v54 = vrot.slane %v3336_v46, %v7759_v9  ;;  %v1635_v55 = vcombine.high %v1633_v49, %v1633_v49  ;;  %v1649_v56 = vrot.slane %v1633_v49, %v7759_v9  ;;  %v2472_v58 = vcombine.low %v746_v44, %v760_v51 }
  0x76   : > { %7615 = vmatmul.mubr.msk.f32.gmra.mxu0 %vm3744_vm0, %v2469_v50  ;;  %v7466_v59 = vcombine.high %v746_v44, %v760_v51  ;;  %v2502_v60 = vcombine.low %v2480_v48, %v2487_v52  ;;  %v1683_v61 = vcombine.high %v1675_v53, %v1675_v53  ;;  %v1691_v0 = vrot.slane %v1675_v53, %v7759_v9 }
  0x77   : > { %v3351_v62 = vcombine.low %v3343_v47, %v3350_v54  ;;  %v1663_v63 = vrot.slane %v1635_v55, %v7759_v9  ;;  %v737_v2 = vrot.slane %v723_v57, %v7759_v9  ;;  %v2494_v3 = vrot.slane %v2472_v58, %v7759_v9 }
  0x78   : > { %v2501_v4 = vrot.slane %v7466_v59, %v7759_v9  ;;  %v2510_v5 = vrot.slane %v2502_v60, %v7759_v9  ;;  %v1705_v6 = vrot.slane %v1683_v61, %v7759_v9  ;;  %v1668_v23 = vcombine.high %v216_v42, %v216_v42 }
  0x79   : > { %7642 = vmatmul.mubr.msk.f32.gmra.mxu1 %vm3744_vm0, %v3351_v62  ;;  %v3352_v7 = vcombine.low %v1649_v56, %v1663_v63  ;;  %v7483_v8 = vcombine.high %v1649_v56, %v1663_v63  ;;  %v739_v10 = vcombine.high %v737_v2, %v737_v2  ;;  %v753_v11 = vrot.slane %v737_v2, %v7759_v9  ;;  %v194_v2 = vld [vmem:[%s7764_s26 + $0x78] sm:$0xff] }
  0x7a   : > { %v2503_v12 = vcombine.low %v2494_v3, %v2501_v4  ;;  %v3354_v13 = vcombine.low %v1691_v0, %v1705_v6  ;;  %v7484_v14 = vcombine.high %v1691_v0, %v1705_v6  ;;  %v787_v27 = vcombine.high %v779_v15, %v779_v15 }
  0x7b   : > { %v3362_v16 = vrot.slane %v3352_v7, %v7759_v9  ;;  %v3369_v19 = vrot.slane %v7483_v8, %v7759_v9  ;;  %v767_v20 = vrot.slane %v739_v10, %v7759_v9  ;;  %v795_v29 = vrot.slane %v779_v15, %v7759_v9 }
  0x7c   : > { %v2517_v24 = vrot.slane %v2503_v12, %v7759_v9  ;;  %v3376_v25 = vrot.slane %v3354_v13, %v7759_v9  ;;  %v3383_v26 = vrot.slane %v7484_v14, %v7759_v9  ;;  %v809_v33 = vrot.slane %v787_v27, %v7759_v9 }
  0x7d   : > { %v3384_v18 = vcombine.low %v3362_v16, %v3369_v19  ;;  %v2519_v22 = vcombine.low %v753_v11, %v767_v20  ;;  %v7467_v30 = vcombine.high %v753_v11, %v767_v20  ;;  %v1682_v35 = vrot.slane %v1668_v23, %v7759_v9  ;;  %v219_v19 = vld [vmem:[%s7764_s26 + $0x140] sm:$0xff] }
  0x7e   : > { %v2518_v31 = vcombine.low %v2510_v5, %v2517_v24  ;;  %v3385_v32 = vcombine.low %v3376_v25, %v3383_v26  ;;  %v1730_v39 = vrot.slane %v7453_v28, %v7759_v9  ;;  %v2521_v41 = vcombine.low %v795_v29, %v809_v33 }
  0x7f   : > { %v3392_v36 = vrot.slane %v3384_v18, %v7759_v9  ;;  %v2529_v37 = vrot.slane %v2519_v22, %v7759_v9  ;;  %v2536_v38 = vrot.slane %v7467_v30, %v7759_v9  ;;  %v7468_v42 = vcombine.high %v795_v29, %v809_v33 }
  0x80   : > { %7617 = vmatprep.mubr.msk.f32.mxu0 %vm3744_vm0, %v2518_v31  ;;  %v3399_v40 = vrot.slane %v3385_v32, %v7759_v9  ;;  %v1684_v17 = vcombine.high %v1682_v35, %v1682_v35  ;;  %v1698_v43 = vrot.slane %v1682_v35, %v7759_v9  ;;  %v1738_v44 = vrot.slane %v218_v34, %v7759_v9 }
  0x81   : > { %v2551_v21 = vcombine.low %v2529_v37, %v2536_v38  ;;  %v772_v46 = vcombine.high %v192_v1, %v192_v1  ;;  %v2543_v48 = vrot.slane %v2521_v41, %v7759_v9  ;;  %v2550_v49 = vrot.slane %v7468_v42, %v7759_v9 }
  0x82   : > { %v3400_v47 = vcombine.low %v3392_v36, %v3399_v40  ;;  %v1712_v50 = vrot.slane %v1684_v17, %v7759_v9  ;;  %v1746_v52 = vcombine.high %v1738_v44, %v1738_v44  ;;  %v1754_v53 = vrot.slane %v1738_v44, %v7759_v9 }
  0x83   : > { %v2559_v51 = vrot.slane %v2551_v21, %v7759_v9  ;;  %v786_v54 = vrot.slane %v772_v46, %v7759_v9  ;;  %v2552_v55 = vcombine.low %v2543_v48, %v2550_v49  ;;  %v834_v58 = vrot.slane %v7445_v45, %v7759_v9  ;;  %v8084_v21 = vld [vmem:[%s7764_s26 + $0x80] sm:$0xff] }
  0x84   : > { %7644 = vmatprep.mubr.msk.f32.mxu1 %vm3744_vm0, %v3400_v47  ;;  %v3401_v56 = vcombine.low %v1698_v43, %v1712_v50  ;;  %v7485_v57 = vcombine.high %v1698_v43, %v1712_v50  ;;  %v1768_v59 = vrot.slane %v1746_v52, %v7759_v9  ;;  %v1776_v60 = vcombine.high %v1754_v53, %v1754_v53 }
  0x85   : > { %v3403_v61 = vcombine.low %v1730_v39, %v1754_v53  ;;  %v788_v62 = vcombine.high %v786_v54, %v786_v54  ;;  %v2566_v63 = vrot.slane %v2552_v55, %v7759_v9  ;;  %v802_v3 = vrot.slane %v786_v54, %v7759_v9 }
  0x86   : > { %v3411_v0 = vrot.slane %v3401_v56, %v7759_v9  ;;  %v3418_v1 = vrot.slane %v7485_v57, %v7759_v9  ;;  %v3404_v4 = vcombine.low %v1768_v59, %v1776_v60  ;;  %v842_v7 = vrot.slane %v194_v2, %v7759_v9 }
  0x87   : > { %v3425_v5 = vrot.slane %v3403_v61, %v7759_v9  ;;  %v816_v6 = vrot.slane %v788_v62, %v7759_v9  ;;  %v2567_v8 = vcombine.low %v2559_v51, %v2566_v63  ;;  %v1731_v11 = vcombine.high %v218_v34, %v218_v34 }
  0x88   : > { %v3433_v10 = vcombine.low %v3411_v0, %v3418_v1  ;;  %v1778_v12 = vcombine.high %v1768_v59, %v1768_v59  ;;  %v3432_v13 = vrot.slane %v3404_v4, %v7759_v9  ;;  %v850_v14 = vcombine.high %v842_v7, %v842_v7 }
  0x89   : > { %v858_v15 = vrot.slane %v842_v7, %v7759_v9  ;;  %v2568_v16 = vcombine.low %v802_v3, %v816_v6  ;;  %7618 = vmatmul.mubr.msk.f32.gmra.mxu0 %vm3744_vm0, %v2567_v8  ;;  %v7469_v23 = vcombine.high %v802_v3, %v816_v6  ;;  %v1745_v24 = vrot.slane %v1731_v11, %v7759_v9  ;;  %v7454_v3 = vld.sshfl [vmem:[%s7764_s26 + $0x148] sm:$0x1 pattern:$0x75316420] }
  0x8a   : > { %v3441_v20 = vrot.slane %v3433_v10, %v7759_v9  ;;  %v1787_v25 = vrot.slane %v219_v19, %v7759_v9  ;;  %v3434_v26 = vcombine.low %v3425_v5, %v3432_v13  ;;  %v872_v27 = vrot.slane %v850_v14, %v7759_v9  ;;  %v221_v13 = vld [vmem:[%s7764_s26 + $0x150] sm:$0xff] }
  0x8b   : > { %v880_v28 = vcombine.high %v858_v15, %v858_v15  ;;  %v2570_v18 = vcombine.low %v834_v58, %v858_v15  ;;  %v2578_v29 = vrot.slane %v2568_v16, %v7759_v9  ;;  %v2585_v22 = vrot.slane %v7469_v23, %v7759_v9 }
  0x8c   : > { %v1747_v30 = vcombine.high %v1745_v24, %v1745_v24  ;;  %v1761_v31 = vrot.slane %v1745_v24, %v7759_v9  ;;  %v3448_v32 = vrot.slane %v3434_v26, %v7759_v9  ;;  %v1795_v35 = vcombine.high %v1787_v25, %v1787_v25 }
  0x8d   : > { %v2571_v33 = vcombine.low %v872_v27, %v880_v28  ;;  %v2592_v34 = vrot.slane %v2570_v18, %v7759_v9  ;;  %v2600_v36 = vcombine.low %v2578_v29, %v2585_v22  ;;  %v1803_v39 = vrot.slane %v1787_v25, %v7759_v9 }
  0x8e   : > { %v1775_v37 = vrot.slane %v1747_v30, %v7759_v9  ;;  %v1777_v38 = vcombine.high %v1761_v31, %v1761_v31  ;;  %v3449_v40 = vcombine.low %v3441_v20, %v3448_v32  ;;  %v1817_v42 = vrot.slane %v1795_v35, %v7759_v9 }
  0x8f   : > { %v2599_v41 = vrot.slane %v2571_v33, %v7759_v9  ;;  %v3450_v17 = vcombine.low %v1778_v12, %v1761_v31  ;;  %v2608_v43 = vrot.slane %v2600_v36, %v7759_v9  ;;  %v1825_v45 = vcombine.high %v1803_v39, %v1803_v39  ;;  %v7446_v36 = vld.sshfl [vmem:[%s7764_s26 + $0x88] sm:$0x1 pattern:$0x75316420] }
  0x90   : > { %v1779_v44 = vcombine.high %v1775_v37, %v1775_v37  ;;  %v3451_v46 = vcombine.low %v1775_v37, %v1777_v38  ;;  %7645 = vmatmul.mubr.msk.f32.gmra.mxu1 %vm3744_vm0, %v3449_v40  ;;  %v835_v49 = vcombine.high %v194_v2, %v194_v2  ;;  %v882_v50 = vcombine.high %v872_v27, %v872_v27  ;;  %v197_v40 = vld [vmem:[%s7764_s26 + $0x90] sm:$0xff] }
  0x91   : > { %v2601_v47 = vcombine.low %v2592_v34, %v2599_v41  ;;  %v3460_v48 = vrot.slane %v3450_v17, %v7759_v9  ;;  %v3453_v52 = vcombine.low %v1817_v42, %v1825_v45  ;;  %v891_v54 = vrot.slane %v8084_v21, %v7759_v9 }
  0x92   : > { %v3452_v51 = vcombine.low %v1779_v44, %v1803_v39  ;;  %v3467_v53 = vrot.slane %v3451_v46, %v7759_v9  ;;  %v849_v56 = vrot.slane %v835_v49, %v7759_v9  ;;  %v1780_v57 = vcombine.high %v219_v19, %v219_v19 }
  0x93   : > { %v2615_v55 = vrot.slane %v2601_v47, %v7759_v9  ;;  %v1827_v58 = vcombine.high %v1817_v42, %v1817_v42  ;;  %v3481_v60 = vrot.slane %v3453_v52, %v7759_v9  ;;  %v899_v62 = vcombine.high %v891_v54, %v891_v54 }
  0x94   : > { %v3474_v59 = vrot.slane %v3452_v51, %v7759_v9  ;;  %v3482_v61 = vcombine.low %v3460_v48, %v3467_v53  ;;  %v851_v0 = vcombine.high %v849_v56, %v849_v56  ;;  %v865_v1 = vrot.slane %v849_v56, %v7759_v9 }
  0x95   : > { %v2616_v63 = vcombine.low %v2608_v43, %v2615_v55  ;;  %v907_v2 = vrot.slane %v891_v54, %v7759_v9  ;;  %v921_v6 = vrot.slane %v899_v62, %v7759_v9  ;;  %v1794_v7 = vrot.slane %v1780_v57, %v7759_v9  ;;  %v8131_v55 = vld [vmem:[%s7764_s26 + $0x158] sm:$0xff] }
  0x96   : > { %v3483_v4 = vcombine.low %v3474_v59, %v3481_v60  ;;  %v3490_v5 = vrot.slane %v3482_v61, %v7759_v9  ;;  %v879_v8 = vrot.slane %v851_v0, %v7759_v9  ;;  %v881_v10 = vcombine.high %v865_v1, %v865_v1 }
  0x97   : > { %7620 = vmatprep.mubr.msk.f32.mxu0 %vm3744_vm0, %v2616_v63  ;;  %v929_v11 = vcombine.high %v907_v2, %v907_v2  ;;  %v2617_v12 = vcombine.low %v882_v50, %v865_v1  ;;  %v1796_v15 = vcombine.high %v1794_v7, %v1794_v7  ;;  %v1810_v16 = vrot.slane %v1794_v7, %v7759_v9 }
  0x98   : > { %v3497_v14 = vrot.slane %v3483_v4, %v7759_v9  ;;  %v1842_v19 = vrot.slane %v7454_v3, %v7759_v9  ;;  %v883_v20 = vcombine.high %v879_v8, %v879_v8  ;;  %v2618_v23 = vcombine.low %v879_v8, %v881_v10 }
  0x99   : > { %v2620_v24 = vcombine.low %v921_v6, %v929_v11  ;;  %v2627_v25 = vrot.slane %v2617_v12, %v7759_v9  ;;  %v1824_v27 = vrot.slane %v1796_v15, %v7759_v9  ;;  %v1826_v28 = vcombine.high %v1810_v16, %v1810_v16 }
  0x9a   : > { %v3498_v26 = vcombine.low %v3490_v5, %v3497_v14  ;;  %v1850_v18 = vrot.slane %v221_v13, %v7759_v9  ;;  %v2619_v29 = vcombine.low %v883_v20, %v907_v2  ;;  %v2634_v22 = vrot.slane %v2618_v23, %v7759_v9  ;;  %v8148_v20 = vld [vmem:[%s7764_s26 + $0x98] sm:$0xff] }
  0x9b   : > { %v2648_v30 = vrot.slane %v2620_v24, %v7759_v9  ;;  %v3499_v31 = vcombine.low %v1827_v58, %v1810_v16  ;;  %v1828_v32 = vcombine.high %v1824_v27, %v1824_v27  ;;  %v3500_v35 = vcombine.low %v1824_v27, %v1826_v28 }
  0x9c   : > { %7647 = vmatprep.mubr.msk.f32.mxu1 %vm3744_vm0, %v3498_v26  ;;  %v1858_v33 = vcombine.high %v1850_v18, %v1850_v18  ;;  %v1866_v34 = vrot.slane %v1850_v18, %v7759_v9  ;;  %v2641_v37 = vrot.slane %v2619_v29, %v7759_v9  ;;  %v2649_v38 = vcombine.low %v2627_v25, %v2634_v22 }
  0x9d   : > { %v3509_v39 = vrot.slane %v3499_v31, %v7759_v9  ;;  %v884_v41 = vcombine.high %v8084_v21, %v8084_v21  ;;  %v3501_v17 = vcombine.low %v1828_v32, %v1842_v19  ;;  %v3516_v43 = vrot.slane %v3500_v35, %v7759_v9 }
  0x9e   : > { %v1880_v42 = vrot.slane %v1858_v33, %v7759_v9  ;;  %v931_v44 = vcombine.high %v921_v6, %v921_v6  ;;  %v2650_v45 = vcombine.low %v2641_v37, %v2648_v30  ;;  %v2657_v46 = vrot.slane %v2649_v38, %v7759_v9 }
  0x9f   : > { %v898_v47 = vrot.slane %v884_v41, %v7759_v9  ;;  %v946_v48 = vrot.slane %v7446_v36, %v7759_v9  ;;  %v3523_v50 = vrot.slane %v3501_v17, %v7759_v9  ;;  %v3531_v51 = vcombine.low %v3509_v39, %v3516_v43  ;;  %v7455_v41 = vld.sshfl [vmem:[%s7764_s26 + $0x160] sm:$0x1 pattern:$0x75316420] }
  0xa0   : > { %v3502_v49 = vcombine.low %v1866_v34, %v1880_v42  ;;  %v954_v21 = vrot.slane %v197_v40, %v7759_v9  ;;  %v2664_v52 = vrot.slane %v2650_v45, %v7759_v9  ;;  %v1843_v56 = vcombine.high %v221_v13, %v221_v13 }
  0xa1   : > { %v900_v53 = vcombine.high %v898_v47, %v898_v47  ;;  %v914_v54 = vrot.slane %v898_v47, %v7759_v9  ;;  %v3539_v58 = vrot.slane %v3531_v51, %v7759_v9  ;;  %v1899_v4 = vrot.slane %v8131_v55, %v7759_v9 }
  0xa2   : > { %v3530_v57 = vrot.slane %v3502_v49, %v7759_v9  ;;  %v962_v59 = vcombine.high %v954_v21, %v954_v21  ;;  %v970_v60 = vrot.slane %v954_v21, %v7759_v9  ;;  %v2665_v61 = vcombine.low %v2657_v46, %v2664_v52  ;;  %v224_v21 = vld [vmem:[%s7764_s26 + $0x168] sm:$0xff] }
  0xa3   : > { %v928_v62 = vrot.slane %v900_v53, %v7759_v9  ;;  %v930_v63 = vcombine.high %v914_v54, %v914_v54  ;;  %v2666_v0 = vcombine.low %v931_v44, %v914_v54  ;;  %v1857_v3 = vrot.slane %v1843_v56, %v7759_v9 }
  0xa4   : > { %v3532_v1 = vcombine.low %v3523_v50, %v3530_v57  ;;  %v984_v2 = vrot.slane %v962_v59, %v7759_v9  ;;  %7621 = vmatmul.mubr.msk.f32.gmra.mxu0 %vm3744_vm0, %v2665_v61  ;;  %v7486_v8 = vcombine.high %v1866_v34, %v1880_v42  ;;  %v1907_v16 = vcombine.high %v1899_v4, %v1899_v4  ;;  %v7447_v61 = vld.sshfl [vmem:[%s7764_s26 + $0xa0] sm:$0x1 pattern:$0x75316420] }
  0xa5   : > { %v932_v5 = vcombine.high %v928_v62, %v928_v62  ;;  %v2667_v6 = vcombine.low %v928_v62, %v930_v63  ;;  %v2676_v7 = vrot.slane %v2666_v0, %v7759_v9  ;;  %v1859_v12 = vcombine.high %v1857_v3, %v1857_v3 }
  0xa6   : > { %v3546_v10 = vrot.slane %v3532_v1, %v7759_v9  ;;  %v2669_v11 = vcombine.low %v970_v60, %v984_v2  ;;  %v1873_v13 = vrot.slane %v1857_v3, %v7759_v9  ;;  %v1915_v19 = vrot.slane %v1899_v4, %v7759_v9 }
  0xa7   : > { %v2668_v14 = vcombine.low %v932_v5, %v946_v48  ;;  %v2683_v15 = vrot.slane %v2667_v6, %v7759_v9  ;;  %v1887_v25 = vrot.slane %v1859_v12, %v7759_v9  ;;  %v3558_v26 = vrot.slane %v7486_v8, %v7759_v9  ;;  %v200_v8 = vld [vmem:[%s7764_s26 + $0xa8] sm:$0xff] }
  0xa8   : > { %v3547_v23 = vcombine.low %v3539_v58, %v3546_v10  ;;  %v2697_v24 = vrot.slane %v2669_v11, %v7759_v9  ;;  %v1929_v18 = vrot.slane %v1907_v16, %v7759_v9  ;;  %v947_v29 = vcombine.high %v197_v40, %v197_v40 }
  0xa9   : > { %v2690_v27 = vrot.slane %v2668_v14, %v7759_v9  ;;  %v2698_v28 = vcombine.low %v2676_v7, %v2683_v15  ;;  %v3549_v22 = vcombine.low %v1873_v13, %v1887_v25  ;;  %v7487_v30 = vcombine.high %v1873_v13, %v1887_v25 }
  0xaa   : > { %7648 = vmatmul.mubr.msk.f32.gmra.mxu1 %vm3744_vm0, %v3547_v23  ;;  %v1003_v31 = vrot.slane %v8148_v20, %v7759_v9  ;;  %v7470_v32 = vcombine.high %v970_v60, %v984_v2  ;;  %v3551_v35 = vcombine.low %v1915_v19, %v1929_v18  ;;  %v961_v36 = vrot.slane %v947_v29, %v7759_v9 }
  0xab   : > { %v2699_v33 = vcombine.low %v2690_v27, %v2697_v24  ;;  %v2706_v34 = vrot.slane %v2698_v28, %v7759_v9  ;;  %v3565_v37 = vrot.slane %v3549_v22, %v7759_v9  ;;  %v3572_v38 = vrot.slane %v7487_v30, %v7759_v9 }
  0xac   : > { %v1011_v39 = vcombine.high %v1003_v31, %v1003_v31  ;;  %v1019_v40 = vrot.slane %v1003_v31, %v7759_v9  ;;  %v3579_v17 = vrot.slane %v3551_v35, %v7759_v9  ;;  %v963_v43 = vcombine.high %v961_v36, %v961_v36 }
  0xad   : > { %v2713_v42 = vrot.slane %v2699_v33, %v7759_v9  ;;  %v977_v44 = vrot.slane %v961_v36, %v7759_v9  ;;  %v3580_v45 = vcombine.low %v3558_v26, %v3565_v37  ;;  %v2725_v47 = vrot.slane %v7470_v32, %v7759_v9  ;;  %v225_v37 = vld [vmem:[%s7764_s26 + $0x170] sm:$0xff] }
  0xae   : > { %v1033_v46 = vrot.slane %v1011_v39, %v7759_v9  ;;  %v1892_v48 = vcombine.high %v8131_v55, %v8131_v55  ;;  %v3581_v50 = vcombine.low %v3572_v38, %v3579_v17  ;;  %v991_v51 = vrot.slane %v963_v43, %v7759_v9 }
  0xaf   : > { %v2714_v49 = vcombine.low %v2706_v34, %v2713_v42  ;;  %v1954_v52 = vrot.slane %v7455_v41, %v7759_v9  ;;  %v3588_v53 = vrot.slane %v3580_v45, %v7759_v9  ;;  %v1962_v57 = vrot.slane %v224_v21, %v7759_v9 }
  0xb0   : > { %v2718_v54 = vcombine.low %v1019_v40, %v1033_v46  ;;  %v1906_v56 = vrot.slane %v1892_v48, %v7759_v9  ;;  %v3595_v58 = vrot.slane %v3581_v50, %v7759_v9  ;;  %v2716_v55 = vcombine.low %v977_v44, %v991_v51 }
  0xb1   : > { %7623 = vmatprep.mubr.msk.f32.mxu0 %vm3744_vm0, %v2714_v49  ;;  %v7471_v59 = vcombine.high %v977_v44, %v991_v51  ;;  %v7488_v60 = vcombine.high %v1915_v19, %v1929_v18  ;;  %v1978_v1 = vrot.slane %v1962_v57, %v7759_v9  ;;  %v996_v10 = vcombine.high %v8148_v20, %v8148_v20 }
  0xb2   : > { %v2746_v62 = vrot.slane %v2718_v54, %v7759_v9  ;;  %v1908_v63 = vcombine.high %v1906_v56, %v1906_v56  ;;  %v1922_v0 = vrot.slane %v1906_v56, %v7759_v9  ;;  %v3596_v2 = vcombine.low %v3588_v53, %v3595_v58 }
  0xb3   : > { %v2732_v3 = vrot.slane %v2716_v55, %v7759_v9  ;;  %v2739_v4 = vrot.slane %v7471_v59, %v7759_v9  ;;  %v3607_v5 = vrot.slane %v7488_v60, %v7759_v9  ;;  %v3600_v7 = vcombine.low %v1954_v52, %v1978_v1 }
  0xb4   : > { %v1936_v6 = vrot.slane %v1908_v63, %v7759_v9  ;;  %v1058_v11 = vrot.slane %v7447_v61, %v7759_v9  ;;  %7650 = vmatprep.mubr.msk.f32.mxu1 %vm3744_vm0, %v3596_v2  ;;  %v1066_v14 = vrot.slane %v200_v8, %v7759_v9  ;;  %v7472_v15 = vcombine.high %v1019_v40, %v1033_v46 }
  0xb5   : > { %v2747_v12 = vcombine.low %v2725_v47, %v2732_v3  ;;  %v2748_v13 = vcombine.low %v2739_v4, %v2746_v62  ;;  %v3628_v23 = vrot.slane %v3600_v7, %v7759_v9  ;;  %v1010_v24 = vrot.slane %v996_v10, %v7759_v9 }
  0xb6   : > { %v3598_v16 = vcombine.low %v1922_v0, %v1936_v6  ;;  %v7489_v19 = vcombine.high %v1922_v0, %v1936_v6  ;;  %v1082_v26 = vrot.slane %v1066_v14, %v7759_v9  ;;  %v2774_v27 = vrot.slane %v7472_v15, %v7759_v9 }
  0xb7   : > { %v2755_v25 = vrot.slane %v2747_v12, %v7759_v9  ;;  %v2762_v20 = vrot.slane %v2748_v13, %v7759_v9  ;;  %v1012_v29 = vcombine.high %v1010_v24, %v1010_v24  ;;  %v1026_v22 = vrot.slane %v1010_v24, %v7759_v9 }
  0xb8   : > { %v3614_v28 = vrot.slane %v3598_v16, %v7759_v9  ;;  %v3621_v18 = vrot.slane %v7489_v19, %v7759_v9  ;;  %v2767_v31 = vcombine.low %v1058_v11, %v1082_v26  ;;  %v1955_v32 = vcombine.high %v224_v21, %v224_v21 }
  0xb9   : > { %v2763_v30 = vcombine.low %v2755_v25, %v2762_v20  ;;  %v1970_v33 = vcombine.high %v1962_v57, %v1962_v57  ;;  %v1040_v36 = vrot.slane %v1012_v29, %v7759_v9  ;;  %v2000_v38 = vcombine.high %v1978_v1, %v1978_v1 }
  0xba   : > { %v3629_v34 = vcombine.low %v3607_v5, %v3614_v28  ;;  %v3630_v35 = vcombine.low %v3621_v18, %v3628_v23  ;;  %v2795_v39 = vrot.slane %v2767_v31, %v7759_v9  ;;  %v1969_v40 = vrot.slane %v1955_v32, %v7759_v9 }
  0xbb   : > { %7624 = vmatmul.mubr.msk.f32.gmra.mxu0 %vm3744_vm0, %v2763_v30  ;;  %v1992_v41 = vrot.slane %v1970_v33, %v7759_v9  ;;  %v2011_v42 = vrot.slane %v225_v37, %v7759_v9  ;;  %v2765_v44 = vcombine.low %v1026_v22, %v1040_v36  ;;  %v7473_v45 = vcombine.high %v1026_v22, %v1040_v36 }
  0xbc   : > { %v3637_v17 = vrot.slane %v3629_v34, %v7759_v9  ;;  %v3644_v43 = vrot.slane %v3630_v35, %v7759_v9  ;;  %v1971_v46 = vcombine.high %v1969_v40, %v1969_v40  ;;  %v1985_v47 = vrot.slane %v1969_v40, %v7759_v9 }
  0xbd   : > { %v2002_v48 = vcombine.high %v1992_v41, %v1992_v41  ;;  %v2027_v49 = vrot.slane %v2011_v42, %v7759_v9  ;;  %v2781_v51 = vrot.slane %v2765_v44, %v7759_v9  ;;  %v2788_v21 = vrot.slane %v7473_v45, %v7759_v9 }
  0xbe   : > { %v3645_v50 = vcombine.low %v3637_v17, %v3644_v43  ;;  %v3646_v52 = vcombine.low %v1992_v41, %v2000_v38  ;;  %v1999_v53 = vrot.slane %v1971_v46, %v7759_v9  ;;  %v2001_v54 = vcombine.high %v1985_v47, %v1985_v47 }
  0xbf   : > { %v3647_v56 = vcombine.low %v2002_v48, %v1985_v47  ;;  %v1059_v57 = vcombine.high %v200_v8, %v200_v8  ;;  %v2796_v58 = vcombine.low %v2774_v27, %v2781_v51  ;;  %v2797_v55 = vcombine.low %v2788_v21, %v2795_v39  ;;  %v201_v8 = vld [vmem:[%s7764_s26 + $0xb0] sm:$0xff]  ;;  %v7448_v48 = vld.sshfl [vmem:[%s7764_s26 + $0xb8] sm:$0x1 pattern:$0x75316420] }
  0xc0   : > { %7651 = vmatmul.mubr.msk.f32.gmra.mxu1 %vm3744_vm0, %v3645_v50  ;;  %v3656_v59 = vrot.slane %v3646_v52, %v7759_v9  ;;  %v1074_v60 = vcombine.high %v1066_v14, %v1066_v14  ;;  %v2003_v61 = vcombine.high %v1999_v53, %v1999_v53  ;;  %v3648_v62 = vcombine.low %v1999_v53, %v2001_v54 }
  0xc1   : > { %v3663_v63 = vrot.slane %v3647_v56, %v7759_v9  ;;  %v1073_v0 = vrot.slane %v1059_v57, %v7759_v9  ;;  %v2804_v1 = vrot.slane %v2796_v58, %v7759_v9  ;;  %v2811_v2 = vrot.slane %v2797_v55, %v7759_v9 }
  0xc2   : > { %v1096_v3 = vrot.slane %v1074_v60, %v7759_v9  ;;  %v1104_v4 = vcombine.high %v1082_v26, %v1082_v26  ;;  %v3649_v5 = vcombine.low %v2003_v61, %v2027_v49  ;;  %v3670_v6 = vrot.slane %v3648_v62, %v7759_v9  ;;  %v7456_v26 = vld.sshfl [vmem:[%s7764_s26 + $0x178] sm:$0x1 pattern:$0x75316420]  ;;  %v203_v61 = vld [vmem:[%s7764_s26 + $0xc0] sm:$0xff] }
  0xc3   : > { %v3678_v7 = vcombine.low %v3656_v59, %v3663_v63  ;;  %v1075_v10 = vcombine.high %v1073_v0, %v1073_v0  ;;  %v2812_v11 = vcombine.low %v2804_v1, %v2811_v2  ;;  %v1089_v12 = vrot.slane %v1073_v0, %v7759_v9 }
  0xc4   : > { %v1106_v13 = vcombine.high %v1096_v3, %v1096_v3  ;;  %v1115_v14 = vrot.slane %v201_v8, %v7759_v9  ;;  %v3677_v15 = vrot.slane %v3649_v5, %v7759_v9  ;;  %v2813_v23 = vcombine.low %v1096_v3, %v1104_v4 }
  0xc5   : > { %v3686_v16 = vrot.slane %v3678_v7, %v7759_v9  ;;  %v1103_v19 = vrot.slane %v1075_v10, %v7759_v9  ;;  %7626 = vmatprep.mubr.msk.f32.mxu0 %vm3744_vm0, %v2812_v11  ;;  %v1105_v24 = vcombine.high %v1089_v12, %v1089_v12  ;;  %v2004_v27 = vcombine.high %v225_v37, %v225_v37 }
  0xc6   : > { %v1131_v25 = vrot.slane %v1115_v14, %v7759_v9  ;;  %v2814_v20 = vcombine.low %v1106_v13, %v1089_v12  ;;  %v3679_v28 = vcombine.low %v3670_v6, %v3677_v15  ;;  %v2823_v29 = vrot.slane %v2813_v23, %v7759_v9 }
  0xc7   : > { %v1107_v18 = vcombine.high %v1103_v19, %v1103_v19  ;;  %v2019_v22 = vcombine.high %v2011_v42, %v2011_v42  ;;  %v2815_v30 = vcombine.low %v1103_v19, %v1105_v24  ;;  %v2018_v32 = vrot.slane %v2004_v27, %v7759_v9 }
  0xc8   : > { %v2830_v31 = vrot.slane %v2814_v20, %v7759_v9  ;;  %v2049_v33 = vcombine.high %v2027_v49, %v2027_v49  ;;  %v3693_v34 = vrot.slane %v3679_v28, %v7759_v9  ;;  %v2066_v38 = vrot.slane %v7456_v26, %v7759_v9 }
  0xc9   : > { %v2816_v35 = vcombine.low %v1107_v18, %v1131_v25  ;;  %v2041_v36 = vrot.slane %v2019_v22, %v7759_v9  ;;  %v2837_v37 = vrot.slane %v2815_v30, %v7759_v9  ;;  %v2020_v40 = vcombine.high %v2018_v32, %v2018_v32 }
  0xca   : > { %v2845_v39 = vcombine.low %v2823_v29, %v2830_v31  ;;  %v2034_v41 = vrot.slane %v2018_v32, %v7759_v9  ;;  %v3694_v42 = vcombine.low %v3686_v16, %v3693_v34  ;;  %v1108_v49 = vcombine.high %v201_v8, %v201_v8 }
  0xcb   : > { %v2844_v17 = vrot.slane %v2816_v35, %v7759_v9  ;;  %v2051_v43 = vcombine.high %v2041_v36, %v2041_v36  ;;  %v3695_v44 = vcombine.low %v2041_v36, %v2049_v33  ;;  %v2048_v46 = vrot.slane %v2020_v40, %v7759_v9 }
  0xcc   : > { %v2853_v45 = vrot.slane %v2845_v39, %v7759_v9  ;;  %v2050_v47 = vcombine.high %v2034_v41, %v2034_v41  ;;  %7653 = vmatprep.mubr.msk.f32.mxu1 %vm3744_vm0, %v3694_v42  ;;  %v1123_v52 = vcombine.high %v1115_v14, %v1115_v14  ;;  %v1122_v56 = vrot.slane %v1108_v49, %v7759_v9 }
  0xcd   : > { %v2846_v50 = vcombine.low %v2837_v37, %v2844_v17  ;;  %v3696_v51 = vcombine.low %v2051_v43, %v2034_v41  ;;  %v3705_v21 = vrot.slane %v3695_v44, %v7759_v9  ;;  %v2052_v53 = vcombine.high %v2048_v46, %v2048_v46 }
  0xce   : > { %v3697_v54 = vcombine.low %v2048_v46, %v2050_v47  ;;  %v1153_v57 = vcombine.high %v1131_v25, %v1131_v25  ;;  %v1145_v59 = vrot.slane %v1123_v52, %v7759_v9  ;;  %v1170_v60 = vrot.slane %v7448_v48, %v7759_v9 }
  0xcf   : > { %v2860_v58 = vrot.slane %v2846_v50, %v7759_v9  ;;  %v3712_v55 = vrot.slane %v3696_v51, %v7759_v9  ;;  %v3698_v62 = vcombine.low %v2052_v53, %v2066_v38  ;;  %v1124_v0 = vcombine.high %v1122_v56, %v1122_v56  ;;  %v8284_v51 = vld [vmem:[%s8972_s2] ss:$0 sm:$0xff] }
  0xd0   : > { %v3719_v63 = vrot.slane %v3697_v54, %v7759_v9  ;;  %v1138_v1 = vrot.slane %v1122_v56, %v7759_v9  ;;  %v1155_v4 = vcombine.high %v1145_v59, %v1145_v59  ;;  %v2862_v5 = vcombine.low %v1145_v59, %v1153_v57 }
  0xd1   : > { %v2861_v2 = vcombine.low %v2853_v45, %v2860_v58  ;;  %v3727_v3 = vcombine.low %v3705_v21, %v3712_v55  ;;  %v3726_v6 = vrot.slane %v3698_v62, %v7759_v9  ;;  %v1152_v7 = vrot.slane %v1124_v0, %v7759_v9 }
  0xd2   : > { %v1154_v8 = vcombine.high %v1138_v1, %v1138_v1  ;;  %v1171_v10 = vcombine.high %v203_v61, %v203_v61  ;;  %v2863_v12 = vcombine.low %v1155_v4, %v1138_v1  ;;  %v2872_v13 = vrot.slane %v2862_v5, %v7759_v9 }
  0xd3   : > { %7627 = vmatmul.mubr.msk.f32.gmra.mxu0 %vm3744_vm0, %v2861_v2  ;;  %v3735_v11 = vrot.slane %v3727_v3, %v7759_v9  ;;  %v1178_v14 = vrot.slane %v203_v61, %v7759_v9  ;;  %v3728_v15 = vcombine.low %v3719_v63, %v3726_v6  ;;  %v1156_v16 = vcombine.high %v1152_v7, %v1152_v7 }
  0xd4   : > { %v2864_v19 = vcombine.low %v1152_v7, %v1154_v8  ;;  %v1185_v23 = vrot.slane %v1171_v10, %v7759_v9  ;;  %v2879_v24 = vrot.slane %v2863_v12, %v7759_v9 }
  0xd5   : > { %v1186_v25 = vcombine.high %v1178_v14, %v1178_v14  ;;  %v1194_v20 = vrot.slane %v1178_v14, %v7759_v9  ;;  %v3742_v26 = vrot.slane %v3728_v15, %v7759_v9  ;;  %v2865_v27 = vcombine.low %v1156_v16, %v1170_v60 }
  0xd6   : > { %v2886_v28 = vrot.slane %v2864_v19, %v7759_v9  ;;  %v1187_v18 = vcombine.high %v1185_v23, %v1185_v23  ;;  %v2894_v29 = vcombine.low %v2872_v13, %v2879_v24  ;;  %v1201_v22 = vrot.slane %v1185_v23, %v7759_v9 }
  0xd7   : > { %v1208_v30 = vrot.slane %v1186_v25, %v7759_v9  ;;  %v3743_v31 = vcombine.low %v3735_v11, %v3742_v26  ;;  %v2893_v32 = vrot.slane %v2865_v27, %v7759_v9 }
  0xd8   : > { %v1215_v33 = vrot.slane %v1187_v18, %v7759_v9  ;;  %v2902_v38 = vrot.slane %v2894_v29, %v7759_v9 }
  0xd9   : > { %v2911_v34 = vcombine.low %v1194_v20, %v1208_v30  ;;  %v7474_v35 = vcombine.high %v1194_v20, %v1208_v30  ;;  %7654 = vmatmul.mubr.msk.f32.gmra.mxu1 %vm3744_vm0, %v3743_v31  ;;  %v2895_v36 = vcombine.low %v2886_v28, %v2893_v32 }
  0xda   : > { %v2913_v37 = vcombine.low %v1201_v22, %v1215_v33  ;;  %v7475_v39 = vcombine.high %v1201_v22, %v1215_v33 }
  0xdb   : > { %v2921_v40 = vrot.slane %v2911_v34, %v7759_v9  ;;  %v2928_v41 = vrot.slane %v7474_v35, %v7759_v9  ;;  %v2909_v42 = vrot.slane %v2895_v36, %v7759_v9 }
  0xdc   : > { %v2935_v17 = vrot.slane %v2913_v37, %v7759_v9  ;;  %v2942_v43 = vrot.slane %v7475_v39, %v7759_v9 }
  0xdd   : > { %v2943_v44 = vcombine.low %v2921_v40, %v2928_v41  ;;  %v2910_v45 = vcombine.low %v2902_v38, %v2909_v42 }
  0xde   : > { %v2944_v46 = vcombine.low %v2935_v17, %v2942_v43 }
  0xdf   : > { %v2951_v47 = vrot.slane %v2943_v44, %v7759_v9  ;;  %7629 = vmatprep.mubr.msk.f32.mxu0 %vm3744_vm0, %v2910_v45 }
  0xe0   : > { %v2958_v48 = vrot.slane %v2944_v46, %v7759_v9 }
  0xe2   : > { %v2959_v49 = vcombine.low %v2951_v47, %v2958_v48 }
  0xe4   : > { %7630 = vmatmul.mubr.msk.f32.gmra.mxu0 %vm3744_vm0, %v2959_v49 }
  0xe8   : > { %v7607_v50 = vpop.f32.mrf.mxu0 }
  0xe9   : > { %v3885_v53 = vadd.f32 %v7607_v50, %v8284_v51 }
  0xea   : > { %v3879_v21 = vpop.f32.mrf.mxu0 }
  0xeb   : > { %v3880_v52 = vadd.f32 %v8284_v51, %v3879_v21  ;;  %v4138_v57 = vrot.slane %v3885_v53, %v7759_v9  ;;  %v4131_v2 = vcombine.high %v3885_v53, %v3885_v53 }
  0xed   : > { %v4082_v54 = vcombine.high %v3880_v52, %v3880_v52  ;;  %v4089_v56 = vrot.slane %v3880_v52, %v7759_v9  ;;  %v4146_v3 = vcombine.high %v4138_v57, %v4138_v57  ;;  %v4154_v10 = vrot.slane %v4138_v57, %v7759_v9 }
  0xee   : > { %v4145_v15 = vrot.slane %v4131_v2, %v7759_v9 }
  0xef   : > { %v4096_v58 = vrot.slane %v4082_v54, %v7759_v9  ;;  %v4097_v55 = vcombine.high %v4089_v56, %v4089_v56  ;;  %v4105_v59 = vrot.slane %v4089_v56, %v7759_v9  ;;  %v4168_v16 = vrot.slane %v4146_v3, %v7759_v9 }
  0xf0   : > { %v4147_v22 = vcombine.high %v4145_v15, %v4145_v15  ;;  %v4161_v33 = vrot.slane %v4145_v15, %v7759_v9  ;;  %v4176_v38 = vcombine.high %v4154_v10, %v4154_v10 }
  0xf1   : > { %v4098_v61 = vcombine.high %v4096_v58, %v4096_v58  ;;  %v4112_v62 = vrot.slane %v4096_v58, %v7759_v9  ;;  %v4119_v63 = vrot.slane %v4097_v55, %v7759_v9  ;;  %v4127_v0 = vcombine.high %v4105_v59, %v4105_v59 }
  0xf2   : > { %v7634_v60 = vpop.f32.mrf.mxu1  ;;  %v4178_v30 = vcombine.high %v4168_v16, %v4168_v16  ;;  %v5789_v52 = vcombine.low %v4168_v16, %v4176_v38  ;;  %v4175_v55 = vrot.slane %v4147_v22, %v7759_v9  ;;  %v4177_v59 = vcombine.high %v4161_v33, %v4161_v33 }
  0xf3   : > { %v4126_v4 = vrot.slane %v4098_v61, %v7759_v9  ;;  %v4128_v5 = vcombine.high %v4112_v62, %v4112_v62  ;;  %v4129_v6 = vcombine.high %v4119_v63, %v4119_v63  ;;  %v5740_v7 = vcombine.low %v4119_v63, %v4127_v0 }
  0xf4   : > { %v3969_v1 = vpop.f32.mrf.mxu1  ;;  %v3975_v12 = vadd.f32 %v7634_v60, %v8284_v51  ;;  %v5790_v44 = vcombine.low %v4178_v30, %v4161_v33  ;;  %v5799_v2 = vrot.slane %v5789_v52, %v7759_v9 }
  0xf5   : > { %v3970_v8 = vadd.f32 %v8284_v51, %v3969_v1  ;;  %v4130_v11 = vcombine.high %v4126_v4, %v4126_v4  ;;  %v5741_v13 = vcombine.low %v4129_v6, %v4112_v62  ;;  %v5742_v14 = vcombine.low %v4126_v4, %v4128_v5 }
  0xf6   : > { %v5750_v23 = vrot.slane %v5740_v7, %v7759_v9  ;;  %v5009_v28 = vcombine.high %v3975_v12, %v3975_v12  ;;  %v5016_v31 = vrot.slane %v3975_v12, %v7759_v9  ;;  %v5806_v61 = vrot.slane %v5790_v44, %v7759_v9 }
  0xf7   : > { %v5743_v19 = vcombine.low %v4130_v11, %v4154_v10  ;;  %v5757_v24 = vrot.slane %v5741_v13, %v7759_v9  ;;  %v4960_v25 = vcombine.high %v3970_v8, %v3970_v8  ;;  %v5764_v20 = vrot.slane %v5742_v14, %v7759_v9 }
  0xf8   : > { %v4967_v27 = vrot.slane %v3970_v8, %v7759_v9  ;;  %v5023_v41 = vrot.slane %v5009_v28, %v7759_v9  ;;  %v5024_v45 = vcombine.high %v5016_v31, %v5016_v31  ;;  %v5032_v48 = vrot.slane %v5016_v31, %v7759_v9 }
  0xf9   : > { %v5771_v26 = vrot.slane %v5743_v19, %v7759_v9  ;;  %v5772_v18 = vcombine.low %v5750_v23, %v5757_v24  ;;  %v4974_v29 = vrot.slane %v4960_v25, %v7759_v9  ;;  %v5791_v10 = vcombine.low %v4175_v55, %v4177_v59 }
  0xfa   : > { %v4975_v34 = vcombine.high %v4967_v27, %v4967_v27  ;;  %v8309_v36 = vrot.slane %v4967_v27, %v7759_v9  ;;  %v5025_v54 = vcombine.high %v5023_v41, %v5023_v41  ;;  %v5046_v62 = vrot.slane %v5024_v45, %v7759_v9 }
  0xfb   : > { %v5773_v32 = vcombine.low %v5764_v20, %v5771_v26  ;;  %v4976_v35 = vcombine.high %v4974_v29, %v4974_v29  ;;  %v5780_v37 = vrot.slane %v5772_v18, %v7759_v9  ;;  %v4990_v40 = vrot.slane %v4974_v29, %v7759_v9 }
  0xfc   : > { %v4997_v42 = vrot.slane %v4975_v34, %v7759_v9  ;;  %v5005_v43 = vcombine.high %v8309_v36, %v8309_v36  ;;  %v5039_v4 = vrot.slane %v5023_v41, %v7759_v9  ;;  %v5053_v5 = vrot.slane %v5025_v54, %v7759_v9 }
  0xfd   : > { %v5787_v39 = vrot.slane %v5773_v32, %v7759_v9  ;;  %v5004_v17 = vrot.slane %v4976_v35, %v7759_v9  ;;  %v5006_v47 = vcombine.high %v4990_v40, %v4990_v40  ;;  %v8341_v14 = vcombine.low %v5799_v2, %v5806_v61 }
  0xfe   : > { %v5007_v49 = vcombine.high %v4997_v42, %v4997_v42  ;;  %v6573_v21 = vcombine.low %v4997_v42, %v5005_v43  ;;  %v7540_v15 = vcombine.high %v5032_v48, %v5046_v62  ;;  %v4179_v26 = vcombine.high %v4175_v55, %v4175_v55 }
  0xff   : > { %v5788_v46 = vcombine.low %v5780_v37, %v5787_v39  ;;  %v5008_v50 = vcombine.high %v5004_v17, %v5004_v17  ;;  %v6575_v53 = vcombine.low %v5004_v17, %v5006_v47  ;;  %v6623_v27 = vcombine.low %v5039_v4, %v5053_v5 }
 0x100   : > { %v6574_v56 = vcombine.low %v5007_v49, %v4990_v40  ;;  %v6583_v58 = vrot.slane %v6573_v21, %v7759_v9  ;;  %v7541_v22 = vcombine.high %v5039_v4, %v5053_v5  ;;  %v5829_v42 = vrot.slane %v8341_v14, %v7759_v9 }
 0x101   : > { %7341 = vst.msk [vmem:[%s8324_s5] sm:$0xff] %vm7340_vm1, %v5788_v46  ;;  %v6576_v57 = vcombine.low %v5008_v50, %v5032_v48  ;;  %v6597_v60 = vrot.slane %v6575_v53, %v7759_v9  ;;  %v5813_v44 = vrot.slane %v5791_v10, %v7759_v9  ;;  %v6632_v45 = vrot.slane %v7540_v15, %v7759_v9 }
 0x102   : > { %v6590_v63 = vrot.slane %v6574_v56, %v7759_v9  ;;  %v6639_v46 = vrot.slane %v6623_v27, %v7759_v9  ;;  %v8367_v53 = vrot.slane %v7541_v22, %v7759_v9 }
 0x103   : > { %v6604_v0 = vrot.slane %v6576_v57, %v7759_v9 }
 0x104   : > { %v6605_v6 = vcombine.low %v6583_v58, %v6590_v63  ;;  %v6654_v2 = vcombine.low %v6632_v45, %v6639_v46 }
 0x105   : > { %v7610_v1 = vpop.f32.mrf.mxu0  ;;  %v6606_v7 = vcombine.low %v6597_v60, %v6604_v0 }
 0x106   : > { %v3895_v3 = vadd.f32 %v7610_v1, %v8284_v51  ;;  %v6613_v16 = vrot.slane %v6605_v6, %v7759_v9 }
 0x107   : > { %v3889_v8 = vpop.f32.mrf.mxu0  ;;  %v6620_v19 = vrot.slane %v6606_v7, %v7759_v9 }
 0x108   : > { %v4229_v11 = vcombine.high %v3895_v3, %v3895_v3  ;;  %v4236_v12 = vrot.slane %v3895_v3, %v7759_v9  ;;  %v3890_v13 = vadd.f32 %v8284_v51, %v3889_v8 }
 0x109   : > { %v6621_v28 = vcombine.low %v6613_v16, %v6620_v19 }
 0x10a   : > { %v7637_v23 = vpop.f32.mrf.mxu1  ;;  %v4243_v24 = vrot.slane %v4229_v11, %v7759_v9  ;;  %v4244_v25 = vcombine.high %v4236_v12, %v4236_v12  ;;  %v4180_v18 = vcombine.high %v3890_v13, %v3890_v13  ;;  %v4187_v29 = vrot.slane %v3890_v13, %v7759_v9 }
 0x10b   : > { %v3985_v20 = vadd.f32 %v7637_v23, %v8284_v51  ;;  %7358 = vst.msk [vmem:[%s8324_s5 + $0x88] sm:$0xff] %vm7340_vm1, %v6621_v28  ;;  %v4252_v33 = vrot.slane %v4236_v12, %v7759_v9 }
 0x10c   : > { %v4245_v30 = vcombine.high %v4243_v24, %v4243_v24  ;;  %v4266_v31 = vrot.slane %v4244_v25, %v7759_v9  ;;  %v4194_v35 = vrot.slane %v4180_v18, %v7759_v9  ;;  %v4195_v38 = vcombine.high %v4187_v29, %v4187_v29  ;;  %v3979_v1 = vpop.f32.mrf.mxu1 }
 0x10d   : > { %v5107_v32 = vcombine.high %v3985_v20, %v3985_v20  ;;  %v5114_v34 = vrot.slane %v3985_v20, %v7759_v9  ;;  %v4259_v37 = vrot.slane %v4243_v24, %v7759_v9  ;;  %v4203_v41 = vrot.slane %v4187_v29, %v7759_v9 }
 0x10e   : > { %v4273_v39 = vrot.slane %v4245_v30, %v7759_v9  ;;  %v4196_v43 = vcombine.high %v4194_v35, %v4194_v35  ;;  %v5841_v47 = vcombine.low %v4252_v33, %v4266_v31  ;;  %v4217_v52 = vrot.slane %v4195_v38, %v7759_v9 }
 0x10f   : > { %v5121_v40 = vrot.slane %v5107_v32, %v7759_v9  ;;  %v5122_v17 = vcombine.high %v5114_v34, %v5114_v34  ;;  %v4210_v54 = vrot.slane %v4194_v35, %v7759_v9  ;;  %v5792_v57 = vcombine.low %v4179_v26, %v4203_v41 }
 0x110   : > { %v5888_v48 = vcombine.low %v4259_v37, %v4273_v39  ;;  %v4224_v56 = vrot.slane %v4196_v43, %v7759_v9  ;;  %v7526_v58 = vcombine.high %v4252_v33, %v4266_v31  ;;  %v5130_v61 = vrot.slane %v5114_v34, %v7759_v9 }
 0x111   : > { %v5123_v49 = vcombine.high %v5121_v40, %v5121_v40  ;;  %v5137_v50 = vrot.slane %v5121_v40, %v7759_v9  ;;  %v5144_v21 = vrot.slane %v5122_v17, %v7759_v9  ;;  %v5820_v62 = vrot.slane %v5792_v57, %v7759_v9 }
 0x112   : > { %v7524_v63 = vcombine.high %v4203_v41, %v4217_v52  ;;  %v5839_v0 = vcombine.low %v4210_v54, %v4224_v56  ;;  %v5869_v3 = vrot.slane %v5841_v47, %v7759_v9  ;;  %v5904_v4 = vrot.slane %v5888_v48, %v7759_v9 }
 0x113   : > { %v8372_v55 = vrot.slane %v5123_v49, %v7759_v9  ;;  %v5152_v59 = vcombine.high %v5137_v50, %v5137_v50  ;;  %v5153_v60 = vcombine.high %v5144_v21, %v5144_v21  ;;  %v7525_v5 = vcombine.high %v4210_v54, %v4224_v56 }
 0x114   : > { %v5822_v7 = vcombine.low %v5813_v44, %v5820_v62  ;;  %v5848_v8 = vrot.slane %v7524_v63, %v7759_v9  ;;  %v5855_v10 = vrot.slane %v5839_v0, %v7759_v9  ;;  %v7527_v11 = vcombine.high %v4259_v37, %v4273_v39 }
 0x115   : > { %v6720_v6 = vcombine.low %v5153_v60, %v5137_v50  ;;  %v6721_v12 = vcombine.low %v8372_v55, %v5152_v59  ;;  %v5862_v13 = vrot.slane %v7525_v5, %v7759_v9  ;;  %v3980_v14 = vadd.f32 %v8284_v51, %v3979_v1 }
 0x116   : > { %v5897_v15 = vrot.slane %v7526_v58, %v7759_v9  ;;  %v6674_v16 = vcombine.low %v5130_v61, %v5144_v21  ;;  %v5836_v19 = vrot.slane %v5822_v7, %v7759_v9  ;;  %v5870_v23 = vcombine.low %v5848_v8, %v5855_v10 }
 0x117   : > { %v8386_v24 = vrot.slane %v6654_v2, %v7759_v9  ;;  %v5871_v25 = vcombine.low %v5862_v13, %v5869_v3  ;;  %v5058_v20 = vcombine.high %v3980_v14, %v3980_v14  ;;  %v5065_v26 = vrot.slane %v3980_v14, %v7759_v9 }
 0x118   : > { %v5919_v27 = vcombine.low %v5897_v15, %v5904_v4  ;;  %v6730_v28 = vrot.slane %v6720_v6, %v7759_v9  ;;  %v5837_v18 = vcombine.low %v5829_v42, %v5836_v19  ;;  %v5878_v29 = vrot.slane %v5870_v23, %v7759_v9 }
 0x119   : > { %v6737_v30 = vrot.slane %v6721_v12, %v7759_v9  ;;  %v5885_v31 = vrot.slane %v5871_v25, %v7759_v9  ;;  %v5072_v32 = vrot.slane %v5058_v20, %v7759_v9  ;;  %v5073_v33 = vcombine.high %v5065_v26, %v5065_v26 }
 0x11a   : > { %v7613_v22 = vpop.f32.mrf.mxu0  ;;  %v8395_v34 = vrot.slane %v7527_v11, %v7759_v9  ;;  %v6702_v35 = vrot.slane %v6674_v16, %v7759_v9  ;;  %7342 = vst.msk [vmem:[%s8324_s5 + $0x8] sm:$0xff] %vm7340_vm1, %v5837_v18  ;;  %v5081_v38 = vrot.slane %v5065_v26, %v7759_v9  ;;  %v8405_v43 = vrot.slane %v5919_v27, %v7759_v9 }
 0x11b   : > { %v3905_v37 = vadd.f32 %v7613_v22, %v8284_v51  ;;  %v5886_v39 = vcombine.low %v5878_v29, %v5885_v31  ;;  %v5074_v40 = vcombine.high %v5072_v32, %v5072_v32  ;;  %v5088_v41 = vrot.slane %v5072_v32, %v7759_v9 }
 0x11c   : > { %v5095_v42 = vrot.slane %v5073_v33, %v7759_v9  ;;  %v3899_v17 = vpop.f32.mrf.mxu0  ;;  %v5154_v46 = vcombine.high %v8372_v55, %v8372_v55  ;;  %v8410_v47 = vcombine.low %v6730_v28, %v6737_v30 }
 0x11d   : > { %v4326_v44 = vcombine.high %v3905_v37, %v3905_v37  ;;  %v4333_v45 = vrot.slane %v3905_v37, %v7759_v9  ;;  %7343 = vst.msk [vmem:[%s8324_s5 + $0x10] sm:$0xff] %vm7340_vm1, %v5886_v39  ;;  %v5102_v48 = vrot.slane %v5074_v40, %v7759_v9  ;;  %v3900_v56 = vadd.f32 %v8284_v51, %v3899_v17 }
 0x11e   : > { %v6625_v49 = vcombine.low %v5081_v38, %v5095_v42  ;;  %v7542_v50 = vcombine.high %v5081_v38, %v5095_v42  ;;  %v6760_v27 = vrot.slane %v8410_v47, %v7759_v9 }
 0x11f   : > { %v4340_v21 = vrot.slane %v4326_v44, %v7759_v9  ;;  %v4341_v52 = vcombine.high %v4333_v45, %v4333_v45  ;;  %v8417_v54 = vrot.slane %v4333_v45, %v7759_v9  ;;  %v6672_v58 = vcombine.low %v5088_v41, %v5102_v48 }
 0x120   : > { %v6653_v57 = vrot.slane %v6625_v49, %v7759_v9  ;;  %v7543_v59 = vcombine.high %v5088_v41, %v5102_v48  ;;  %v6681_v60 = vrot.slane %v7542_v50, %v7759_v9  ;;  %v4278_v10 = vcombine.high %v3900_v56, %v3900_v56 }
 0x121   : > { %v4342_v61 = vcombine.high %v4340_v21, %v4340_v21  ;;  %v4356_v62 = vrot.slane %v4340_v21, %v7759_v9  ;;  %v4363_v63 = vrot.slane %v4341_v52, %v7759_v9  ;;  %v4371_v0 = vcombine.high %v8417_v54, %v8417_v54 }
 0x122   : > { %v7640_v1 = vpop.f32.mrf.mxu1  ;;  %v6655_v2 = vcombine.low %v8367_v53, %v6653_v57  ;;  %v6688_v3 = vrot.slane %v6672_v58, %v7759_v9  ;;  %v6695_v4 = vrot.slane %v7543_v59, %v7759_v9  ;;  %v4285_v32 = vrot.slane %v3900_v56, %v7759_v9 }
 0x123   : > { %v3995_v5 = vadd.f32 %v7640_v1, %v8284_v51  ;;  %v8431_v6 = vrot.slane %v4342_v61, %v7759_v9  ;;  %v4372_v7 = vcombine.high %v4356_v62, %v4356_v62  ;;  %v4373_v8 = vcombine.high %v4363_v63, %v4363_v63 }
 0x124   : > { %v6669_v11 = vrot.slane %v6655_v2, %v7759_v9  ;;  %v6703_v12 = vcombine.low %v6681_v60, %v6688_v3  ;;  %v6704_v13 = vcombine.low %v6695_v4, %v6702_v35  ;;  %v8434_v15 = vcombine.low %v4363_v63, %v4371_v0  ;;  %v3989_v22 = vpop.f32.mrf.mxu1 }
 0x125   : > { %v5204_v14 = vcombine.high %v3995_v5, %v3995_v5  ;;  %v5985_v53 = vcombine.low %v4373_v8, %v4356_v62  ;;  %v5986_v16 = vcombine.low %v8431_v6, %v4372_v7  ;;  %v5211_v19 = vrot.slane %v3995_v5, %v7759_v9 }
 0x126   : > { %v6670_v23 = vcombine.low %v8386_v24, %v6669_v11  ;;  %v6711_v25 = vrot.slane %v6703_v12, %v7759_v9  ;;  %v6718_v20 = vrot.slane %v6704_v13, %v7759_v9  ;;  %v4292_v37 = vrot.slane %v4278_v10, %v7759_v9 }
 0x127   : > { %v5218_v26 = vrot.slane %v5204_v14, %v7759_v9  ;;  %v5995_v28 = vrot.slane %v5985_v53, %v7759_v9  ;;  %v5219_v18 = vcombine.high %v5211_v19, %v5211_v19  ;;  %v8446_v29 = vrot.slane %v5211_v19, %v7759_v9 }
 0x128   : > { %v6719_v30 = vcombine.low %v6711_v25, %v6718_v20  ;;  %7359 = vst.msk [vmem:[%s8324_s5 + $0x90] sm:$0xff] %vm7340_vm1, %v6670_v23  ;;  %v6002_v33 = vrot.slane %v5986_v16, %v7759_v9  ;;  %v5967_v39 = vrot.slane %v8434_v15, %v7759_v9  ;;  %v4293_v41 = vcombine.high %v4285_v32, %v4285_v32 }
 0x129   : > { %v5220_v24 = vcombine.high %v5218_v26, %v5218_v26  ;;  %v5234_v31 = vrot.slane %v5218_v26, %v7759_v9  ;;  %v5241_v35 = vrot.slane %v5219_v18, %v7759_v9  ;;  %v5249_v38 = vcombine.high %v8446_v29, %v8446_v29 }
 0x12a   : > { %7360 = vst.msk [vmem:[%s8324_s5 + $0x98] sm:$0xff] %vm7340_vm1, %v6719_v30  ;;  %v3990_v42 = vadd.f32 %v8284_v51, %v3989_v22  ;;  %v4294_v44 = vcombine.high %v4292_v37, %v4292_v37  ;;  %v4301_v45 = vrot.slane %v4285_v32, %v7759_v9  ;;  %v4308_v48 = vrot.slane %v4292_v37, %v7759_v9 }
 0x12b   : > { %v5248_v40 = vrot.slane %v5220_v24, %v7759_v9  ;;  %v8463_v17 = vcombine.low %v5241_v35, %v5249_v38  ;;  %v4315_v21 = vrot.slane %v4293_v41, %v7759_v9  ;;  %v8468_v56 = vcombine.low %v5995_v28, %v6002_v33 }
 0x12c   : > { %v5155_v52 = vcombine.high %v3990_v42, %v3990_v42  ;;  %v4322_v57 = vrot.slane %v4294_v44, %v7759_v9  ;;  %v4323_v58 = vcombine.high %v4308_v48, %v4308_v48  ;;  %v5162_v59 = vrot.slane %v3990_v42, %v7759_v9 }
 0x12d   : > { %v6818_v49 = vcombine.low %v5234_v31, %v5248_v40  ;;  %v7544_v50 = vcombine.high %v5234_v31, %v5248_v40  ;;  %v4324_v62 = vcombine.high %v4315_v21, %v4315_v21  ;;  %v5890_v63 = vcombine.low %v4301_v45, %v4315_v21 }
 0x12e   : > { %v4325_v0 = vcombine.high %v4322_v57, %v4322_v57  ;;  %v5937_v1 = vcombine.low %v4322_v57, %v4323_v58  ;;  %v5169_v2 = vrot.slane %v5155_v52, %v7759_v9  ;;  %v5170_v3 = vcombine.high %v5162_v59, %v5162_v59 }
 0x12f   : > { %v8473_v60 = vrot.slane %v6818_v49, %v7759_v9  ;;  %v8476_v61 = vrot.slane %v7544_v50, %v7759_v9  ;;  %v6800_v4 = vrot.slane %v8463_v17, %v7759_v9  ;;  %v5918_v5 = vrot.slane %v5890_v63, %v7759_v9 }
 0x130   : > { %v5936_v7 = vcombine.low %v4324_v62, %v4308_v48  ;;  %v5178_v8 = vrot.slane %v5162_v59, %v7759_v9  ;;  %v5938_v10 = vcombine.low %v4325_v0, %v8417_v54  ;;  %v5953_v11 = vrot.slane %v5937_v1, %v7759_v9 }
 0x131   : > { %v5171_v12 = vcombine.high %v5169_v2, %v5169_v2  ;;  %v5185_v13 = vrot.slane %v5169_v2, %v7759_v9  ;;  %v6850_v14 = vcombine.low %v8473_v60, %v8476_v61  ;;  %v5920_v15 = vcombine.low %v8395_v34, %v5918_v5 }
 0x132   : > { %v5946_v53 = vrot.slane %v5936_v7, %v7759_v9  ;;  %v5192_v16 = vrot.slane %v5170_v3, %v7759_v9  ;;  %v5960_v19 = vrot.slane %v5938_v10, %v7759_v9  ;;  %v5200_v25 = vcombine.high %v5178_v8, %v5178_v8 }
 0x133   : > { %v5199_v23 = vrot.slane %v5171_v12, %v7759_v9  ;;  %v5201_v54 = vcombine.high %v5185_v13, %v5185_v13  ;;  %v5934_v20 = vrot.slane %v5920_v15, %v7759_v9  ;;  %v6722_v18 = vcombine.low %v5154_v46, %v5178_v8 }
 0x134   : > { %v5968_v26 = vcombine.low %v5946_v53, %v5953_v11  ;;  %v5202_v28 = vcombine.high %v5192_v16, %v5192_v16  ;;  %v5969_v22 = vcombine.low %v5960_v19, %v5967_v39  ;;  %v6723_v24 = vcombine.low %v5192_v16, %v5200_v25 }
 0x135   : > { %v5203_v30 = vcombine.high %v5199_v23, %v5199_v23  ;;  %v6770_v31 = vcombine.low %v5199_v23, %v5201_v54  ;;  %v5935_v32 = vcombine.low %v8405_v43, %v5934_v20  ;;  %v6744_v35 = vrot.slane %v6722_v18, %v7759_v9 }
 0x136   : > { %v7616_v34 = vpop.f32.mrf.mxu0  ;;  %v5976_v33 = vrot.slane %v5968_v26, %v7759_v9  ;;  %v6769_v38 = vcombine.low %v5202_v28, %v5185_v13  ;;  %v5983_v40 = vrot.slane %v5969_v22, %v7759_v9  ;;  %v6751_v41 = vrot.slane %v6723_v24, %v7759_v9 }
 0x137   : > { %v6771_v55 = vcombine.low %v5203_v30, %v8446_v29  ;;  %v6786_v46 = vrot.slane %v6770_v31, %v7759_v9  ;;  %7344 = vst.msk [vmem:[%s8324_s5 + $0x18] sm:$0xff] %vm7340_vm1, %v5935_v32  ;;  %v3915_v42 = vadd.f32 %v7616_v34, %v8284_v51  ;;  %v4374_v29 = vcombine.high %v8431_v6, %v8431_v6 }
 0x138   : > { %v3909_v37 = vpop.f32.mrf.mxu0  ;;  %v6779_v43 = vrot.slane %v6769_v38, %v7759_v9  ;;  %v5984_v45 = vcombine.low %v5976_v33, %v5983_v40  ;;  %v6753_v48 = vcombine.low %v6744_v35, %v6751_v41 }
 0x139   : > { %v7643_v39 = vpop.f32.mrf.mxu1  ;;  %v3910_v44 = vadd.f32 %v8284_v51, %v3909_v37  ;;  %v6793_v49 = vrot.slane %v6771_v55, %v7759_v9  ;;  %v4423_v21 = vcombine.high %v3915_v42, %v3915_v42  ;;  %v4430_v52 = vrot.slane %v3915_v42, %v7759_v9 }
 0x13a   : > { %v4005_v17 = vadd.f32 %v7643_v39, %v8284_v51  ;;  %v6801_v50 = vcombine.low %v6779_v43, %v6786_v46  ;;  %7345 = vst.msk [vmem:[%s8324_s5 + $0x20] sm:$0xff] %vm7340_vm1, %v5984_v45  ;;  %v6767_v58 = vrot.slane %v6753_v48, %v7759_v9  ;;  %v6025_v39 = vrot.slane %v8468_v56, %v7759_v9 }
 0x13b   : > { %v6802_v59 = vcombine.low %v6793_v49, %v6800_v4  ;;  %v4375_v63 = vcombine.high %v3910_v44, %v3910_v44  ;;  %v4437_v1 = vrot.slane %v4423_v21, %v7759_v9  ;;  %v4438_v2 = vcombine.high %v4430_v52, %v4430_v52  ;;  %v3999_v46 = vpop.f32.mrf.mxu1 }
 0x13c   : > { %v5301_v57 = vcombine.high %v4005_v17, %v4005_v17  ;;  %v5308_v62 = vrot.slane %v4005_v17, %v7759_v9  ;;  %v6809_v0 = vrot.slane %v6801_v50, %v7759_v9  ;;  %v4446_v6 = vrot.slane %v4430_v52, %v7759_v9 }
 0x13d   : > { %v6768_v3 = vcombine.low %v6760_v27, %v6767_v58  ;;  %v6816_v5 = vrot.slane %v6802_v59, %v7759_v9  ;;  %v4439_v8 = vcombine.high %v4437_v1, %v4437_v1  ;;  %v4453_v10 = vrot.slane %v4437_v1, %v7759_v9 }
 0x13e   : > { %v5315_v4 = vrot.slane %v5301_v57, %v7759_v9  ;;  %v5316_v7 = vcombine.high %v5308_v62, %v5308_v62  ;;  %v4460_v11 = vrot.slane %v4438_v2, %v7759_v9  ;;  %v5324_v12 = vrot.slane %v5308_v62, %v7759_v9 }
 0x13f   : > { %v6817_v13 = vcombine.low %v6809_v0, %v6816_v5  ;;  %7361 = vst.msk [vmem:[%s8324_s5 + $0xa0] sm:$0xff] %vm7340_vm1, %v6768_v3  ;;  %v4467_v53 = vrot.slane %v4439_v8, %v7759_v9  ;;  %v4382_v23 = vrot.slane %v3910_v44, %v7759_v9  ;;  %v4389_v32 = vrot.slane %v4375_v63, %v7759_v9 }
 0x140   : > { %v5317_v15 = vcombine.high %v5315_v4, %v5315_v4  ;;  %v5331_v47 = vrot.slane %v5315_v4, %v7759_v9  ;;  %v5338_v27 = vrot.slane %v5316_v7, %v7759_v9  ;;  %v6036_v16 = vcombine.low %v4446_v6, %v4460_v11 }
 0x141   : > { %v7529_v19 = vcombine.high %v4446_v6, %v4460_v11  ;;  %7362 = vst.msk [vmem:[%s8324_s5 + $0xa8] sm:$0xff] %vm7340_vm1, %v6817_v13  ;;  %v6083_v34 = vcombine.low %v4453_v10, %v4467_v53  ;;  %v7530_v22 = vcombine.high %v4453_v10, %v4467_v53  ;;  %v4390_v37 = vcombine.high %v4382_v23, %v4382_v23 }
 0x142   : > { %v8538_v25 = vrot.slane %v5317_v15, %v7759_v9  ;;  %v5347_v54 = vcombine.high %v5331_v47, %v5331_v47  ;;  %v6869_v20 = vcombine.low %v5324_v12, %v5338_v27  ;;  %v7547_v26 = vcombine.high %v5324_v12, %v5338_v27 }
 0x143   : > { %v6058_v28 = vrot.slane %v6036_v16, %v7759_v9  ;;  %v6065_v18 = vrot.slane %v7529_v19, %v7759_v9  ;;  %v6093_v35 = vrot.slane %v6083_v34, %v7759_v9  ;;  %v6100_v38 = vrot.slane %v7530_v22, %v7759_v9 }
 0x144   : > { %v6891_v30 = vrot.slane %v6869_v20, %v7759_v9  ;;  %v6898_v24 = vrot.slane %v7547_v26, %v7759_v9  ;;  %v8545_v31 = vcombine.low %v8538_v25, %v5347_v54  ;;  %v4391_v41 = vcombine.high %v4389_v32, %v4389_v32 }
 0x145   : > { %v6067_v33 = vcombine.low %v6058_v28, %v6065_v18  ;;  %v4398_v55 = vrot.slane %v4382_v23, %v7759_v9  ;;  %v6115_v43 = vcombine.low %v6093_v35, %v6100_v38  ;;  %v4412_v42 = vrot.slane %v4390_v37, %v7759_v9 }
 0x146   : > { %v6900_v40 = vcombine.low %v6891_v30, %v6898_v24  ;;  %v4405_v17 = vrot.slane %v4389_v32, %v7759_v9  ;;  %v4419_v44 = vrot.slane %v4391_v41, %v7759_v9  ;;  %v8560_v49 = vrot.slane %v6850_v14, %v7759_v9 }
 0x147   : > { %v4420_v45 = vcombine.high %v4398_v55, %v4398_v55  ;;  %v5987_v48 = vcombine.low %v4374_v29, %v4398_v55  ;;  %v6081_v50 = vrot.slane %v6067_v33, %v7759_v9  ;;  %v6926_v56 = vrot.slane %v8545_v31, %v7759_v9 }
 0x148   : > { %v4000_v21 = vadd.f32 %v8284_v51, %v3999_v46  ;;  %v8567_v57 = vrot.slane %v6900_v40, %v7759_v9  ;;  %v6034_v59 = vcombine.low %v4405_v17, %v4419_v44  ;;  %v7528_v29 = vcombine.high %v4405_v17, %v4419_v44 }
 0x149   : > { %v7619_v52 = vpop.f32.mrf.mxu0  ;;  %v5988_v58 = vcombine.low %v4412_v42, %v4420_v45  ;;  %v8570_v62 = vrot.slane %v6115_v43, %v7759_v9  ;;  %v6009_v0 = vrot.slane %v5987_v48, %v7759_v9  ;;  %v5349_v28 = vcombine.high %v8538_v25, %v8538_v25 }
 0x14a   : > { %v5252_v60 = vcombine.high %v4000_v21, %v4000_v21  ;;  %v5259_v61 = vrot.slane %v4000_v21, %v7759_v9  ;;  %v3925_v14 = vadd.f32 %v7619_v52, %v8284_v51  ;;  %v6044_v2 = vrot.slane %v6034_v59, %v7759_v9 }
 0x14b   : > { %v3919_v63 = vpop.f32.mrf.mxu0  ;;  %v6016_v1 = vrot.slane %v5988_v58, %v7759_v9  ;;  %v6051_v6 = vrot.slane %v7528_v29, %v7759_v9 }
 0x14c   : > { %v5266_v3 = vrot.slane %v5252_v60, %v7759_v9  ;;  %v5267_v5 = vcombine.high %v5259_v61, %v5259_v61  ;;  %v5275_v4 = vrot.slane %v5259_v61, %v7759_v9  ;;  %v4521_v7 = vcombine.high %v3925_v14, %v3925_v14 }
 0x14d   : > { %v6018_v8 = vcombine.low %v6009_v0, %v6016_v1  ;;  %v6066_v10 = vcombine.low %v6044_v2, %v6051_v6  ;;  %v4528_v11 = vrot.slane %v3925_v14, %v7759_v9  ;;  %v3920_v12 = vadd.f32 %v8284_v51, %v3919_v63 }
 0x14e   : > { %v5268_v13 = vcombine.high %v5266_v3, %v5266_v3  ;;  %v5282_v15 = vrot.slane %v5266_v3, %v7759_v9  ;;  %v5289_v47 = vrot.slane %v5267_v5, %v7759_v9  ;;  %v4535_v27 = vrot.slane %v4521_v7, %v7759_v9 }
 0x14f   : > { %v6032_v53 = vrot.slane %v6018_v8, %v7759_v9  ;;  %v6074_v16 = vrot.slane %v6066_v10, %v7759_v9  ;;  %v4536_v19 = vcombine.high %v4528_v11, %v4528_v11  ;;  %v8588_v23 = vrot.slane %v4528_v11, %v7759_v9 }
 0x150   : > { %v5296_v54 = vrot.slane %v5268_v13, %v7759_v9  ;;  %v6820_v20 = vcombine.low %v5275_v4, %v5289_v47  ;;  %v7545_v26 = vcombine.high %v5275_v4, %v5289_v47  ;;  %v4537_v22 = vcombine.high %v4535_v27, %v4535_v27  ;;  %v7646_v41 = vpop.f32.mrf.mxu1 }
 0x151   : > { %v6033_v18 = vcombine.low %v6025_v39, %v6032_v53  ;;  %v6082_v34 = vcombine.low %v6074_v16, %v6081_v50  ;;  %v4558_v30 = vrot.slane %v4536_v19, %v7759_v9  ;;  %v4551_v38 = vrot.slane %v4535_v27, %v7759_v9 }
 0x152   : > { %v6842_v24 = vrot.slane %v6820_v20, %v7759_v9  ;;  %v6849_v32 = vrot.slane %v7545_v26, %v7759_v9  ;;  %v6867_v33 = vcombine.low %v5282_v15, %v5296_v54  ;;  %v7546_v35 = vcombine.high %v5282_v15, %v5296_v54  ;;  %v4009_v4 = vpop.f32.mrf.mxu1 }
 0x153   : > { %7346 = vst.msk [vmem:[%s8324_s5 + $0x28] sm:$0xff] %vm7340_vm1, %v6033_v18  ;;  %7347 = vst.msk [vmem:[%s8324_s5 + $0x30] sm:$0xff] %vm7340_vm1, %v6082_v34  ;;  %v4566_v37 = vcombine.high %v8588_v23, %v8588_v23  ;;  %v4568_v40 = vcombine.high %v4558_v30, %v4558_v30  ;;  %v4472_v55 = vcombine.high %v3920_v12, %v3920_v12 }
 0x154   : > { %v6851_v46 = vcombine.low %v6842_v24, %v6849_v32  ;;  %v6877_v39 = vrot.slane %v6867_v33, %v7759_v9  ;;  %v6884_v43 = vrot.slane %v7546_v35, %v7759_v9  ;;  %v4015_v42 = vadd.f32 %v7646_v41, %v8284_v51 }
 0x155   : > { %v8607_v17 = vrot.slane %v4537_v22, %v7759_v9  ;;  %v6134_v44 = vcombine.low %v4558_v30, %v4566_v37  ;;  %v6135_v45 = vcombine.low %v4568_v40, %v4551_v38  ;;  %v4479_v48 = vrot.slane %v3920_v12, %v7759_v9 }
 0x156   : > { %v6865_v50 = vrot.slane %v6851_v46, %v7759_v9  ;;  %v6899_v21 = vcombine.low %v6877_v39, %v6884_v43  ;;  %v5399_v52 = vcombine.high %v4015_v42, %v4015_v42  ;;  %v5406_v58 = vrot.slane %v4015_v42, %v7759_v9 }
 0x157   : > { %v6156_v59 = vrot.slane %v6134_v44, %v7759_v9  ;;  %v6163_v29 = vrot.slane %v6135_v45, %v7759_v9  ;;  %v4486_v60 = vrot.slane %v4472_v55, %v7759_v9  ;;  %v4487_v61 = vcombine.high %v4479_v48, %v4479_v48 }
 0x158   : > { %v6866_v14 = vcombine.low %v8560_v49, %v6865_v50  ;;  %v6907_v63 = vrot.slane %v6899_v21, %v7759_v9  ;;  %v5413_v0 = vrot.slane %v5399_v52, %v7759_v9  ;;  %v5414_v1 = vcombine.high %v5406_v58, %v5406_v58 }
 0x159   : > { %v4567_v2 = vcombine.high %v4551_v38, %v4551_v38  ;;  %v8618_v6 = vcombine.low %v6156_v59, %v6163_v29  ;;  %v8621_v3 = vrot.slane %v5406_v58, %v7759_v9  ;;  %v4488_v5 = vcombine.high %v4486_v60, %v4486_v60 }
 0x15a   : > { %v6915_v7 = vcombine.low %v6907_v63, %v8567_v57  ;;  %7363 = vst.msk [vmem:[%s8324_s5 + $0xb0] sm:$0xff] %vm7340_vm1, %v6866_v14  ;;  %v5415_v8 = vcombine.high %v5413_v0, %v5413_v0  ;;  %v5429_v49 = vrot.slane %v5413_v0, %v7759_v9  ;;  %v5436_v10 = vrot.slane %v5414_v1, %v7759_v9 }
 0x15b   : > { %v5444_v11 = vcombine.high %v8621_v3, %v8621_v3  ;;  %v4495_v12 = vrot.slane %v4479_v48, %v7759_v9  ;;  %v4502_v13 = vrot.slane %v4486_v60, %v7759_v9  ;;  %v4509_v15 = vrot.slane %v4487_v61, %v7759_v9 }
 0x15c   : > { %7364 = vst.msk [vmem:[%s8324_s5 + $0xb8] sm:$0xff] %vm7340_vm1, %v6915_v7  ;;  %v5443_v57 = vrot.slane %v5415_v8, %v7759_v9  ;;  %v5446_v47 = vcombine.high %v5436_v10, %v5436_v10  ;;  %v4516_v27 = vrot.slane %v4488_v5, %v7759_v9  ;;  %v4010_v53 = vadd.f32 %v8284_v51, %v4009_v4 }
 0x15d   : > { %v6967_v16 = vcombine.low %v5436_v10, %v5444_v11  ;;  %v4518_v19 = vcombine.high %v4502_v13, %v4502_v13  ;;  %v6085_v54 = vcombine.low %v4495_v12, %v4509_v15  ;;  %v7531_v20 = vcombine.high %v4495_v12, %v4509_v15 }
 0x15e   : > { %v6968_v26 = vcombine.low %v5446_v47, %v5429_v49  ;;  %v7548_v18 = vcombine.high %v5429_v49, %v5443_v57  ;;  %v4520_v34 = vcombine.high %v4516_v27, %v4516_v27  ;;  %v5350_v22 = vcombine.high %v4010_v53, %v4010_v53 }
 0x15f   : > { %v8639_v30 = vcombine.low %v8607_v17, %v4567_v2  ;;  %v6107_v24 = vrot.slane %v6085_v54, %v7759_v9  ;;  %v6114_v32 = vrot.slane %v7531_v20, %v7759_v9  ;;  %v6132_v33 = vcombine.low %v4516_v27, %v4518_v19 }
 0x160   : > { %v6989_v35 = vrot.slane %v6967_v16, %v7759_v9  ;;  %v6996_v38 = vrot.slane %v6968_v26, %v7759_v9  ;;  %v6133_v37 = vcombine.low %v4520_v34, %v8588_v23  ;;  %v5357_v40 = vrot.slane %v4010_v53, %v7759_v9  ;;  %v8687_v16 = vld [vmem:[%s8972_s2] ss:$0 sm:$0xff] }
 0x161   : > { %v6179_v41 = vrot.slane %v8618_v6, %v7759_v9  ;;  %v8650_v55 = vrot.slane %v7548_v18, %v7759_v9  ;;  %v6116_v46 = vcombine.low %v6107_v24, %v6114_v32  ;;  %v5364_v39 = vrot.slane %v5350_v22, %v7759_v9 }
 0x162   : > { %v6142_v43 = vrot.slane %v6132_v33, %v7759_v9  ;;  %v6149_v42 = vrot.slane %v6133_v37, %v7759_v9  ;;  %v5365_v44 = vcombine.high %v5357_v40, %v5357_v40  ;;  %v5373_v45 = vrot.slane %v5357_v40, %v7759_v9 }
 0x163   : > { %v6130_v23 = vrot.slane %v6116_v46, %v7759_v9  ;;  %v5366_v48 = vcombine.high %v5364_v39, %v5364_v39  ;;  %v5380_v50 = vrot.slane %v5364_v39, %v7759_v9  ;;  %v4569_v52 = vcombine.high %v8607_v17, %v8607_v17 }
 0x164   : > { %v7622_v21 = vpop.f32.mrf.mxu0  ;;  %v6998_v58 = vcombine.low %v6989_v35, %v6996_v38  ;;  %v6164_v59 = vcombine.low %v6142_v43, %v6149_v42  ;;  %v5387_v29 = vrot.slane %v5365_v44, %v7759_v9  ;;  %v5395_v60 = vcombine.high %v5373_v45, %v5373_v45 }
 0x165   : > { %v6131_v61 = vcombine.low %v8570_v62, %v6130_v23  ;;  %v5394_v14 = vrot.slane %v5366_v48, %v7759_v9  ;;  %v5396_v63 = vcombine.high %v5380_v50, %v5380_v50  ;;  %v6917_v0 = vcombine.low %v5349_v28, %v5373_v45 }
 0x166   : > { %v3929_v1 = vpop.f32.mrf.mxu0  ;;  %v6172_v2 = vrot.slane %v6164_v59, %v7759_v9  ;;  %v5397_v6 = vcombine.high %v5387_v29, %v5387_v29  ;;  %v6918_v5 = vcombine.low %v5387_v29, %v5395_v60  ;;  %v3935_v4 = vadd.f32 %v7622_v21, %v8284_v51 }
 0x167   : > { %7348 = vst.msk [vmem:[%s8324_s5 + $0x38] sm:$0xff] %vm7340_vm1, %v6131_v61  ;;  %v5398_v7 = vcombine.high %v5394_v14, %v5394_v14  ;;  %v6933_v62 = vrot.slane %v6917_v0, %v7759_v9  ;;  %v6965_v8 = vcombine.low %v5394_v14, %v5396_v63  ;;  %v3930_v49 = vadd.f32 %v8284_v51, %v3929_v1 }
 0x168   : > { %v6180_v10 = vcombine.low %v6172_v2, %v6179_v41  ;;  %v6919_v11 = vcombine.low %v5397_v6, %v5380_v50  ;;  %v6940_v25 = vrot.slane %v6918_v5, %v7759_v9  ;;  %v4619_v28 = vcombine.high %v3935_v4, %v3935_v4 }
 0x169   : > { %v6948_v13 = vcombine.low %v6926_v56, %v6933_v62  ;;  %v6966_v15 = vcombine.low %v5398_v7, %v8621_v3  ;;  %v6975_v57 = vrot.slane %v6965_v8, %v7759_v9  ;;  %v4626_v47 = vrot.slane %v3935_v4, %v7759_v9 }
 0x16a   : > { %v7649_v12 = vpop.f32.mrf.mxu1  ;;  %v7012_v27 = vrot.slane %v6998_v58, %v7759_v9  ;;  %7349 = vst.msk [vmem:[%s8324_s5 + $0x40] sm:$0xff] %vm7340_vm1, %v6180_v10  ;;  %v6947_v51 = vrot.slane %v6919_v11, %v7759_v9  ;;  %v4633_v53 = vrot.slane %v4619_v28, %v7759_v9  ;;  %v4570_v54 = vcombine.high %v3930_v49, %v3930_v49 }
 0x16b   : > { %v4025_v31 = vadd.f32 %v8687_v16, %v7649_v12  ;;  %v6956_v56 = vrot.slane %v6948_v13, %v7759_v9  ;;  %v6982_v3 = vrot.slane %v6966_v15, %v7759_v9  ;;  %v4634_v19 = vcombine.high %v4626_v47, %v4626_v47 }
 0x16c   : > { %v6949_v20 = vcombine.low %v6940_v25, %v6947_v51  ;;  %v4635_v26 = vcombine.high %v4633_v53, %v4633_v53  ;;  %v4642_v18 = vrot.slane %v4626_v47, %v7759_v9  ;;  %v4649_v24 = vrot.slane %v4633_v53, %v7759_v9 }
 0x16d   : > { %v5497_v34 = vcombine.high %v4025_v31, %v4025_v31  ;;  %v6997_v22 = vcombine.low %v6975_v57, %v6982_v3  ;;  %v4656_v32 = vrot.slane %v4634_v19, %v7759_v9  ;;  %v5504_v33 = vrot.slane %v4025_v31, %v7759_v9 }
 0x16e   : > { %v6963_v35 = vrot.slane %v6949_v20, %v7759_v9  ;;  %v4663_v38 = vrot.slane %v4635_v26, %v7759_v9  ;;  %v4577_v40 = vrot.slane %v3930_v49, %v7759_v9  ;;  %v4584_v43 = vrot.slane %v4570_v54, %v7759_v9  ;;  %v4019_v49 = vpop.f32.mrf.mxu1 }
 0x16f   : > { %v5511_v37 = vrot.slane %v5497_v34, %v7759_v9  ;;  %v7005_v41 = vrot.slane %v6997_v22, %v7759_v9  ;;  %v7533_v46 = vcombine.high %v4642_v18, %v4656_v32  ;;  %v5512_v39 = vcombine.high %v5504_v33, %v5504_v33 }
 0x170   : > { %v6964_v42 = vcombine.low %v6956_v56, %v6963_v35  ;;  %v6233_v44 = vcombine.low %v4649_v24, %v4663_v38  ;;  %v6191_v23 = vrot.slane %v8639_v30, %v7759_v9  ;;  %v6231_v50 = vcombine.low %v4642_v18, %v4656_v32 }
 0x171   : > { %v5513_v45 = vcombine.high %v5511_v37, %v5511_v37  ;;  %v7013_v48 = vcombine.low %v7005_v41, %v7012_v27  ;;  %v7534_v21 = vcombine.high %v4649_v24, %v4663_v38  ;;  %v5520_v58 = vrot.slane %v5504_v33, %v7759_v9 }
 0x172   : > { %7365 = vst.msk [vmem:[%s8324_s5 + $0xc0] sm:$0xff] %vm7340_vm1, %v6964_v42  ;;  %v6254_v59 = vrot.slane %v7533_v46, %v7759_v9  ;;  %v6261_v29 = vrot.slane %v6233_v44, %v7759_v9  ;;  %v5527_v60 = vrot.slane %v5511_v37, %v7759_v9  ;;  %v5534_v61 = vrot.slane %v5512_v39, %v7759_v9 }
 0x173   : > { %7366 = vst.msk [vmem:[%s8324_s5 + $0xc8] sm:$0xff] %vm7340_vm1, %v7013_v48  ;;  %v8714_v14 = vrot.slane %v5513_v45, %v7759_v9  ;;  %v4585_v30 = vcombine.high %v4577_v40, %v4577_v40  ;;  %v4586_v63 = vcombine.high %v4584_v43, %v4584_v43  ;;  %v4593_v0 = vrot.slane %v4577_v40, %v7759_v9 }
 0x174   : > { %v6263_v1 = vcombine.low %v6254_v59, %v6261_v29  ;;  %v7064_v2 = vcombine.low %v5520_v58, %v5534_v61  ;;  %v7551_v6 = vcombine.high %v5520_v58, %v5534_v61  ;;  %v4600_v5 = vrot.slane %v4584_v43, %v7759_v9 }
 0x175   : > { %v7066_v4 = vcombine.low %v5527_v60, %v8714_v14  ;;  %v4607_v7 = vrot.slane %v4585_v30, %v7759_v9  ;;  %v4614_v62 = vrot.slane %v4586_v63, %v7759_v9  ;;  %v4615_v8 = vcombine.high %v4593_v0, %v4593_v0 }
 0x176   : > { %v6247_v10 = vrot.slane %v6231_v50, %v7759_v9  ;;  %v8723_v11 = vrot.slane %v7534_v21, %v7759_v9  ;;  %v7087_v25 = vrot.slane %v7551_v6, %v7759_v9  ;;  %v6182_v28 = vcombine.low %v4569_v52, %v4593_v0 }
 0x177   : > { %v7094_v12 = vrot.slane %v7066_v4, %v7759_v9  ;;  %v4617_v13 = vcombine.high %v4607_v7, %v4607_v7  ;;  %v6183_v15 = vcombine.low %v4607_v7, %v4615_v8  ;;  %v7532_v57 = vcombine.high %v4600_v5, %v4614_v62 }
 0x178   : > { %v6277_v47 = vrot.slane %v6263_v1, %v7759_v9  ;;  %v8732_v27 = vrot.slane %v7064_v2, %v7759_v9  ;;  %v6198_v51 = vrot.slane %v6182_v28, %v7759_v9  ;;  %v4020_v53 = vadd.f32 %v8687_v16, %v4019_v49 }
 0x179   : > { %v8736_v31 = vcombine.low %v7087_v25, %v7094_v12  ;;  %v6184_v56 = vcombine.low %v4617_v13, %v4600_v5  ;;  %v6240_v17 = vrot.slane %v7532_v57, %v7759_v9  ;;  %v5544_v3 = vcombine.high %v8714_v14, %v8714_v14 }
 0x17a   : > { %v6213_v19 = vcombine.low %v6191_v23, %v6198_v51  ;;  %v5448_v54 = vcombine.high %v4020_v53, %v4020_v53  ;;  %v5455_v20 = vrot.slane %v4020_v53, %v7759_v9  ;;  %v6205_v34 = vrot.slane %v6183_v15, %v7759_v9 }
 0x17b   : > { %v7625_v52 = vpop.f32.mrf.mxu0  ;;  %v7110_v18 = vrot.slane %v8736_v31, %v7759_v9  ;;  %v6212_v22 = vrot.slane %v6184_v56, %v7759_v9  ;;  %v6262_v24 = vcombine.low %v6240_v17, %v6247_v10 }
 0x17c   : > { %v3945_v26 = vadd.f32 %v8687_v16, %v7625_v52  ;;  %v6221_v33 = vrot.slane %v6213_v19, %v7759_v9  ;;  %v5462_v35 = vrot.slane %v5448_v54, %v7759_v9  ;;  %v5463_v38 = vcombine.high %v5455_v20, %v5455_v20 }
 0x17d   : > { %v3939_v32 = vpop.f32.mrf.mxu0  ;;  %v5471_v37 = vrot.slane %v5455_v20, %v7759_v9  ;;  %v6214_v40 = vcombine.low %v6205_v34, %v6212_v22  ;;  %v6270_v41 = vrot.slane %v6262_v24, %v7759_v9 }
 0x17e   : > { %v4716_v46 = vcombine.high %v3945_v26, %v3945_v26  ;;  %v4723_v39 = vrot.slane %v3945_v26, %v7759_v9  ;;  %v5464_v43 = vcombine.high %v5462_v35, %v5462_v35  ;;  %v5478_v42 = vrot.slane %v5462_v35, %v7759_v9 }
 0x17f   : > { %v5485_v44 = vrot.slane %v5463_v38, %v7759_v9  ;;  %v3940_v45 = vadd.f32 %v8687_v16, %v3939_v32  ;;  %v6228_v23 = vrot.slane %v6214_v40, %v7759_v9  ;;  %v6278_v48 = vcombine.low %v6270_v41, %v6277_v47 }
 0x180   : > { %v4730_v50 = vrot.slane %v4716_v46, %v7759_v9  ;;  %v4731_v21 = vcombine.high %v4723_v39, %v4723_v39  ;;  %v5492_v58 = vrot.slane %v5464_v43, %v7759_v9  ;;  %v8759_v60 = vrot.slane %v4723_v39, %v7759_v9  ;;  %v7652_v49 = vpop.f32.mrf.mxu1 }
 0x181   : > { %v7015_v59 = vcombine.low %v5471_v37, %v5485_v44  ;;  %v7549_v29 = vcombine.high %v5471_v37, %v5485_v44  ;;  %v6229_v61 = vcombine.low %v6221_v33, %v6228_v23  ;;  %7351 = vst.msk [vmem:[%s8324_s5 + $0x50] sm:$0xff] %vm7340_vm1, %v6278_v48  ;;  %v4035_v12 = vadd.f32 %v8687_v16, %v7652_v49 }
 0x182   : > { %v4732_v30 = vcombine.high %v4730_v50, %v4730_v50  ;;  %v4746_v63 = vrot.slane %v4730_v50, %v7759_v9  ;;  %v4753_v0 = vrot.slane %v4731_v21, %v7759_v9  ;;  %v7017_v1 = vcombine.low %v5478_v42, %v5492_v58 }
 0x183   : > { %v7031_v2 = vrot.slane %v7015_v59, %v7759_v9  ;;  %v7038_v6 = vrot.slane %v7549_v29, %v7759_v9  ;;  %v7550_v5 = vcombine.high %v5478_v42, %v5492_v58  ;;  %7350 = vst.msk [vmem:[%s8324_s5 + $0x48] sm:$0xff] %vm7340_vm1, %v6229_v61  ;;  %v4761_v7 = vcombine.high %v8759_v60, %v8759_v60  ;;  %v4029_v42 = vpop.f32.mrf.mxu1 }
 0x184   : > { %v8770_v4 = vrot.slane %v4732_v30, %v7759_v9  ;;  %v4762_v62 = vcombine.high %v4746_v63, %v4746_v63  ;;  %v4763_v8 = vcombine.high %v4753_v0, %v4753_v0  ;;  %v7045_v10 = vrot.slane %v7017_v1, %v7759_v9 }
 0x185   : > { %v7046_v25 = vcombine.low %v8650_v55, %v7031_v2  ;;  %v7073_v28 = vrot.slane %v7550_v5, %v7759_v9  ;;  %v8778_v13 = vcombine.low %v4753_v0, %v4761_v7  ;;  %v4668_v47 = vcombine.high %v3940_v45, %v3940_v45 }
 0x186   : > { %v6330_v15 = vcombine.low %v4763_v8, %v4746_v63  ;;  %v6331_v57 = vcombine.low %v8770_v4, %v4762_v62  ;;  %v7047_v51 = vcombine.low %v7038_v6, %v7045_v10  ;;  %v5594_v17 = vcombine.high %v4035_v12, %v4035_v12 }
 0x187   : > { %v7054_v53 = vrot.slane %v7046_v25, %v7759_v9  ;;  %v7095_v56 = vcombine.low %v7073_v28, %v8732_v27  ;;  %v6345_v52 = vrot.slane %v8778_v13, %v7759_v9  ;;  %v5601_v54 = vrot.slane %v4035_v12, %v7759_v9 }
 0x188   : > { %v6352_v55 = vrot.slane %v6330_v15, %v7759_v9  ;;  %v6359_v19 = vrot.slane %v6331_v57, %v7759_v9  ;;  %v7061_v20 = vrot.slane %v7047_v51, %v7759_v9  ;;  %v5608_v34 = vrot.slane %v5594_v17, %v7759_v9 }
 0x189   : > { %v7103_v26 = vrot.slane %v7095_v56, %v7759_v9  ;;  %v4675_v27 = vrot.slane %v3940_v45, %v7759_v9  ;;  %v5609_v24 = vcombine.high %v5601_v54, %v5601_v54  ;;  %v8795_v32 = vrot.slane %v5601_v54, %v7759_v9 }
 0x18a   : > { %v8792_v22 = vcombine.low %v6352_v55, %v6359_v19  ;;  %v4682_v33 = vrot.slane %v4668_v47, %v7759_v9  ;;  %v7062_v35 = vcombine.low %v7054_v53, %v7061_v20  ;;  %v5610_v37 = vcombine.high %v5608_v34, %v5608_v34 }
 0x18b   : > { %v7111_v38 = vcombine.low %v7103_v26, %v7110_v18  ;;  %v5624_v40 = vrot.slane %v5608_v34, %v7759_v9  ;;  %v5631_v46 = vrot.slane %v5609_v24, %v7759_v9  ;;  %v5639_v39 = vcombine.high %v8795_v32, %v8795_v32 }
 0x18c   : > { %v6375_v41 = vrot.slane %v8792_v22, %v7759_v9  ;;  %v4683_v43 = vcombine.high %v4675_v27, %v4675_v27  ;;  %7367 = vst.msk [vmem:[%s8324_s5 + $0xd0] sm:$0xff] %vm7340_vm1, %v7062_v35  ;;  %v5638_v31 = vrot.slane %v5610_v37, %v7759_v9  ;;  %v4684_v44 = vcombine.high %v4682_v33, %v4682_v33 }
 0x18d   : > { %7368 = vst.msk [vmem:[%s8324_s5 + $0xd8] sm:$0xff] %vm7340_vm1, %v7111_v38  ;;  %v5640_v18 = vcombine.high %v5624_v40, %v5624_v40  ;;  %v4691_v45 = vrot.slane %v4675_v27, %v7759_v9  ;;  %v5641_v23 = vcombine.high %v5631_v46, %v5631_v46  ;;  %v8813_v48 = vcombine.low %v5631_v46, %v5639_v39 }
 0x18e   : > { %v4698_v50 = vrot.slane %v4682_v33, %v7759_v9  ;;  %v4705_v21 = vrot.slane %v4683_v43, %v7759_v9  ;;  %v4712_v59 = vrot.slane %v4684_v44, %v7759_v9  ;;  %v4030_v29 = vadd.f32 %v8687_v16, %v4029_v42 }
 0x18f   : > { %v7164_v58 = vcombine.low %v5638_v31, %v5640_v18  ;;  %v4764_v61 = vcombine.high %v8770_v4, %v8770_v4  ;;  %v7163_v30 = vcombine.low %v5641_v23, %v5624_v40  ;;  %v7178_v63 = vrot.slane %v8813_v48, %v7759_v9 }
 0x190   : > { %v6280_v0 = vcombine.low %v4691_v45, %v4705_v21  ;;  %v7535_v1 = vcombine.high %v4691_v45, %v4705_v21  ;;  %v4715_v6 = vcombine.high %v4712_v59, %v4712_v59  ;;  %v6282_v5 = vcombine.low %v4698_v50, %v4712_v59 }
 0x191   : > { %v7192_v2 = vrot.slane %v7164_v58, %v7759_v9  ;;  %v5545_v7 = vcombine.high %v4030_v29, %v4030_v29  ;;  %v7185_v62 = vrot.slane %v7163_v30, %v7759_v9  ;;  %v5552_v10 = vrot.slane %v4030_v29, %v7759_v9 }
 0x192   : > { %v6296_v8 = vrot.slane %v6280_v0, %v7759_v9  ;;  %v6303_v49 = vrot.slane %v7535_v1, %v7759_v9  ;;  %v6310_v28 = vrot.slane %v6282_v5, %v7759_v9  ;;  %v6328_v12 = vcombine.low %v4715_v6, %v8759_v60 }
 0x193   : > { %v7628_v25 = vpop.f32.mrf.mxu0  ;;  %v5559_v15 = vrot.slane %v5545_v7, %v7759_v9  ;;  %v8832_v47 = vcombine.low %v7185_v62, %v7192_v2  ;;  %v5560_v53 = vcombine.high %v5552_v10, %v5552_v10  ;;  %v5568_v56 = vrot.slane %v5552_v10, %v7759_v9 }
 0x194   : > { %v3955_v57 = vadd.f32 %v8687_v16, %v7628_v25  ;;  %v6311_v51 = vcombine.low %v8723_v11, %v6296_v8  ;;  %v6312_v17 = vcombine.low %v6303_v49, %v6310_v28  ;;  %v6338_v55 = vrot.slane %v6328_v12, %v7759_v9 }
 0x195   : > { %v5561_v19 = vcombine.high %v5559_v15, %v5559_v15  ;;  %v5575_v54 = vrot.slane %v5559_v15, %v7759_v9  ;;  %v7208_v60 = vrot.slane %v8832_v47, %v7759_v9  ;;  %v5582_v26 = vrot.slane %v5560_v53, %v7759_v9  ;;  %v3949_v50 = vpop.f32.mrf.mxu0 }
 0x196   : > { %v6319_v20 = vrot.slane %v6311_v51, %v7759_v9  ;;  %v5590_v34 = vcombine.high %v5568_v56, %v5568_v56  ;;  %v6326_v27 = vrot.slane %v6312_v17, %v7759_v9  ;;  %v6360_v11 = vcombine.low %v6338_v55, %v6345_v52 }
 0x197   : > { %v5589_v24 = vrot.slane %v5561_v19, %v7759_v9  ;;  %v5591_v33 = vcombine.high %v5575_v54, %v5575_v54  ;;  %v5592_v35 = vcombine.high %v5582_v26, %v5582_v26  ;;  %v7112_v38 = vcombine.low %v5544_v3, %v5568_v56 }
 0x198   : > { %v7113_v37 = vcombine.low %v5582_v26, %v5590_v34  ;;  %v4813_v40 = vcombine.high %v3955_v57, %v3955_v57  ;;  %v6327_v46 = vcombine.low %v6319_v20, %v6326_v27  ;;  %v6368_v39 = vrot.slane %v6360_v11, %v7759_v9 }
 0x199   : > { %v5593_v43 = vcombine.high %v5589_v24, %v5589_v24  ;;  %v7115_v42 = vcombine.low %v5589_v24, %v5591_v33  ;;  %v7114_v31 = vcombine.low %v5592_v35, %v5575_v54  ;;  %v7122_v13 = vrot.slane %v7112_v38, %v7759_v9  ;;  %v7655_v44 = vpop.f32.mrf.mxu1 }
 0x19a   : > { %v7129_v52 = vrot.slane %v7113_v37, %v7759_v9  ;;  %v4820_v18 = vrot.slane %v3955_v57, %v7759_v9  ;;  %v6376_v14 = vcombine.low %v6368_v39, %v6375_v41  ;;  %7352 = vst.msk [vmem:[%s8324_s5 + $0x58] sm:$0xff] %vm7340_vm1, %v6327_v46  ;;  %v4827_v23 = vrot.slane %v4813_v40, %v7759_v9 }
 0x19b   : > { %v7143_v3 = vrot.slane %v7115_v42, %v7759_v9  ;;  %v7161_v45 = vcombine.low %v5593_v43, %v8795_v32  ;;  %v7136_v21 = vrot.slane %v7114_v31, %v7759_v9  ;;  %v4045_v0 = vadd.f32 %v8687_v16, %v7655_v44  ;;  %v4039_v54 = vpop.f32.mrf.mxu1 }
 0x19c   : > { %v7144_v58 = vcombine.low %v7122_v13, %v7129_v52  ;;  %v4828_v59 = vcombine.high %v4820_v18, %v4820_v18  ;;  %v4836_v29 = vrot.slane %v4820_v18, %v7759_v9  ;;  %7353 = vst.msk [vmem:[%s8324_s5 + $0x60] sm:$0xff] %vm7340_vm1, %v6376_v14  ;;  %v4829_v41 = vcombine.high %v4827_v23, %v4827_v23 }
 0x19d   : > { %v7171_v22 = vrot.slane %v7161_v45, %v7759_v9  ;;  %v4843_v30 = vrot.slane %v4827_v23, %v7759_v9  ;;  %v7145_v1 = vcombine.low %v7136_v21, %v7143_v3  ;;  %v3950_v6 = vadd.f32 %v8687_v16, %v3949_v50 }
 0x19e   : > { %v7152_v32 = vrot.slane %v7144_v58, %v7759_v9  ;;  %v4850_v2 = vrot.slane %v4828_v59, %v7759_v9  ;;  %v4857_v7 = vrot.slane %v4829_v41, %v7759_v9  ;;  %v5691_v62 = vcombine.high %v4045_v0, %v4045_v0 }
 0x19f   : > { %v7193_v5 = vcombine.low %v7171_v22, %v7178_v63  ;;  %v5698_v8 = vrot.slane %v4045_v0, %v7759_v9  ;;  %v7159_v49 = vrot.slane %v7145_v1, %v7759_v9  ;;  %v4765_v28 = vcombine.high %v3950_v6, %v3950_v6 }
 0x1a0   : > { %v6426_v10 = vcombine.low %v4836_v29, %v4850_v2  ;;  %v7536_v25 = vcombine.high %v4836_v29, %v4850_v2  ;;  %v6428_v15 = vcombine.low %v4843_v30, %v4857_v7  ;;  %v7537_v57 = vcombine.high %v4843_v30, %v4857_v7 }
 0x1a1   : > { %v7201_v12 = vrot.slane %v7193_v5, %v7759_v9  ;;  %v5705_v47 = vrot.slane %v5691_v62, %v7759_v9  ;;  %v7160_v48 = vcombine.low %v7152_v32, %v7159_v49  ;;  %v5706_v53 = vcombine.high %v5698_v8, %v5698_v8 }
 0x1a2   : > { %v6436_v63 = vrot.slane %v6426_v10, %v7759_v9  ;;  %v6443_v51 = vrot.slane %v7536_v25, %v7759_v9  ;;  %v6450_v17 = vrot.slane %v6428_v15, %v7759_v9  ;;  %v6457_v55 = vrot.slane %v7537_v57, %v7759_v9 }
 0x1a3   : > { %v7209_v56 = vcombine.low %v7201_v12, %v7208_v60  ;;  %v5707_v19 = vcombine.high %v5705_v47, %v5705_v47  ;;  %7369 = vst.msk [vmem:[%s8324_s5 + $0xe0] sm:$0xff] %vm7340_vm1, %v7160_v48  ;;  %v5714_v26 = vrot.slane %v5698_v8, %v7759_v9  ;;  %v5721_v34 = vrot.slane %v5705_v47, %v7759_v9 }
 0x1a4   : > { %v6458_v20 = vcombine.low %v6436_v63, %v6443_v51  ;;  %v5728_v27 = vrot.slane %v5706_v53, %v7759_v9  ;;  %v6459_v11 = vcombine.low %v6450_v17, %v6457_v55  ;;  %v4772_v24 = vrot.slane %v3950_v6, %v7759_v9  ;;  %v7631_v59 = vpop.f32.mrf.mxu0 }
 0x1a5   : > { %7370 = vst.msk [vmem:[%s8324_s5 + $0xe8] sm:$0xff] %vm7340_vm1, %v7209_v56  ;;  %v5735_v60 = vrot.slane %v5707_v19, %v7759_v9  ;;  %v4779_v33 = vrot.slane %v4765_v28, %v7759_v9  ;;  %v4040_v40 = vadd.f32 %v8687_v16, %v4039_v54  ;;  %v3965_v63 = vadd.f32 %v8687_v16, %v7631_v59 }
 0x1a6   : > { %v6466_v35 = vrot.slane %v6458_v20, %v7759_v9  ;;  %v7259_v38 = vcombine.low %v5714_v26, %v5728_v27  ;;  %v7554_v37 = vcombine.high %v5714_v26, %v5728_v27  ;;  %v6473_v46 = vrot.slane %v6459_v11, %v7759_v9  ;;  %v3959_v10 = vpop.f32.mrf.mxu0 }
 0x1a7   : > { %v7261_v39 = vcombine.low %v5721_v34, %v5735_v60  ;;  %v7555_v43 = vcombine.high %v5721_v34, %v5735_v60  ;;  %v4780_v42 = vcombine.high %v4772_v24, %v4772_v24  ;;  %v4781_v52 = vcombine.high %v4779_v33, %v4779_v33 }
 0x1a8   : > { %v7269_v31 = vrot.slane %v7259_v38, %v7759_v9  ;;  %v7276_v13 = vrot.slane %v7554_v37, %v7759_v9  ;;  %v4788_v18 = vrot.slane %v4772_v24, %v7759_v9  ;;  %v6474_v44 = vcombine.low %v6466_v35, %v6473_v46 }
 0x1a9   : > { %v7283_v14 = vrot.slane %v7261_v39, %v7759_v9  ;;  %v7290_v3 = vrot.slane %v7555_v43, %v7759_v9  ;;  %v4795_v45 = vrot.slane %v4779_v33, %v7759_v9  ;;  %v4802_v50 = vrot.slane %v4780_v42, %v7759_v9 }
 0x1aa   : > { %v7291_v23 = vcombine.low %v7269_v31, %v7276_v13  ;;  %v4809_v21 = vrot.slane %v4781_v52, %v7759_v9  ;;  %v4810_v58 = vcombine.high %v4788_v18, %v4788_v18  ;;  %7355 = vst.msk [vmem:[%s8324_s5 + $0x70] sm:$0xff] %vm7340_vm1, %v6474_v44  ;;  %v6377_v41 = vcombine.low %v4764_v61, %v4788_v18 }
 0x1ab   : > { %v7292_v29 = vcombine.low %v7283_v14, %v7290_v3  ;;  %v4811_v22 = vcombine.high %v4795_v45, %v4795_v45  ;;  %v5642_v30 = vcombine.high %v4040_v40, %v4040_v40  ;;  %v4812_v1 = vcombine.high %v4802_v50, %v4802_v50 }
 0x1ac   : > { %v7299_v0 = vrot.slane %v7291_v23, %v7759_v9  ;;  %v6378_v32 = vcombine.low %v4802_v50, %v4810_v58  ;;  %v5649_v2 = vrot.slane %v4040_v40, %v7759_v9  ;;  %v6387_v7 = vrot.slane %v6377_v41, %v7759_v9 }
 0x1ad   : > { %v7306_v6 = vrot.slane %v7292_v29, %v7759_v9  ;;  %v6380_v5 = vcombine.low %v4809_v21, %v4811_v22  ;;  %v5656_v62 = vrot.slane %v5642_v30, %v7759_v9  ;;  %v6379_v8 = vcombine.low %v4812_v1, %v4795_v45 }
 0x1ae   : > { %v6394_v49 = vrot.slane %v6378_v32, %v7759_v9  ;;  %v5657_v4 = vcombine.high %v5649_v2, %v5649_v2  ;;  %v5665_v61 = vrot.slane %v5649_v2, %v7759_v9  ;;  %v3960_v53 = vadd.f32 %v8687_v16, %v3959_v10 }
 0x1af   : > { %v7307_v25 = vcombine.low %v7299_v0, %v7306_v6  ;;  %v6408_v28 = vrot.slane %v6380_v5, %v7759_v9  ;;  %v5658_v12 = vcombine.high %v5656_v62, %v5656_v62  ;;  %v5672_v15 = vrot.slane %v5656_v62, %v7759_v9 }
 0x1b0   : > { %v6401_v57 = vrot.slane %v6379_v8, %v7759_v9  ;;  %v6409_v47 = vcombine.low %v6387_v7, %v6394_v49  ;;  %v5679_v48 = vrot.slane %v5657_v4, %v7759_v9  ;;  %v4911_v26 = vcombine.high %v3965_v63, %v3965_v63 }
 0x1b1   : > { %7372 = vst.msk [vmem:[%s8324_s5 + $0xf8] sm:$0xff] %vm7340_vm1, %v7307_v25  ;;  %v5686_v51 = vrot.slane %v5658_v12, %v7759_v9  ;;  %v4918_v34 = vrot.slane %v3965_v63, %v7759_v9  ;;  %v4862_v24 = vcombine.high %v3960_v53, %v3960_v53  ;;  %v4869_v39 = vrot.slane %v3960_v53, %v7759_v9 }
 0x1b2   : > { %v6410_v56 = vcombine.low %v6401_v57, %v6408_v28  ;;  %v6417_v17 = vrot.slane %v6409_v47, %v7759_v9  ;;  %v7210_v55 = vcombine.low %v5665_v61, %v5679_v48  ;;  %v7552_v19 = vcombine.high %v5665_v61, %v5679_v48 }
 0x1b3   : > { %v7212_v54 = vcombine.low %v5672_v15, %v5686_v51  ;;  %v7553_v20 = vcombine.high %v5672_v15, %v5686_v51  ;;  %v4925_v35 = vrot.slane %v4911_v26, %v7759_v9  ;;  %v4926_v38 = vcombine.high %v4918_v34, %v4918_v34 }
 0x1b4   : > { %v6424_v27 = vrot.slane %v6410_v56, %v7759_v9  ;;  %v7220_v11 = vrot.slane %v7210_v55, %v7759_v9  ;;  %v7227_v60 = vrot.slane %v7552_v19, %v7759_v9  ;;  %v4934_v46 = vrot.slane %v4918_v34, %v7759_v9 }
 0x1b5   : > { %v7234_v16 = vrot.slane %v7212_v54, %v7759_v9  ;;  %v7241_v33 = vrot.slane %v7553_v20, %v7759_v9  ;;  %v4927_v42 = vcombine.high %v4925_v35, %v4925_v35  ;;  %v4941_v31 = vrot.slane %v4925_v35, %v7759_v9 }
 0x1b6   : > { %v6425_v37 = vcombine.low %v6417_v17, %v6424_v27  ;;  %v7242_v40 = vcombine.low %v7220_v11, %v7227_v60  ;;  %v4948_v13 = vrot.slane %v4926_v38, %v7759_v9  ;;  %v4956_v18 = vcombine.high %v4934_v46, %v4934_v46 }
 0x1b7   : > { %v7243_v43 = vcombine.low %v7234_v16, %v7241_v33  ;;  %v4876_v44 = vrot.slane %v4862_v24, %v7759_v9  ;;  %v4877_v14 = vcombine.high %v4869_v39, %v4869_v39  ;;  %v4955_v45 = vrot.slane %v4927_v42, %v7759_v9 }
 0x1b8   : > { %7354 = vst.msk [vmem:[%s8324_s5 + $0x68] sm:$0xff] %vm7340_vm1, %v6425_v37  ;;  %v7250_v52 = vrot.slane %v7242_v40, %v7759_v9  ;;  %v4957_v23 = vcombine.high %v4941_v31, %v4941_v31  ;;  %v4958_v50 = vcombine.high %v4948_v13, %v4948_v13  ;;  %v6524_v21 = vcombine.low %v4948_v13, %v4956_v18 }
 0x1b9   : > { %v7257_v3 = vrot.slane %v7243_v43, %v7759_v9  ;;  %v4878_v58 = vcombine.high %v4876_v44, %v4876_v44  ;;  %v4959_v29 = vcombine.high %v4955_v45, %v4955_v45  ;;  %v4885_v30 = vrot.slane %v4869_v39, %v7759_v9 }
 0x1ba   : > { %v6525_v22 = vcombine.low %v4958_v50, %v4941_v31  ;;  %v6526_v41 = vcombine.low %v4955_v45, %v4957_v23  ;;  %v4892_v0 = vrot.slane %v4876_v44, %v7759_v9  ;;  %v4899_v1 = vrot.slane %v4877_v14, %v7759_v9 }
 0x1bb   : > { %v7258_v59 = vcombine.low %v7250_v52, %v7257_v3  ;;  %v4906_v32 = vrot.slane %v4878_v58, %v7759_v9  ;;  %v6527_v2 = vcombine.low %v4959_v29, %v8309_v36  ;;  %v6534_v6 = vrot.slane %v6524_v21, %v7759_v9 }
 0x1bc   : > { %v6541_v5 = vrot.slane %v6525_v22, %v7759_v9  ;;  %v6475_v7 = vcombine.low %v4885_v30, %v4899_v1  ;;  %v7538_v62 = vcombine.high %v4885_v30, %v4899_v1  ;;  %v6548_v4 = vrot.slane %v6526_v41, %v7759_v9 }
 0x1bd   : > { %7371 = vst.msk [vmem:[%s8324_s5 + $0xf0] sm:$0xff] %vm7340_vm1, %v7258_v59  ;;  %v6477_v8 = vcombine.low %v4892_v0, %v4906_v32  ;;  %v7539_v49 = vcombine.high %v4892_v0, %v4906_v32  ;;  %v6555_v61 = vrot.slane %v6527_v2, %v7759_v9 }
 0x1be   : > { %v6556_v10 = vcombine.low %v6534_v6, %v6541_v5  ;;  %v6485_v25 = vrot.slane %v6475_v7, %v7759_v9  ;;  %v6492_v28 = vrot.slane %v7538_v62, %v7759_v9 }
 0x1bf   : > { %v6499_v36 = vrot.slane %v6477_v8, %v7759_v9  ;;  %v6506_v12 = vrot.slane %v7539_v49, %v7759_v9  ;;  %v6557_v15 = vcombine.low %v6548_v4, %v6555_v61 }
 0x1c0   : > { %v6507_v57 = vcombine.low %v6485_v25, %v6492_v28  ;;  %v6564_v48 = vrot.slane %v6556_v10, %v7759_v9 }
 0x1c1   : > { %v6508_v47 = vcombine.low %v6499_v36, %v6506_v12  ;;  %v6571_v63 = vrot.slane %v6557_v15, %v7759_v9 }
 0x1c2   : > { %v6515_v51 = vrot.slane %v6507_v57, %v7759_v9 }
 0x1c3   : > { %v6522_v53 = vrot.slane %v6508_v47, %v7759_v9  ;;  %v6572_v56 = vcombine.low %v6564_v48, %v6571_v63 }
 0x1c5   : > { %v6523_v17 = vcombine.low %v6515_v51, %v6522_v53  ;;  %7357 = vst.msk [vmem:[%s8324_s5 + $0x80] sm:$0xff] %vm7340_vm1, %v6572_v56 }
 0x1c7   : > { %7356 = vst.msk [vmem:[%s8324_s5 + $0x78] sm:$0xff] %vm7340_vm1, %v6523_v17 }
 0x1c8 PF: > { %s13_s12 = sadd.s32 1, %s7713_s12  }
 0x1c9   : > { %p10_p4 = scmp.ge.s32.totalorder %s13_s12, 4  }
 0x1cb   :  { %12 = sbr.rel (!%p10_p4) target bundleno = 1 (0x1), region = 62 }

</bundles_post_ra>
